<compile_context>
chip_gen: v5e
topology: v5e:2x2
jax: 0.10.0
libtpu: 0.0.40
codegen_flags: <defaults>
</compile_context>

<pallas_src>
import functools
import math

import numpy as np
import jax
import jax.numpy as jnp
from jax import lax
from jax.experimental import pallas as pl
from jax.experimental.pallas import tpu as pltpu

EPS = 1e-8          # eps used by l1norm / l2norm in the torch code
BN_EPS = 1e-5       # BatchNorm eps (eval mode: x / sqrt(1 + eps))
SMOOTH = 9.0        # SCAN attention smooth factor
SGR_STEPS = 3       # number of GraphReasoning steps


def _round_up(x, m):
    return -(-x // m) * m


# ----------------------------- plain-JAX glue ---------------------------------
def l2norm(x, axis=-1, eps=EPS):
    return x / (jnp.sqrt(jnp.sum(x * x, axis=axis, keepdims=True)) + eps)


def sa_global(local, raw_global, p, use_bn):
    """VisualSA / TextSA global pooling (eval mode). local: (B, N, D), raw_global: (B, D)."""
    scale = 1.0 / math.sqrt(1.0 + BN_EPS) if use_bn else 1.0
    l_emb = jnp.tanh((local @ p["Wl"] + p["bl"]) * scale)
    g_emb = jnp.tanh((raw_global @ p["Wg"] + p["bg"]) * scale)
    common = l_emb * g_emb[:, None, :]
    w = (common @ p["Wc"] + p["bc"])[..., 0]          # (B, N)
    w = jax.nn.softmax(w, axis=1)
    new_global = jnp.sum(w[..., None] * local, axis=1)
    return l2norm(new_global, axis=-1)


# ------------------------------ Pallas kernel ----------------------------------
def _sim_kernel(img_ref, cap_ref, simglo_ref,
                w_loc_ref, b_loc_ref,
                wq_ref, bq_ref, wk_ref, bk_ref, wg_ref, bg_ref,
                w_eval_ref, b_eval_ref,
                out_ref, emb_ref, *, L, Lp, Np, C):
    """One program = one image x a block of C captions.

    Node layout of emb_ref (C, Np, S): nodes 0..L-1 = words, node L = global node,
    nodes L+1..Np-1 = padding (masked out of every edge softmax).
    """
    HIGH = lax.Precision.HIGHEST
    f32 = jnp.float32

    img = img_ref[0]                      # (R, D)
    cap = cap_ref[...]                    # (C*Lp, D), zero-padded words
    R, _ = img.shape
    S = w_loc_ref.shape[1]

    # ---- SCAN attention: C captions (Lp words each) vs one image --------------
    attn = lax.dot_general(cap, img, (((1,), (1,)), ((), ())),
                           precision=HIGH, preferred_element_type=f32)        # (C*Lp, R)
    attn = jnp.where(attn >= 0, attn, 0.1 * attn)                             # LeakyReLU(0.1)
    attn3 = attn.reshape(C, Lp, R)
    ss = jnp.sum(attn3 * attn3, axis=1, keepdims=True)                        # per-caption word norm
    attn3 = attn3 / (jnp.sqrt(ss) + EPS)
    attn3 = jax.nn.softmax(attn3 * SMOOTH, axis=-1)                           # softmax over regions
    wctx = lax.dot_general(attn3.reshape(C * Lp, R), img, (((1,), (0,)), ((), ())),
                           precision=HIGH, preferred_element_type=f32)        # (C*Lp, D)
    wctx = wctx / (jnp.sqrt(jnp.sum(wctx * wctx, axis=-1, keepdims=True)) + EPS)

    # ---- local similarity embedding -------------------------------------------
    diff = (wctx - cap) ** 2
    sim_loc = lax.dot_general(diff, w_loc_ref[...], (((1,), (0,)), ((), ())),
                              precision=HIGH, preferred_element_type=f32) + b_loc_ref[...]
    sim_loc = sim_loc / (jnp.sqrt(jnp.sum(sim_loc * sim_loc, axis=-1, keepdims=True)) + EPS)

    # ---- assemble 8-aligned node buffer in VMEM scratch ------------------------
    emb_ref[:, 0:Lp, :] = sim_loc.reshape(C, Lp, S)
    if Np > Lp:  # static branch: only when L % 8 == 0
        emb_ref[:, Lp:Np, :] = jnp.zeros((C, Np - Lp, S), f32)
    emb_ref[:, L:L + 1, :] = simglo_ref[0][:, None, :]                        # global node at index L

    emb = emb_ref[...]                                                        # (C, Np, S)
    col_mask = lax.broadcasted_iota(jnp.int32, (1, 1, Np), 2) <= L            # keep words + global node

    # ---- SGR graph reasoning steps (fully unrolled) ----------------------------
    for step in range(SGR_STEPS):
        emb_f = emb.reshape(C * Np, S)
        q = lax.dot_general(emb_f, wq_ref[step], (((1,), (0,)), ((), ())),
                            precision=HIGH, preferred_element_type=f32) + bq_ref[step]
        k = lax.dot_general(emb_f, wk_ref[step], (((1,), (0,)), ((), ())),
                            precision=HIGH, preferred_element_type=f32) + bk_ref[step]
        logits = jnp.einsum('cns,cms->cnm', q.reshape(C, Np, S), k.reshape(C, Np, S),
                            precision=HIGH, preferred_element_type=f32)       # (C, Np, Np)
        edge = jax.nn.softmax(jnp.where(col_mask, logits, -1e30), axis=-1)
        sgr = jnp.einsum('cnm,cms->cns', edge, emb,
                         precision=HIGH, preferred_element_type=f32)          # (C, Np, S)
        new = lax.dot_general(sgr.reshape(C * Np, S), wg_ref[step], (((1,), (0,)), ((), ())),
                              precision=HIGH, preferred_element_type=f32) + bg_ref[step]
        emb = jnp.maximum(new, 0.0).reshape(C, Np, S)

    # ---- evaluate global node -> lane-dense (1, 1, C) similarity row -----------
    sim_vec = emb[:, L, :]                                                    # (C, S)
    logit = lax.dot_general(w_eval_ref[...], sim_vec, (((1,), (1,)), ((), ())),
                            precision=HIGH, preferred_element_type=f32)       # (1, C)
    out_ref[...] = jax.nn.sigmoid(logit + b_eval_ref[...]).reshape(1, 1, C)


def encoder_similarity_pallas(img_emb, cap_emb, params, cap_block=None):
    n_img, R, D = img_emb.shape
    n_cap, L, _ = cap_emb.shape
    S = params["w_loc"].shape[1]

    # ---- caption-block / padding geometry (all static) ------------------------
    if cap_block is None:
        cap_block = n_cap if n_cap <= 128 else 128
    n_cap_pad = _round_up(n_cap, cap_block)
    num_cap_blocks = n_cap_pad // cap_block
    # lane-dense output + (8,128) tiling: either a single caption block or 128-multiples.
    assert cap_block == n_cap_pad or cap_block % 128 == 0
    Lp = _round_up(L, 8)                 # padded word count (zero rows)
    Np = _round_up(L + 1, 8)             # padded node count (words + global + pad nodes)

    # ---- global image / text representations (VisualSA / TextSA, eval mode) ----
    img_glo = sa_global(img_emb, jnp.mean(img_emb, axis=1), params["vsa"], use_bn=True)
    cap_glo = sa_global(cap_emb, jnp.mean(cap_emb, axis=1), params["tsa"], use_bn=False)
    cap_glo = jnp.pad(cap_glo, ((0, n_cap_pad - n_cap), (0, 0)))

    # ---- hoisted pairwise global-similarity path (one batched matmul) ----------
    diff_glo = (img_glo[:, None, :] - cap_glo[None, :, :]) ** 2               # (n_img, n_cap_pad, D)
    sim_glo = l2norm(diff_glo @ params["w_glo"] + params["b_glo"], axis=-1)   # (n_img, n_cap_pad, S)

    # ---- caption padding / flattening for the kernel ---------------------------
    cap_p = jnp.pad(cap_emb, ((0, n_cap_pad - n_cap), (0, Lp - L), (0, 0)))
    cap_flat = cap_p.reshape(n_cap_pad * Lp, D)
    w_eval_t = params["w_eval"].T                                             # (1, S)

    def full(shape):
        nd = len(shape)
        return pl.BlockSpec(shape, lambda i, j: (0,) * nd)

    in_specs = [
        pl.BlockSpec((1, R, D), lambda i, j: (i, 0, 0)),            # img_emb (per image)
        pl.BlockSpec((cap_block * Lp, D), lambda i, j: (j, 0)),     # caption block (flat words)
        pl.BlockSpec((1, cap_block, S), lambda i, j: (i, j, 0)),    # precomputed sim_glo block
        full((D, S)), full((1, S)),                                 # sim_tranloc_w
        full((SGR_STEPS, S, S)), full((SGR_STEPS, 1, S)),           # SGR query
        full((SGR_STEPS, S, S)), full((SGR_STEPS, 1, S)),           # SGR key
        full((SGR_STEPS, S, S)), full((SGR_STEPS, 1, S)),           # SGR graph
        full((1, S)), full((1, 1)),                                 # sim_eval_w (transposed), bias
    ]

    flops = 2 * n_img * n_cap_pad * (
        2 * Lp * D * R + Lp * D * S
        + SGR_STEPS * (3 * Np * S * S + 2 * Np * Np * S) + S)
    transc = n_img * n_cap_pad * (Lp * R + SGR_STEPS * Np * Np + 1)
    bytes_acc = 4 * (n_img * R * D + n_img * n_cap_pad * (Lp * D + S) + n_img * n_cap_pad)

    kernel = functools.partial(_sim_kernel, L=L, Lp=Lp, Np=Np, C=cap_block)

    out = pl.pallas_call(
        kernel,
        out_shape=jax.ShapeDtypeStruct((n_img, 1, n_cap_pad), jnp.float32),
        grid=(n_img, num_cap_blocks),
        in_specs=in_specs,
        out_specs=pl.BlockSpec((1, 1, cap_block), lambda i, j: (i, 0, j)),
        scratch_shapes=[pltpu.VMEM((cap_block, Np, S), jnp.float32)],
        compiler_params=pltpu.CompilerParams(
            dimension_semantics=("parallel", "parallel")),
        cost_estimate=pl.CostEstimate(flops=int(flops),
                                      transcendentals=int(transc),
                                      bytes_accessed=int(bytes_acc)),
    )(img_emb, cap_flat, sim_glo,
      params["w_loc"], params["b_loc"],
      params["sgr_wq"], params["sgr_bq"], params["sgr_wk"], params["sgr_bk"],
      params["sgr_wg"], params["sgr_bg"],
      w_eval_t, params["b_eval"])

    return out[:, 0, :n_cap]             # (n_img, n_cap), matches torch sim_all


# ----------------------------- reference (pure JAX) -----------------------------
def _scan_attention_ref(query, context, smooth, eps=EPS):
    attn = jnp.einsum('nsd,nqd->nsq', context, query)
    attn = jnp.where(attn >= 0, attn, 0.1 * attn)
    attn = attn / (jnp.sqrt(jnp.sum(attn * attn, axis=2, keepdims=True)) + eps)
    attn = jnp.swapaxes(attn, 1, 2)
    attn = jax.nn.softmax(attn * smooth, axis=2)
    wctx = jnp.einsum('nqs,nsd->nqd', attn, context)
    return l2norm(wctx, axis=-1)


def encoder_similarity_ref(img_emb, cap_emb, params):
    n_img = img_emb.shape[0]
    n_cap = cap_emb.shape[0]
    img_glo = sa_global(img_emb, jnp.mean(img_emb, 1), params["vsa"], use_bn=True)
    cols = []
    for i in range(n_cap):
        cap_i = cap_emb[i:i + 1]
        cap_glo_i = sa_global(cap_i, jnp.mean(cap_i, 1), params["tsa"], use_bn=False)
        cap_exp = jnp.repeat(cap_i, n_img, axis=0)
        ctx = _scan_attention_ref(cap_exp, img_emb, SMOOTH)
        sim_loc = l2norm((ctx - cap_exp) ** 2 @ params["w_loc"] + params["b_loc"], -1)
        sim_glo = l2norm((img_glo - cap_glo_i) ** 2 @ params["w_glo"] + params["b_glo"], -1)
        sim_emb = jnp.concatenate([sim_glo[:, None, :], sim_loc], axis=1)
        for s in range(SGR_STEPS):
            q = sim_emb @ params["sgr_wq"][s] + params["sgr_bq"][s]
            k = sim_emb @ params["sgr_wk"][s] + params["sgr_bk"][s]
            edge = jax.nn.softmax(jnp.einsum('nlt,nmt->nlm', q, k), axis=-1)
            sgr = jnp.einsum('nlm,nms->nls', edge, sim_emb)
            sim_emb = jax.nn.relu(sgr @ params["sgr_wg"][s] + params["sgr_bg"][s])
        sim_vec = sim_emb[:, 0, :]
        cols.append(jax.nn.sigmoid(sim_vec @ params["w_eval"] + params["b_eval"]))
    return jnp.concatenate(cols, axis=1)


# ------------------------------- parameters ------------------------------------
def init_params(key, D, S):
    keys = jax.random.split(key, 10)

    def lin(k, fi, fo):
        r = math.sqrt(6.0) / math.sqrt(fi + fo)
        W = jax.random.uniform(k, (fi, fo), jnp.float32, -r, r)
        b = jnp.zeros((fo,), jnp.float32)
        return W, b

    Wl, bl = lin(keys[0], D, D); Wg, bg = lin(keys[1], D, D); Wc, bc = lin(keys[2], D, 1)
    vsa = dict(Wl=Wl, bl=bl, Wg=Wg, bg=bg, Wc=Wc, bc=bc)
    Wl2, bl2 = lin(keys[3], D, D); Wg2, bg2 = lin(keys[4], D, D); Wc2, bc2 = lin(keys[5], D, 1)
    tsa = dict(Wl=Wl2, bl=bl2, Wg=Wg2, bg=bg2, Wc=Wc2, bc=bc2)

    w_loc, b_loc = lin(keys[6], D, S)
    w_glo, b_glo = lin(keys[7], D, S)
    w_eval, b_eval = lin(keys[8], S, 1)

    kk = jax.random.split(keys[9], SGR_STEPS * 3)
    wqs, bqs, wks, bks, wgs, bgs = [], [], [], [], [], []
    for s in range(SGR_STEPS):
        wq_, bq_ = lin(kk[3 * s + 0], S, S)
        wk_, bk_ = lin(kk[3 * s + 1], S, S)
        wg_, bg_ = lin(kk[3 * s + 2], S, S)
        wqs.append(wq_); bqs.append(bq_)
        wks.append(wk_); bks.append(bk_)
        wgs.append(wg_); bgs.append(bg_)

    return dict(
        vsa=vsa, tsa=tsa,
        w_loc=w_loc, b_loc=b_loc.reshape(1, S),
        w_glo=w_glo, b_glo=b_glo.reshape(1, S),
        w_eval=w_eval, b_eval=b_eval.reshape(1, 1),
        sgr_wq=jnp.stack(wqs), sgr_bq=jnp.stack(bqs)[:, None, :],
        sgr_wk=jnp.stack(wks), sgr_bk=jnp.stack(bks)[:, None, :],
        sgr_wg=jnp.stack(wgs), sgr_bg=jnp.stack(bgs)[:, None, :],
    )


# --------------------------------- main -----------------------------------------
if __name__ == "__main__":
    key = jax.random.PRNGKey(0)
    n_img, n_cap, R, L, D, S = 4, 3, 16, 6, 64, 64    # small synthetic shapes
    k1, k2, k3 = jax.random.split(key, 3)
    img_emb = jax.random.normal(k1, (n_img, R, D), jnp.float32)
    cap_emb = jax.random.normal(k2, (n_cap, L, D), jnp.float32)
    params = init_params(k3, D, S)

    with jax.default_matmul_precision("highest"):
        sim = encoder_similarity_pallas(img_emb, cap_emb, params)
        sim = jax.block_until_ready(sim)
        ref = encoder_similarity_ref(img_emb, cap_emb, params)
        ref = jax.block_until_ready(ref)

    assert sim.shape == (n_img, n_cap)
    np.testing.assert_allclose(np.asarray(sim), np.asarray(ref), rtol=1e-3, atol=1e-4)
    print("KERNEL_OK")
</pallas_src>

<mosaic_0001>
module attributes {stable_mosaic.version = 11 : i64} {
  func.func @_sim_kernel(%arg0: i32, %arg1: i32, %arg2: memref<1x16x64xf32, #tpu.memory_space<vmem>>, %arg3: memref<24x64xf32, #tpu.memory_space<vmem>>, %arg4: memref<1x3x64xf32, #tpu.memory_space<vmem>>, %arg5: memref<64x64xf32, #tpu.memory_space<vmem>>, %arg6: memref<1x64xf32, #tpu.memory_space<vmem>>, %arg7: memref<3x64x64xf32, #tpu.memory_space<vmem>>, %arg8: memref<3x1x64xf32, #tpu.memory_space<vmem>>, %arg9: memref<3x64x64xf32, #tpu.memory_space<vmem>>, %arg10: memref<3x1x64xf32, #tpu.memory_space<vmem>>, %arg11: memref<3x64x64xf32, #tpu.memory_space<vmem>>, %arg12: memref<3x1x64xf32, #tpu.memory_space<vmem>>, %arg13: memref<1x64xf32, #tpu.memory_space<vmem>>, %arg14: memref<1x1xf32, #tpu.memory_space<vmem>>, %arg15: memref<1x1x3xf32, #tpu.memory_space<vmem>>, %arg16: memref<3x8x64xf32, #tpu.memory_space<vmem>>) attributes {dimension_semantics = [#tpu.dimension_semantics<parallel>, #tpu.dimension_semantics<parallel>], iteration_bounds = array<i64: 4, 1>, scalar_prefetch = 0 : i64, scratch_operands = 1 : i64, tpu.core_type = #tpu.core_type<tc>, window_params = [{transform_indices = @transform_0, window_bounds = array<i64: 1, 16, 64>}, {transform_indices = @transform_1, window_bounds = array<i64: 24, 64>}, {transform_indices = @transform_2, window_bounds = array<i64: 1, 3, 64>}, {pipeline_mode = #tpu.pipeline_mode<synchronous>, transform_indices = @transform_3, window_bounds = array<i64: 64, 64>}, {pipeline_mode = #tpu.pipeline_mode<synchronous>, transform_indices = @transform_4, window_bounds = array<i64: 1, 64>}, {pipeline_mode = #tpu.pipeline_mode<synchronous>, transform_indices = @transform_5, window_bounds = array<i64: 3, 64, 64>}, {pipeline_mode = #tpu.pipeline_mode<synchronous>, transform_indices = @transform_6, window_bounds = array<i64: 3, 1, 64>}, {pipeline_mode = #tpu.pipeline_mode<synchronous>, transform_indices = @transform_7, window_bounds = array<i64: 3, 64, 64>}, {pipeline_mode = #tpu.pipeline_mode<synchronous>, transform_indices = @transform_8, window_bounds = array<i64: 3, 1, 64>}, {pipeline_mode = #tpu.pipeline_mode<synchronous>, transform_indices = @transform_9, window_bounds = array<i64: 3, 64, 64>}, {pipeline_mode = #tpu.pipeline_mode<synchronous>, transform_indices = @transform_10, window_bounds = array<i64: 3, 1, 64>}, {pipeline_mode = #tpu.pipeline_mode<synchronous>, transform_indices = @transform_11, window_bounds = array<i64: 1, 64>}, {pipeline_mode = #tpu.pipeline_mode<synchronous>, transform_indices = @transform_12, window_bounds = array<i64: 1, 1>}, {transform_indices = @transform_13, window_bounds = array<i64: 1, 1, 3>}]} {
    %c0 = arith.constant 0 : index
    %c0_0 = arith.constant 0 : index
    %c0_1 = arith.constant 0 : index
    %0 = vector.load %arg2[%c0, %c0_0, %c0_1] : memref<1x16x64xf32, #tpu.memory_space<vmem>>, vector<1x16x64xf32>
    %1 = vector.shape_cast %0 : vector<1x16x64xf32> to vector<16x64xf32>
    %c0_2 = arith.constant 0 : index
    %c0_3 = arith.constant 0 : index
    %2 = vector.load %arg3[%c0_2, %c0_3] : memref<24x64xf32, #tpu.memory_space<vmem>>, vector<24x64xf32>
    %cst = arith.constant dense<0.000000e+00> : vector<24x16xf32>
    %3 = tpu.matmul %2, %1, %cst {dimension_numbers = #tpu.dot_dimension_numbers<[1], [1], [0], [0], [0, 0, 1, 0], [], []>, precision = #tpu.contract_precision<fp32>} : vector<24x64xf32>, vector<16x64xf32>, vector<24x16xf32> -> vector<24x16xf32>
    %cst_4 = arith.constant 0.000000e+00 : f32
    %4 = vector.broadcast %cst_4 : f32 to vector<24x16xf32>
    %5 = arith.cmpf oge, %3, %4 : vector<24x16xf32>
    %cst_5 = arith.constant 1.000000e-01 : f32
    %6 = vector.broadcast %cst_5 : f32 to vector<24x16xf32>
    %7 = arith.mulf %6, %3 : vector<24x16xf32>
    %8 = arith.select %5, %3, %7 : vector<24x16xi1>, vector<24x16xf32>
    %9 = vector.shape_cast %8 : vector<24x16xf32> to vector<3x8x16xf32>
    %10 = arith.mulf %9, %9 : vector<3x8x16xf32>
    %cst_6 = arith.constant dense<0.000000e+00> : vector<3x16xf32>
    %11 = vector.multi_reduction <add>, %10, %cst_6 [1] : vector<3x8x16xf32> to vector<3x16xf32>
    %12 = vector.shape_cast %11 : vector<3x16xf32> to vector<3x1x16xf32>
    %13 = math.sqrt %12 : vector<3x1x16xf32>
    %cst_7 = arith.constant 9.99999993E-9 : f32
    %14 = vector.broadcast %cst_7 : f32 to vector<3x1x16xf32>
    %15 = arith.addf %13, %14 : vector<3x1x16xf32>
    %16 = vector.broadcast %15 : vector<3x1x16xf32> to vector<3x8x16xf32>
    %17 = arith.divf %9, %16 : vector<3x8x16xf32>
    %cst_8 = arith.constant 9.000000e+00 : f32
    %18 = vector.broadcast %cst_8 : f32 to vector<3x8x16xf32>
    %19 = arith.mulf %17, %18 : vector<3x8x16xf32>
    %cst_9 = arith.constant dense<0xFF800000> : vector<3x8xf32>
    %20 = vector.multi_reduction <maximumf>, %19, %cst_9 [2] : vector<3x8x16xf32> to vector<3x8xf32>
    %cst_10 = arith.constant 0xFF800000 : f32
    %21 = vector.broadcast %cst_10 : f32 to vector<3x8xf32>
    %22 = arith.maximumf %21, %20 : vector<3x8xf32>
    %23 = vector.shape_cast %22 : vector<3x8xf32> to vector<3x8x1xf32>
    %24 = vector.broadcast %23 : vector<3x8x1xf32> to vector<3x8x16xf32>
    %25 = arith.subf %19, %24 : vector<3x8x16xf32>
    %26 = math.exp %25 : vector<3x8x16xf32>
    %cst_11 = arith.constant dense<0.000000e+00> : vector<3x8xf32>
    %27 = vector.multi_reduction <add>, %26, %cst_11 [2] : vector<3x8x16xf32> to vector<3x8xf32>
    %28 = vector.shape_cast %27 : vector<3x8xf32> to vector<3x8x1xf32>
    %29 = vector.broadcast %28 : vector<3x8x1xf32> to vector<3x8x16xf32>
    %30 = arith.divf %26, %29 : vector<3x8x16xf32>
    %31 = vector.shape_cast %30 : vector<3x8x16xf32> to vector<24x16xf32>
    %cst_12 = arith.constant dense<0.000000e+00> : vector<24x64xf32>
    %32 = tpu.matmul %31, %1, %cst_12 {dimension_numbers = #tpu.dot_dimension_numbers<[1], [0], [0], [1], [0, 0, 1, 1], [], []>, precision = #tpu.contract_precision<fp32>} : vector<24x16xf32>, vector<16x64xf32>, vector<24x64xf32> -> vector<24x64xf32>
    %33 = arith.mulf %32, %32 : vector<24x64xf32>
    %cst_13 = arith.constant dense<0.000000e+00> : vector<24xf32>
    %34 = vector.multi_reduction <add>, %33, %cst_13 [1] : vector<24x64xf32> to vector<24xf32>
    %35 = vector.shape_cast %34 : vector<24xf32> to vector<24x1xf32>
    %36 = math.sqrt %35 : vector<24x1xf32>
    %cst_14 = arith.constant 9.99999993E-9 : f32
    %37 = vector.broadcast %cst_14 : f32 to vector<24x1xf32>
    %38 = arith.addf %36, %37 : vector<24x1xf32>
    %39 = vector.broadcast %38 : vector<24x1xf32> to vector<24x64xf32>
    %40 = arith.divf %32, %39 : vector<24x64xf32>
    %41 = arith.subf %40, %2 : vector<24x64xf32>
    %42 = arith.mulf %41, %41 : vector<24x64xf32>
    %c0_15 = arith.constant 0 : index
    %c0_16 = arith.constant 0 : index
    %43 = vector.load %arg5[%c0_15, %c0_16] : memref<64x64xf32, #tpu.memory_space<vmem>>, vector<64x64xf32>
    %cst_17 = arith.constant dense<0.000000e+00> : vector<24x64xf32>
    %44 = tpu.matmul %42, %43, %cst_17 {dimension_numbers = #tpu.dot_dimension_numbers<[1], [0], [0], [1], [0, 0, 1, 1], [], []>, precision = #tpu.contract_precision<fp32>} : vector<24x64xf32>, vector<64x64xf32>, vector<24x64xf32> -> vector<24x64xf32>
    %c0_18 = arith.constant 0 : index
    %c0_19 = arith.constant 0 : index
    %45 = vector.load %arg6[%c0_18, %c0_19] : memref<1x64xf32, #tpu.memory_space<vmem>>, vector<1x64xf32>
    %46 = vector.broadcast %45 : vector<1x64xf32> to vector<24x64xf32>
    %47 = arith.addf %44, %46 : vector<24x64xf32>
    %48 = arith.mulf %47, %47 : vector<24x64xf32>
    %cst_20 = arith.constant dense<0.000000e+00> : vector<24xf32>
    %49 = vector.multi_reduction <add>, %48, %cst_20 [1] : vector<24x64xf32> to vector<24xf32>
    %50 = vector.shape_cast %49 : vector<24xf32> to vector<24x1xf32>
    %51 = math.sqrt %50 : vector<24x1xf32>
    %cst_21 = arith.constant 9.99999993E-9 : f32
    %52 = vector.broadcast %cst_21 : f32 to vector<24x1xf32>
    %53 = arith.addf %51, %52 : vector<24x1xf32>
    %54 = vector.broadcast %53 : vector<24x1xf32> to vector<24x64xf32>
    %55 = arith.divf %47, %54 : vector<24x64xf32>
    %56 = vector.shape_cast %55 : vector<24x64xf32> to vector<3x8x64xf32>
    %c0_22 = arith.constant 0 : index
    %c0_23 = arith.constant 0 : index
    %c0_24 = arith.constant 0 : index
    %57 = vector.load %arg16[%c0_22, %c0_23, %c0_24] : memref<3x8x64xf32, #tpu.memory_space<vmem>>, vector<3x8x64xf32>
    tpu.vector_store %arg16[%c0_22, %c0_23, %c0_24], %56 {strides = array<i32>} : memref<3x8x64xf32, #tpu.memory_space<vmem>>, vector<3x8x64xf32>,
    %c0_25 = arith.constant 0 : index
    %c0_26 = arith.constant 0 : index
    %c0_27 = arith.constant 0 : index
    %58 = vector.load %arg4[%c0_25, %c0_26, %c0_27] : memref<1x3x64xf32, #tpu.memory_space<vmem>>, vector<1x3x64xf32>
    %59 = vector.shape_cast %58 : vector<1x3x64xf32> to vector<3x64xf32>
    %60 = vector.shape_cast %59 : vector<3x64xf32> to vector<3x1x64xf32>
    %c0_28 = arith.constant 0 : index
    %c6 = arith.constant 6 : index
    %c0_29 = arith.constant 0 : index
    %61 = vector.load %arg16[%c0_28, %c6, %c0_29] : memref<3x8x64xf32, #tpu.memory_space<vmem>>, vector<3x1x64xf32>
    tpu.vector_store %arg16[%c0_28, %c6, %c0_29], %60 {strides = array<i32>} : memref<3x8x64xf32, #tpu.memory_space<vmem>>, vector<3x1x64xf32>,
    %c0_30 = arith.constant 0 : index
    %c0_31 = arith.constant 0 : index
    %c0_32 = arith.constant 0 : index
    %62 = vector.load %arg16[%c0_30, %c0_31, %c0_32] : memref<3x8x64xf32, #tpu.memory_space<vmem>>, vector<3x8x64xf32>
    %63 = tpu.iota {dimensions = array<i32: 2>} : vector<1x1x8xi32>
    %c6_i32 = arith.constant 6 : i32
    %64 = vector.broadcast %c6_i32 : i32 to vector<1x1x8xi32>
    %65 = arith.cmpi sle, %63, %64 : vector<1x1x8xi32>
    %66 = vector.shape_cast %62 : vector<3x8x64xf32> to vector<24x64xf32>
    %c0_33 = arith.constant 0 : index
    %c0_34 = arith.constant 0 : index
    %c0_35 = arith.constant 0 : index
    %67 = vector.load %arg7[%c0_33, %c0_34, %c0_35] : memref<3x64x64xf32, #tpu.memory_space<vmem>>, vector<1x64x64xf32>
    %68 = vector.shape_cast %67 : vector<1x64x64xf32> to vector<64x64xf32>
    %cst_36 = arith.constant dense<0.000000e+00> : vector<24x64xf32>
    %69 = tpu.matmul %66, %68, %cst_36 {dimension_numbers = #tpu.dot_dimension_numbers<[1], [0], [0], [1], [0, 0, 1, 1], [], []>, precision = #tpu.contract_precision<fp32>} : vector<24x64xf32>, vector<64x64xf32>, vector<24x64xf32> -> vector<24x64xf32>
    %c0_37 = arith.constant 0 : index
    %c0_38 = arith.constant 0 : index
    %c0_39 = arith.constant 0 : index
    %70 = vector.load %arg8[%c0_37, %c0_38, %c0_39] : memref<3x1x64xf32, #tpu.memory_space<vmem>>, vector<1x1x64xf32>
    %71 = vector.shape_cast %70 : vector<1x1x64xf32> to vector<1x64xf32>
    %72 = vector.broadcast %71 : vector<1x64xf32> to vector<24x64xf32>
    %73 = arith.addf %69, %72 : vector<24x64xf32>
    %c0_40 = arith.constant 0 : index
    %c0_41 = arith.constant 0 : index
    %c0_42 = arith.constant 0 : index
    %74 = vector.load %arg9[%c0_40, %c0_41, %c0_42] : memref<3x64x64xf32, #tpu.memory_space<vmem>>, vector<1x64x64xf32>
    %75 = vector.shape_cast %74 : vector<1x64x64xf32> to vector<64x64xf32>
    %cst_43 = arith.constant dense<0.000000e+00> : vector<24x64xf32>
    %76 = tpu.matmul %66, %75, %cst_43 {dimension_numbers = #tpu.dot_dimension_numbers<[1], [0], [0], [1], [0, 0, 1, 1], [], []>, precision = #tpu.contract_precision<fp32>} : vector<24x64xf32>, vector<64x64xf32>, vector<24x64xf32> -> vector<24x64xf32>
    %c0_44 = arith.constant 0 : index
    %c0_45 = arith.constant 0 : index
    %c0_46 = arith.constant 0 : index
    %77 = vector.load %arg10[%c0_44, %c0_45, %c0_46] : memref<3x1x64xf32, #tpu.memory_space<vmem>>, vector<1x1x64xf32>
    %78 = vector.shape_cast %77 : vector<1x1x64xf32> to vector<1x64xf32>
    %79 = vector.broadcast %78 : vector<1x64xf32> to vector<24x64xf32>
    %80 = arith.addf %76, %79 : vector<24x64xf32>
    %81 = vector.shape_cast %73 : vector<24x64xf32> to vector<3x8x64xf32>
    %82 = vector.shape_cast %80 : vector<24x64xf32> to vector<3x8x64xf32>
    "tpu.trace_start"() <{level = 10 : i32, message = "cns,cms->cnm"}> : () -> ()
    %cst_47 = arith.constant dense<0.000000e+00> : vector<3x8x8xf32>
    %83 = tpu.matmul %81, %82, %cst_47 {dimension_numbers = #tpu.dot_dimension_numbers<[2], [2], [1], [1], [0, 0, 0, 1, 1, 1], [0], [0]>, precision = #tpu.contract_precision<fp32>} : vector<3x8x64xf32>, vector<3x8x64xf32>, vector<3x8x8xf32> -> vector<3x8x8xf32>
    %cst_48 = arith.constant -1.000000e+30 : f32
    "tpu.trace_stop"() : () -> ()
    %84 = vector.shape_cast %65 : vector<1x1x8xi1> to vector<1x1x8xi1>
    %85 = vector.broadcast %84 : vector<1x1x8xi1> to vector<3x8x8xi1>
    %86 = vector.broadcast %cst_48 : f32 to vector<3x8x8xf32>
    %87 = arith.select %85, %83, %86 : vector<3x8x8xi1>, vector<3x8x8xf32>
    %cst_49 = arith.constant dense<0xFF800000> : vector<3x8xf32>
    %88 = vector.multi_reduction <maximumf>, %87, %cst_49 [2] : vector<3x8x8xf32> to vector<3x8xf32>
    %cst_50 = arith.constant 0xFF800000 : f32
    %89 = vector.broadcast %cst_50 : f32 to vector<3x8xf32>
    %90 = arith.maximumf %89, %88 : vector<3x8xf32>
    %91 = vector.shape_cast %90 : vector<3x8xf32> to vector<3x8x1xf32>
    %92 = vector.broadcast %91 : vector<3x8x1xf32> to vector<3x8x8xf32>
    %93 = arith.subf %87, %92 : vector<3x8x8xf32>
    %94 = math.exp %93 : vector<3x8x8xf32>
    %cst_51 = arith.constant dense<0.000000e+00> : vector<3x8xf32>
    %95 = vector.multi_reduction <add>, %94, %cst_51 [2] : vector<3x8x8xf32> to vector<3x8xf32>
    %96 = vector.shape_cast %95 : vector<3x8xf32> to vector<3x8x1xf32>
    %97 = vector.broadcast %96 : vector<3x8x1xf32> to vector<3x8x8xf32>
    %98 = arith.divf %94, %97 : vector<3x8x8xf32>
    "tpu.trace_start"() <{level = 10 : i32, message = "cnm,cms->cns"}> : () -> ()
    %cst_52 = arith.constant dense<0.000000e+00> : vector<3x8x64xf32>
    %99 = tpu.matmul %98, %62, %cst_52 {dimension_numbers = #tpu.dot_dimension_numbers<[2], [1], [1], [2], [0, 0, 0, 1, 1, 2], [0], [0]>, precision = #tpu.contract_precision<fp32>} : vector<3x8x8xf32>, vector<3x8x64xf32>, vector<3x8x64xf32> -> vector<3x8x64xf32>
    "tpu.trace_stop"() : () -> ()
    %100 = vector.shape_cast %99 : vector<3x8x64xf32> to vector<24x64xf32>
    %c0_53 = arith.constant 0 : index
    %c0_54 = arith.constant 0 : index
    %c0_55 = arith.constant 0 : index
    %101 = vector.load %arg11[%c0_53, %c0_54, %c0_55] : memref<3x64x64xf32, #tpu.memory_space<vmem>>, vector<1x64x64xf32>
    %102 = vector.shape_cast %101 : vector<1x64x64xf32> to vector<64x64xf32>
    %cst_56 = arith.constant dense<0.000000e+00> : vector<24x64xf32>
    %103 = tpu.matmul %100, %102, %cst_56 {dimension_numbers = #tpu.dot_dimension_numbers<[1], [0], [0], [1], [0, 0, 1, 1], [], []>, precision = #tpu.contract_precision<fp32>} : vector<24x64xf32>, vector<64x64xf32>, vector<24x64xf32> -> vector<24x64xf32>
    %c0_57 = arith.constant 0 : index
    %c0_58 = arith.constant 0 : index
    %c0_59 = arith.constant 0 : index
    %104 = vector.load %arg12[%c0_57, %c0_58, %c0_59] : memref<3x1x64xf32, #tpu.memory_space<vmem>>, vector<1x1x64xf32>
    %105 = vector.shape_cast %104 : vector<1x1x64xf32> to vector<1x64xf32>
    %106 = vector.broadcast %105 : vector<1x64xf32> to vector<24x64xf32>
    %107 = arith.addf %103, %106 : vector<24x64xf32>
    %cst_60 = arith.constant 0.000000e+00 : f32
    %108 = vector.broadcast %cst_60 : f32 to vector<24x64xf32>
    %109 = arith.maximumf %107, %108 : vector<24x64xf32>
    %110 = vector.shape_cast %109 : vector<24x64xf32> to vector<3x8x64xf32>
    %111 = vector.shape_cast %110 : vector<3x8x64xf32> to vector<24x64xf32>
    %c1 = arith.constant 1 : index
    %c0_61 = arith.constant 0 : index
    %c0_62 = arith.constant 0 : index
    %112 = vector.load %arg7[%c1, %c0_61, %c0_62] : memref<3x64x64xf32, #tpu.memory_space<vmem>>, vector<1x64x64xf32>
    %113 = vector.shape_cast %112 : vector<1x64x64xf32> to vector<64x64xf32>
    %cst_63 = arith.constant dense<0.000000e+00> : vector<24x64xf32>
    %114 = tpu.matmul %111, %113, %cst_63 {dimension_numbers = #tpu.dot_dimension_numbers<[1], [0], [0], [1], [0, 0, 1, 1], [], []>, precision = #tpu.contract_precision<fp32>} : vector<24x64xf32>, vector<64x64xf32>, vector<24x64xf32> -> vector<24x64xf32>
    %c1_64 = arith.constant 1 : index
    %c0_65 = arith.constant 0 : index
    %c0_66 = arith.constant 0 : index
    %115 = vector.load %arg8[%c1_64, %c0_65, %c0_66] : memref<3x1x64xf32, #tpu.memory_space<vmem>>, vector<1x1x64xf32>
    %116 = vector.shape_cast %115 : vector<1x1x64xf32> to vector<1x64xf32>
    %117 = vector.broadcast %116 : vector<1x64xf32> to vector<24x64xf32>
    %118 = arith.addf %114, %117 : vector<24x64xf32>
    %c1_67 = arith.constant 1 : index
    %c0_68 = arith.constant 0 : index
    %c0_69 = arith.constant 0 : index
    %119 = vector.load %arg9[%c1_67, %c0_68, %c0_69] : memref<3x64x64xf32, #tpu.memory_space<vmem>>, vector<1x64x64xf32>
    %120 = vector.shape_cast %119 : vector<1x64x64xf32> to vector<64x64xf32>
    %cst_70 = arith.constant dense<0.000000e+00> : vector<24x64xf32>
    %121 = tpu.matmul %111, %120, %cst_70 {dimension_numbers = #tpu.dot_dimension_numbers<[1], [0], [0], [1], [0, 0, 1, 1], [], []>, precision = #tpu.contract_precision<fp32>} : vector<24x64xf32>, vector<64x64xf32>, vector<24x64xf32> -> vector<24x64xf32>
    %c1_71 = arith.constant 1 : index
    %c0_72 = arith.constant 0 : index
    %c0_73 = arith.constant 0 : index
    %122 = vector.load %arg10[%c1_71, %c0_72, %c0_73] : memref<3x1x64xf32, #tpu.memory_space<vmem>>, vector<1x1x64xf32>
    %123 = vector.shape_cast %122 : vector<1x1x64xf32> to vector<1x64xf32>
    %124 = vector.broadcast %123 : vector<1x64xf32> to vector<24x64xf32>
    %125 = arith.addf %121, %124 : vector<24x64xf32>
    %126 = vector.shape_cast %118 : vector<24x64xf32> to vector<3x8x64xf32>
    %127 = vector.shape_cast %125 : vector<24x64xf32> to vector<3x8x64xf32>
    "tpu.trace_start"() <{level = 10 : i32, message = "cns,cms->cnm"}> : () -> ()
    %cst_74 = arith.constant dense<0.000000e+00> : vector<3x8x8xf32>
    %128 = tpu.matmul %126, %127, %cst_74 {dimension_numbers = #tpu.dot_dimension_numbers<[2], [2], [1], [1], [0, 0, 0, 1, 1, 1], [0], [0]>, precision = #tpu.contract_precision<fp32>} : vector<3x8x64xf32>, vector<3x8x64xf32>, vector<3x8x8xf32> -> vector<3x8x8xf32>
    %cst_75 = arith.constant -1.000000e+30 : f32
    "tpu.trace_stop"() : () -> ()
    %129 = vector.shape_cast %65 : vector<1x1x8xi1> to vector<1x1x8xi1>
    %130 = vector.broadcast %129 : vector<1x1x8xi1> to vector<3x8x8xi1>
    %131 = vector.broadcast %cst_75 : f32 to vector<3x8x8xf32>
    %132 = arith.select %130, %128, %131 : vector<3x8x8xi1>, vector<3x8x8xf32>
    %cst_76 = arith.constant dense<0xFF800000> : vector<3x8xf32>
    %133 = vector.multi_reduction <maximumf>, %132, %cst_76 [2] : vector<3x8x8xf32> to vector<3x8xf32>
    %cst_77 = arith.constant 0xFF800000 : f32
    %134 = vector.broadcast %cst_77 : f32 to vector<3x8xf32>
    %135 = arith.maximumf %134, %133 : vector<3x8xf32>
    %136 = vector.shape_cast %135 : vector<3x8xf32> to vector<3x8x1xf32>
    %137 = vector.broadcast %136 : vector<3x8x1xf32> to vector<3x8x8xf32>
    %138 = arith.subf %132, %137 : vector<3x8x8xf32>
    %139 = math.exp %138 : vector<3x8x8xf32>
    %cst_78 = arith.constant dense<0.000000e+00> : vector<3x8xf32>
    %140 = vector.multi_reduction <add>, %139, %cst_78 [2] : vector<3x8x8xf32> to vector<3x8xf32>
    %141 = vector.shape_cast %140 : vector<3x8xf32> to vector<3x8x1xf32>
    %142 = vector.broadcast %141 : vector<3x8x1xf32> to vector<3x8x8xf32>
    %143 = arith.divf %139, %142 : vector<3x8x8xf32>
    "tpu.trace_start"() <{level = 10 : i32, message = "cnm,cms->cns"}> : () -> ()
    %cst_79 = arith.constant dense<0.000000e+00> : vector<3x8x64xf32>
    %144 = tpu.matmul %143, %110, %cst_79 {dimension_numbers = #tpu.dot_dimension_numbers<[2], [1], [1], [2], [0, 0, 0, 1, 1, 2], [0], [0]>, precision = #tpu.contract_precision<fp32>} : vector<3x8x8xf32>, vector<3x8x64xf32>, vector<3x8x64xf32> -> vector<3x8x64xf32>
    "tpu.trace_stop"() : () -> ()
    %145 = vector.shape_cast %144 : vector<3x8x64xf32> to vector<24x64xf32>
    %c1_80 = arith.constant 1 : index
    %c0_81 = arith.constant 0 : index
    %c0_82 = arith.constant 0 : index
    %146 = vector.load %arg11[%c1_80, %c0_81, %c0_82] : memref<3x64x64xf32, #tpu.memory_space<vmem>>, vector<1x64x64xf32>
    %147 = vector.shape_cast %146 : vector<1x64x64xf32> to vector<64x64xf32>
    %cst_83 = arith.constant dense<0.000000e+00> : vector<24x64xf32>
    %148 = tpu.matmul %145, %147, %cst_83 {dimension_numbers = #tpu.dot_dimension_numbers<[1], [0], [0], [1], [0, 0, 1, 1], [], []>, precision = #tpu.contract_precision<fp32>} : vector<24x64xf32>, vector<64x64xf32>, vector<24x64xf32> -> vector<24x64xf32>
    %c1_84 = arith.constant 1 : index
    %c0_85 = arith.constant 0 : index
    %c0_86 = arith.constant 0 : index
    %149 = vector.load %arg12[%c1_84, %c0_85, %c0_86] : memref<3x1x64xf32, #tpu.memory_space<vmem>>, vector<1x1x64xf32>
    %150 = vector.shape_cast %149 : vector<1x1x64xf32> to vector<1x64xf32>
    %151 = vector.broadcast %150 : vector<1x64xf32> to vector<24x64xf32>
    %152 = arith.addf %148, %151 : vector<24x64xf32>
    %cst_87 = arith.constant 0.000000e+00 : f32
    %153 = vector.broadcast %cst_87 : f32 to vector<24x64xf32>
    %154 = arith.maximumf %152, %153 : vector<24x64xf32>
    %155 = vector.shape_cast %154 : vector<24x64xf32> to vector<3x8x64xf32>
    %156 = vector.shape_cast %155 : vector<3x8x64xf32> to vector<24x64xf32>
    %c2 = arith.constant 2 : index
    %c0_88 = arith.constant 0 : index
    %c0_89 = arith.constant 0 : index
    %157 = vector.load %arg7[%c2, %c0_88, %c0_89] : memref<3x64x64xf32, #tpu.memory_space<vmem>>, vector<1x64x64xf32>
    %158 = vector.shape_cast %157 : vector<1x64x64xf32> to vector<64x64xf32>
    %cst_90 = arith.constant dense<0.000000e+00> : vector<24x64xf32>
    %159 = tpu.matmul %156, %158, %cst_90 {dimension_numbers = #tpu.dot_dimension_numbers<[1], [0], [0], [1], [0, 0, 1, 1], [], []>, precision = #tpu.contract_precision<fp32>} : vector<24x64xf32>, vector<64x64xf32>, vector<24x64xf32> -> vector<24x64xf32>
    %c2_91 = arith.constant 2 : index
    %c0_92 = arith.constant 0 : index
    %c0_93 = arith.constant 0 : index
    %160 = vector.load %arg8[%c2_91, %c0_92, %c0_93] : memref<3x1x64xf32, #tpu.memory_space<vmem>>, vector<1x1x64xf32>
    %161 = vector.shape_cast %160 : vector<1x1x64xf32> to vector<1x64xf32>
    %162 = vector.broadcast %161 : vector<1x64xf32> to vector<24x64xf32>
    %163 = arith.addf %159, %162 : vector<24x64xf32>
    %c2_94 = arith.constant 2 : index
    %c0_95 = arith.constant 0 : index
    %c0_96 = arith.constant 0 : index
    %164 = vector.load %arg9[%c2_94, %c0_95, %c0_96] : memref<3x64x64xf32, #tpu.memory_space<vmem>>, vector<1x64x64xf32>
    %165 = vector.shape_cast %164 : vector<1x64x64xf32> to vector<64x64xf32>
    %cst_97 = arith.constant dense<0.000000e+00> : vector<24x64xf32>
    %166 = tpu.matmul %156, %165, %cst_97 {dimension_numbers = #tpu.dot_dimension_numbers<[1], [0], [0], [1], [0, 0, 1, 1], [], []>, precision = #tpu.contract_precision<fp32>} : vector<24x64xf32>, vector<64x64xf32>, vector<24x64xf32> -> vector<24x64xf32>
    %c2_98 = arith.constant 2 : index
    %c0_99 = arith.constant 0 : index
    %c0_100 = arith.constant 0 : index
    %167 = vector.load %arg10[%c2_98, %c0_99, %c0_100] : memref<3x1x64xf32, #tpu.memory_space<vmem>>, vector<1x1x64xf32>
    %168 = vector.shape_cast %167 : vector<1x1x64xf32> to vector<1x64xf32>
    %169 = vector.broadcast %168 : vector<1x64xf32> to vector<24x64xf32>
    %170 = arith.addf %166, %169 : vector<24x64xf32>
    %171 = vector.shape_cast %163 : vector<24x64xf32> to vector<3x8x64xf32>
    %172 = vector.shape_cast %170 : vector<24x64xf32> to vector<3x8x64xf32>
    "tpu.trace_start"() <{level = 10 : i32, message = "cns,cms->cnm"}> : () -> ()
    %cst_101 = arith.constant dense<0.000000e+00> : vector<3x8x8xf32>
    %173 = tpu.matmul %171, %172, %cst_101 {dimension_numbers = #tpu.dot_dimension_numbers<[2], [2], [1], [1], [0, 0, 0, 1, 1, 1], [0], [0]>, precision = #tpu.contract_precision<fp32>} : vector<3x8x64xf32>, vector<3x8x64xf32>, vector<3x8x8xf32> -> vector<3x8x8xf32>
    %cst_102 = arith.constant -1.000000e+30 : f32
    "tpu.trace_stop"() : () -> ()
    %174 = vector.shape_cast %65 : vector<1x1x8xi1> to vector<1x1x8xi1>
    %175 = vector.broadcast %174 : vector<1x1x8xi1> to vector<3x8x8xi1>
    %176 = vector.broadcast %cst_102 : f32 to vector<3x8x8xf32>
    %177 = arith.select %175, %173, %176 : vector<3x8x8xi1>, vector<3x8x8xf32>
    %cst_103 = arith.constant dense<0xFF800000> : vector<3x8xf32>
    %178 = vector.multi_reduction <maximumf>, %177, %cst_103 [2] : vector<3x8x8xf32> to vector<3x8xf32>
    %cst_104 = arith.constant 0xFF800000 : f32
    %179 = vector.broadcast %cst_104 : f32 to vector<3x8xf32>
    %180 = arith.maximumf %179, %178 : vector<3x8xf32>
    %181 = vector.shape_cast %180 : vector<3x8xf32> to vector<3x8x1xf32>
    %182 = vector.broadcast %181 : vector<3x8x1xf32> to vector<3x8x8xf32>
    %183 = arith.subf %177, %182 : vector<3x8x8xf32>
    %184 = math.exp %183 : vector<3x8x8xf32>
    %cst_105 = arith.constant dense<0.000000e+00> : vector<3x8xf32>
    %185 = vector.multi_reduction <add>, %184, %cst_105 [2] : vector<3x8x8xf32> to vector<3x8xf32>
    %186 = vector.shape_cast %185 : vector<3x8xf32> to vector<3x8x1xf32>
    %187 = vector.broadcast %186 : vector<3x8x1xf32> to vector<3x8x8xf32>
    %188 = arith.divf %184, %187 : vector<3x8x8xf32>
    "tpu.trace_start"() <{level = 10 : i32, message = "cnm,cms->cns"}> : () -> ()
    %cst_106 = arith.constant dense<0.000000e+00> : vector<3x8x64xf32>
    %189 = tpu.matmul %188, %155, %cst_106 {dimension_numbers = #tpu.dot_dimension_numbers<[2], [1], [1], [2], [0, 0, 0, 1, 1, 2], [0], [0]>, precision = #tpu.contract_precision<fp32>} : vector<3x8x8xf32>, vector<3x8x64xf32>, vector<3x8x64xf32> -> vector<3x8x64xf32>
    "tpu.trace_stop"() : () -> ()
    %190 = vector.shape_cast %189 : vector<3x8x64xf32> to vector<24x64xf32>
    %c2_107 = arith.constant 2 : index
    %c0_108 = arith.constant 0 : index
    %c0_109 = arith.constant 0 : index
    %191 = vector.load %arg11[%c2_107, %c0_108, %c0_109] : memref<3x64x64xf32, #tpu.memory_space<vmem>>, vector<1x64x64xf32>
    %192 = vector.shape_cast %191 : vector<1x64x64xf32> to vector<64x64xf32>
    %cst_110 = arith.constant dense<0.000000e+00> : vector<24x64xf32>
    %193 = tpu.matmul %190, %192, %cst_110 {dimension_numbers = #tpu.dot_dimension_numbers<[1], [0], [0], [1], [0, 0, 1, 1], [], []>, precision = #tpu.contract_precision<fp32>} : vector<24x64xf32>, vector<64x64xf32>, vector<24x64xf32> -> vector<24x64xf32>
    %c2_111 = arith.constant 2 : index
    %c0_112 = arith.constant 0 : index
    %c0_113 = arith.constant 0 : index
    %194 = vector.load %arg12[%c2_111, %c0_112, %c0_113] : memref<3x1x64xf32, #tpu.memory_space<vmem>>, vector<1x1x64xf32>
    %195 = vector.shape_cast %194 : vector<1x1x64xf32> to vector<1x64xf32>
    %196 = vector.broadcast %195 : vector<1x64xf32> to vector<24x64xf32>
    %197 = arith.addf %193, %196 : vector<24x64xf32>
    %cst_114 = arith.constant 0.000000e+00 : f32
    %198 = vector.broadcast %cst_114 : f32 to vector<24x64xf32>
    %199 = arith.maximumf %197, %198 : vector<24x64xf32>
    %200 = vector.shape_cast %199 : vector<24x64xf32> to vector<3x8x64xf32>
    %201 = vector.extract_strided_slice %200 {offsets = [0, 6, 0], sizes = [3, 1, 64], strides = [1, 1, 1]} : vector<3x8x64xf32> to vector<3x1x64xf32>
    %202 = vector.shape_cast %201 : vector<3x1x64xf32> to vector<3x64xf32>
    %c0_115 = arith.constant 0 : index
    %c0_116 = arith.constant 0 : index
    %203 = vector.load %arg13[%c0_115, %c0_116] : memref<1x64xf32, #tpu.memory_space<vmem>>, vector<1x64xf32>
    %cst_117 = arith.constant dense<0.000000e+00> : vector<1x3xf32>
    %204 = tpu.matmul %203, %202, %cst_117 {dimension_numbers = #tpu.dot_dimension_numbers<[1], [1], [0], [0], [0, 0, 1, 0], [], []>, precision = #tpu.contract_precision<fp32>} : vector<1x64xf32>, vector<3x64xf32>, vector<1x3xf32> -> vector<1x3xf32>
    %c0_118 = arith.constant 0 : index
    %c0_119 = arith.constant 0 : index
    %205 = vector.load %arg14[%c0_118, %c0_119] : memref<1x1xf32, #tpu.memory_space<vmem>>, vector<1x1xf32>
    %206 = vector.broadcast %205 : vector<1x1xf32> to vector<1x3xf32>
    %207 = arith.addf %204, %206 : vector<1x3xf32>
    %208 = arith.negf %207 : vector<1x3xf32>
    %209 = math.exp %208 : vector<1x3xf32>
    %cst_120 = arith.constant 1.000000e+00 : f32
    %210 = vector.broadcast %cst_120 : f32 to vector<1x3xf32>
    %211 = arith.addf %210, %209 : vector<1x3xf32>
    %212 = arith.divf %210, %211 : vector<1x3xf32>
    %213 = vector.shape_cast %212 : vector<1x3xf32> to vector<1x1x3xf32>
    %c0_121 = arith.constant 0 : index
    %c0_122 = arith.constant 0 : index
    %c0_123 = arith.constant 0 : index
    %214 = vector.load %arg15[%c0_121, %c0_122, %c0_123] : memref<1x1x3xf32, #tpu.memory_space<vmem>>, vector<1x1x3xf32>
    tpu.vector_store %arg15[%c0_121, %c0_122, %c0_123], %213 {strides = array<i32>} : memref<1x1x3xf32, #tpu.memory_space<vmem>>, vector<1x1x3xf32>,
    return
  }
  func.func @transform_0(%arg0: i32, %arg1: i32) -> (i32, i32, i32) {
    %c0_i32 = arith.constant 0 : i32
    %c0_i32_0 = arith.constant 0 : i32
    %c0_i32_1 = arith.constant 0 : i32
    return %arg0, %c0_i32, %c0_i32_0 : i32, i32, i32
  }
  func.func @transform_1(%arg0: i32, %arg1: i32) -> (i32, i32) {
    %c0_i32 = arith.constant 0 : i32
    %c0_i32_0 = arith.constant 0 : i32
    return %arg1, %c0_i32 : i32, i32
  }
  func.func @transform_2(%arg0: i32, %arg1: i32) -> (i32, i32, i32) {
    %c0_i32 = arith.constant 0 : i32
    %c0_i32_0 = arith.constant 0 : i32
    return %arg0, %arg1, %c0_i32 : i32, i32, i32
  }
  func.func @transform_3(%arg0: i32, %arg1: i32) -> (i32, i32) {
    %c0_i32 = arith.constant 0 : i32
    %c0_i32_0 = arith.constant 0 : i32
    %c0_i32_1 = arith.constant 0 : i32
    return %c0_i32, %c0_i32_0 : i32, i32
  }
  func.func @transform_4(%arg0: i32, %arg1: i32) -> (i32, i32) {
    %c0_i32 = arith.constant 0 : i32
    %c0_i32_0 = arith.constant 0 : i32
    %c0_i32_1 = arith.constant 0 : i32
    return %c0_i32, %c0_i32_0 : i32, i32
  }
  func.func @transform_5(%arg0: i32, %arg1: i32) -> (i32, i32, i32) {
    %c0_i32 = arith.constant 0 : i32
    %c0_i32_0 = arith.constant 0 : i32
    %c0_i32_1 = arith.constant 0 : i32
    %c0_i32_2 = arith.constant 0 : i32
    return %c0_i32, %c0_i32_0, %c0_i32_1 : i32, i32, i32
  }
  func.func @transform_6(%arg0: i32, %arg1: i32) -> (i32, i32, i32) {
    %c0_i32 = arith.constant 0 : i32
    %c0_i32_0 = arith.constant 0 : i32
    %c0_i32_1 = arith.constant 0 : i32
    %c0_i32_2 = arith.constant 0 : i32
    return %c0_i32, %c0_i32_0, %c0_i32_1 : i32, i32, i32
  }
  func.func @transform_7(%arg0: i32, %arg1: i32) -> (i32, i32, i32) {
    %c0_i32 = arith.constant 0 : i32
    %c0_i32_0 = arith.constant 0 : i32
    %c0_i32_1 = arith.constant 0 : i32
    %c0_i32_2 = arith.constant 0 : i32
    return %c0_i32, %c0_i32_0, %c0_i32_1 : i32, i32, i32
  }
  func.func @transform_8(%arg0: i32, %arg1: i32) -> (i32, i32, i32) {
    %c0_i32 = arith.constant 0 : i32
    %c0_i32_0 = arith.constant 0 : i32
    %c0_i32_1 = arith.constant 0 : i32
    %c0_i32_2 = arith.constant 0 : i32
    return %c0_i32, %c0_i32_0, %c0_i32_1 : i32, i32, i32
  }
  func.func @transform_9(%arg0: i32, %arg1: i32) -> (i32, i32, i32) {
    %c0_i32 = arith.constant 0 : i32
    %c0_i32_0 = arith.constant 0 : i32
    %c0_i32_1 = arith.constant 0 : i32
    %c0_i32_2 = arith.constant 0 : i32
    return %c0_i32, %c0_i32_0, %c0_i32_1 : i32, i32, i32
  }
  func.func @transform_10(%arg0: i32, %arg1: i32) -> (i32, i32, i32) {
    %c0_i32 = arith.constant 0 : i32
    %c0_i32_0 = arith.constant 0 : i32
    %c0_i32_1 = arith.constant 0 : i32
    %c0_i32_2 = arith.constant 0 : i32
    return %c0_i32, %c0_i32_0, %c0_i32_1 : i32, i32, i32
  }
  func.func @transform_11(%arg0: i32, %arg1: i32) -> (i32, i32) {
    %c0_i32 = arith.constant 0 : i32
    %c0_i32_0 = arith.constant 0 : i32
    %c0_i32_1 = arith.constant 0 : i32
    return %c0_i32, %c0_i32_0 : i32, i32
  }
  func.func @transform_12(%arg0: i32, %arg1: i32) -> (i32, i32) {
    %c0_i32 = arith.constant 0 : i32
    %c0_i32_0 = arith.constant 0 : i32
    %c0_i32_1 = arith.constant 0 : i32
    return %c0_i32, %c0_i32_0 : i32, i32
  }
  func.func @transform_13(%arg0: i32, %arg1: i32) -> (i32, i32, i32) {
    %c0_i32 = arith.constant 0 : i32
    %c0_i32_0 = arith.constant 0 : i32
    return %arg0, %c0_i32, %arg1 : i32, i32, i32
  }
}

</mosaic_0001>

<bundles_post_ra>
// kernel: tpu_custom_call.1
= control target key start
LH: loop header
LB: loop body
LE: loop exit
PB: predicated region body
PF: predicated region fallthrough
CT: control target
= control target key end

     0   :  { %s10243_s0 = inlined_call_operand.hbm [shape: f32[4,16,64], index: 0, kind: input, shape index: {}]   ;;  %s10244_s1 = inlined_call_operand.vmem [shape: f32[24,64], index: 1, kind: input, shape index: {}]   ;;  %s10245_s2 = inlined_call_operand.vmem [shape: f32[4,3,64], index: 2, kind: input, shape index: {}]   ;;  %s10246_s3 = inlined_call_operand.hbm [shape: f32[64,64], index: 3, kind: input, shape index: {}]   ;;  %s10247_s4 = inlined_call_operand.hbm [shape: f32[1,64], index: 4, kind: input, shape index: {}]   ;;  %s10248_s5 = inlined_call_operand.hbm [shape: f32[3,64,64], index: 5, kind: input, shape index: {}]   ;;  %s10249_s6 = inlined_call_operand.vmem [shape: f32[3,1,64], index: 6, kind: input, shape index: {}]   ;;  %s10250_s7 = inlined_call_operand.hbm [shape: f32[3,64,64], index: 7, kind: input, shape index: {}]   ;;  %s10251_s8 = inlined_call_operand.vmem [shape: f32[3,1,64], index: 8, kind: input, shape index: {}]   ;;  %s10252_s9 = inlined_call_operand.hbm [shape: f32[3,64,64], index: 9, kind: input, shape index: {}]   ;;  %s10253_s10 = inlined_call_operand.vmem [shape: f32[3,1,64], index: 10, kind: input, shape index: {}]   ;;  %s10254_s11 = inlined_call_operand.vmem [shape: f32[1,64], index: 11, kind: input, shape index: {}]   ;;  %s10255_s12 = inlined_call_operand.<no memory space> [shape: f32[1,1], index: 12, kind: input, shape index: {}]   ;;  %s10256_s13 = inlined_call_operand.vmem [shape: f32[4,1,3], index: 13, kind: output, shape index: {}]  }
   0x1   :  { %10259 = sst [smem:[#allocation18_spill]] %s10246_s3  ;;  %v18_v0 = vstv %s10255_s12 }
   0x2   :  { %10260 = sst [smem:[#allocation19_spill]] %s10247_s4  ;;  %19 = vst [vmem:[#allocation3] sm:$0x1] %v18_v0 }
   0x3   :  { %10261 = sst [smem:[#allocation20_spill]] %s10248_s5 }
   0x4   :  { %10262 = sst [smem:[#allocation21_spill]] %s10250_s7 }
   0x5   :  { %10263 = sst [smem:[#allocation22_spill]] %s10254_s11 }
   0x6   :  { %10264 = sst [smem:[#allocation23_spill]] %s10256_s13 }
   0x7   :  { %20 = vsyncpa [#allocation5], 0 }
   0x8   :  { %22 = vsyncpa [#allocation5 + $0x1], 0 }
   0x9   :  { %23 = vsyncpa [#allocation7], 0 }
   0xa   :  { %24 = vsyncpa [#allocation10], 0 }
   0xb   :  { %25 = vsyncpa [#allocation13], 0  ;;  %s8537_s27 = smov 0   ;;  %s8539_s28 = smov 0  }
   0xc   :  { %s8541_s29 = smov 0   ;;  %s8543_s30 = smov 0  }
   0xd   :  { %s8545_s14 = smov 0   ;;  %s8547_s15 = smov 0  }
   0xe LB: > { %s7970_s12 = sadd.s32 4294967295, %s8454_s15   ;;  %p7972_p0 = scmp.ge.s32.totalorder %s8454_s15, 1  ;;  %s8454_s15 = sphi %s8547_s15, %s31_s15   ;;  %s8450_s14 = sphi %s8545_s14, %s10284_s14   ;;  %s8446_s30 = sphi %s8543_s30, %s10283_s30   ;;  %s8442_s29 = sphi %s8541_s29, %s10282_s29   ;;  %s8438_s28 = sphi %s8539_s28, %s10281_s28   ;;  %s8434_s27 = sphi %s8537_s27, %s10280_s27  }
   0xf   : > { %p8569_p1 = scmp.eq.s32.totalorder %s7970_s12, 0  ;;  %p366_p2 = scmp.lt.s32.totalorder %s8454_s15, 5 }
  0x10   : > { %s10266_s3 = sld [smem:[#allocation18_spill]]  ;;  %s8456_s21 = smov [#allocation6]  }
  0x11   : > { %p8577_p3 = pnand %p7972_p0, %p366_p2  ;;  %s388_s22 = sshll.u32 %s8456_s21, 4  ;;  %s389_s22 = int_to_ptr.vmem [resolvable:$true] %s388_s22 }
  0x12   : > { %s10269_s5 = sld [smem:[#allocation20_spill]]  ;;  %s10257_s12 = smov 128  }
  0x13   : > { %p8023_p4 = pneg %p8577_p3  ;;  %s10258_s17 = smov 8  }
  0x14   : > { %s8459_s18 = smov [#allocation9]   ;;  %s10270_s4 = sld [smem:[#allocation19_spill]] }
  0x15   : > { %p8585_p5 = pnand %p8023_p4, %p8569_p1  ;;  %s414_s21 = sshll.u32 %s8459_s18, 4  ;;  %s415_s21 = int_to_ptr.vmem [resolvable:$true] %s414_s21 }
  0x16   : > { %s386_s19 = sshll.u32 %s10266_s3, 4  ;;  %s10271_s7 = sld [smem:[#allocation21_spill]]  ;;  %s387_s19 = int_to_ptr.hbm [resolvable:$true] %s386_s19 }
  0x17   : > { %8026 = dma.hbm_to_vmem [thread:$0]  (!%p8585_p5), %s387_s19, 1024, %s389_s22, [#allocation7], %s10257_s12, %s10257_s12, %s10258_s17  }
  0x18   : > { %s412_s26 = sshll.u32 %s10269_s5, 4  ;;  %s8460_s19 = smov [#allocation8]   ;;  %s413_s26 = int_to_ptr.hbm [resolvable:$true] %s412_s26 }
  0x19   : > { %8032 = dma.hbm_to_vmem [thread:$0]  (!%p8585_p5), %s413_s26, 3072, %s415_s21, [#allocation10], %s10257_s12, %s10257_s12, %s10258_s17  }
  0x1a   : > { %s401_s11 = sshll.u32 %s10270_s4, 4  ;;  %s403_s22 = sshll.u32 %s8460_s19, 4  ;;  %s402_s11 = int_to_ptr.hbm [resolvable:$true] %s401_s11  ;;  %s404_s22 = int_to_ptr.vmem [resolvable:$true] %s403_s22 }
  0x1b   : > { %8029 = dma.hbm_to_vmem [thread:$0]  (!%p8585_p5), %s402_s11, 16, %s404_s22, [#allocation7]  }
  0x1c   : > { %s429_s5 = sshll.u32 %s10271_s7, 4  ;;  %s8461_s3 = smov [#allocation11]   ;;  %s430_s5 = int_to_ptr.hbm [resolvable:$true] %s429_s5 }
  0x1d   : > { %s431_s13 = sshll.u32 %s8461_s3, 4  ;;  %s446_s21 = sshll.u32 %s10252_s9, 4  ;;  %s432_s13 = int_to_ptr.vmem [resolvable:$true] %s431_s13  ;;  %s447_s21 = int_to_ptr.hbm [resolvable:$true] %s446_s21 }
  0x1e   : > { %8035 = dma.hbm_to_vmem [thread:$0]  (!%p8585_p5), %s430_s5, 3072, %s432_s13, [#allocation10], %s10257_s12, %s10257_s12, %s10258_s17  }
  0x1f   : > { %s8462_s11 = smov [#allocation12]   ;;  %s43_s25 = sadd.s32 1, %s8450_s14 }
  0x20   : > { %s448_s24 = sshll.u32 %s8462_s11, 4  ;;  %p45_p6 = scmp.ge.s32.totalorder %s43_s25, 4  ;;  %s449_s24 = int_to_ptr.vmem [resolvable:$true] %s448_s24 }
  0x21   : > { %8038 = dma.hbm_to_vmem [thread:$0]  (!%p8585_p5), %s447_s21, 3072, %s449_s24, [#allocation13], %s10257_s12, %s10257_s12, %s10258_s17  }
  0x22   : > { %p57_p7 = scmp.ne.s32.totalorder %s8442_s29, %s8438_s28  ;;  %p58_p8 = scmp.eq.s32.totalorder %s8454_s15, 0 }
  0x23   : > { %s10286_s25 = smov (%p45_p6, %s43_s25), 0  ;;  %s50_s5 = sadd.s32 1, %s8442_s29 }
  0x24   : > { %p63_p9 = scmp.ne.s32.totalorder %s8438_s28, %s8434_s27  ;;  %s47_s19 = ssub.s32 %s8450_s14, %s10286_s25 }
  0x25   : > { %p8634_p10 = por %p58_p8, %p57_p7  ;;  %p48_p11 = scmp.eq.s32.totalorder %s47_s19, 0 }
  0x26   : > { %p8640_p12 = por %p8569_p1, %p63_p9  ;;  %s471_s3 = sand.u32 1, %s8442_s29  }
  0x27   : > { %s8000_s13 = sshll.u32 %s8450_s14, 4  ;;  %p8048_p13 = scmp.lt.s32.totalorder %s8454_s15, 4 }
  0x28   : > { %s8647_s26 = scalar_select %p48_p11, %s8442_s29, %s50_s5  }
  0x29   : > { %s7980_s18 = sshll.u32 %s471_s3, 4  ;;  %s480_s11 = scalar_lea.hbm %s10243_s0, %s8000_s13 }
  0x2a   : > { %s481_s24 = sshll.u32 %s480_s11, 4  ;;  %s475_s12 = scalar_lea.vmem [#allocation4], %s7980_s18  ;;  %s482_s24 = int_to_ptr.hbm [resolvable:$true] %s481_s24 }
  0x2b   : > { %s483_s17 = sshll.u32 %s475_s12, 4  ;;  %p8040_p0 = pnand %p8048_p13, %p8634_p10  ;;  %s484_s17 = int_to_ptr.vmem [resolvable:$true] %s483_s17 }
  0x2c   : > { %s472_s19 = scalar_lea.sflag [#allocation5], %s471_s3  ;;  %s10274_s4 = smov 8  }
  0x2d   : > { %s10275_s7 = smov 128   ;;  %505 = sbr.rel (%p8577_p3) target bundleno = 4307 (0x10d3), region = 72 }
  0x2e   : > { %8042 = dma.hbm_to_vmem [thread:$0]  (!%p8040_p0), %s482_s24, 256, %s484_s17, %s472_s19, %s10275_s7, %s10275_s7, %s10274_s4  }
  0x2f   : > { %s507_s5 = sand.u32 (!%p8577_p3), 1, %s8438_s28  }
  0x30   : > { %s7984_s21 = sshll.u32 (!%p8577_p3), %s507_s5, 4  ;;  %s508_s13 = scalar_lea.sflag (!%p8577_p3), [#allocation5], %s507_s5 }
  0x31   : > { %s511_s27 = scalar_lea.vmem (!%p8577_p3), [#allocation4], %s7984_s21 }
  0x32   : > { %8417 = dma.done.wait (%p8640_p12), %s508_s13, 256  }
  0x33   : > { %8419 = vsyncadd (%p8640_p12), %s508_s13, 4294967040 }
  0x34   : > { %8421 = dma.done.wait (%p8569_p1), [#allocation7], 1040  }
  0x35   : > { %8423 = vsyncadd (%p8569_p1), [#allocation7], 4294966256 }
  0x36   : > { %8425 = dma.done.wait (%p8569_p1), [#allocation10], 6144  }
  0x37   : > { %8427 = vsyncadd (%p8569_p1), [#allocation10], 4294961152 }
  0x38   : > { %8429 = dma.done.wait (%p8569_p1), [#allocation13], 3072  }
  0x39   : > { %8431 = vsyncadd (%p8569_p1), [#allocation13], 4294964224  ;;  %vm617_vm0 = vcmask 523264   ;;  %v8677_v1 = vld [vmem:[%s511_s27 + $0x8] sm:$0xff]  ;;  %v8679_v2 = vld [vmem:[%s511_s27] sm:$0xff]  ;;  %vm866_vm2 = vcmask 130048  }
  0x3a   : > { %v614_v3 = vld [vmem:[%s10244_s1] sm:$0xff]  ;;  %v631_v4 = vsel %vm617_vm0, %v8677_v1, 0  ;;  %v628_v5 = vsel %vm617_vm0, %v8679_v2, 0  ;;  %v615_v6 = vld [vmem:[%s10244_s1 + $0x8] sm:$0xff]  ;;  %v616_v7 = vld [vmem:[%s10244_s1 + $0x10] sm:$0xff]  ;;  %v8698_v24 = vand.u32 4294901760, %v8677_v1 }
  0x3b   : > { %v647_v8 = vand.u32 4294901760, %v631_v4  ;;  %v649_v9 = vand.u32 4294901760, %v628_v5  ;;  %v619_v10 = vsel %vm617_vm0, %v614_v3, 0  ;;  %v622_v11 = vsel %vm617_vm0, %v615_v6, 0  ;;  %p599_p1 = scmp.lt.s32.totalorder %s8446_s30, 3  ;;  %s10278_s20 = sld [smem:[#allocation22_spill]] }
  0x3c   : > { %v651_v12 = vand.u32 4294901760, %v619_v10  ;;  %v659_v13 = vand.u32 4294901760, %v622_v11  ;;  %v625_v16 = vsel %vm617_vm0, %v616_v7, 0  ;;  %v8702_v30 = vand.u32 4294901760, %v8679_v2  ;;  %s10279_s17 = sld [smem:[#allocation23_spill]] }
  0x3d   : > { %648 = vmatpush.xpose.msra.mxu0 %v647_v8  ;;  %v691_v14 = vsub.f32 %v631_v4, %v647_v8  ;;  %766 = vmatpush.xpose.msra.mxu3 %v647_v8  ;;  %v697_v15 = vsub.f32 %v628_v5, %v649_v9  ;;  %v667_v27 = vand.u32 4294901760, %v625_v16  ;;  %s10288_s30 = smov (!%p599_p1, %s8446_s30), 3 }
  0x3e   : > { %v652_v17 = vsub.f32 %v619_v10, %v651_v12  ;;  %v660_v18 = vsub.f32 %v622_v11, %v659_v13  ;;  %s7990_s19 = sshll.u32 %s10288_s30, 2 }
  0x3f   : > { %731 = vmatpush.xpose.msra.mxu2 %v691_v14  ;;  %v692_v19 = vand.u32 4294901760, %v691_v14  ;;  %v698_v20 = vand.u32 4294901760, %v697_v15  ;;  %v668_v33 = vsub.f32 %v625_v16, %v667_v27  ;;  %s605_s13 = scalar_lea.vmem %s10245_s2, %s7990_s19 }
  0x40   : > { %v653_v21 = vand.u32 4294901760, %v652_v17  ;;  %v661_v26 = vand.u32 4294901760, %v660_v18 }
  0x41   : > { %650 = vmatpush.xpose.msra.mxu0 %v649_v9  ;;  %v693_v22 = vsub.f32 %v691_v14, %v692_v19  ;;  %768 = vmatpush.xpose.msra.mxu3 %v649_v9  ;;  %v699_v23 = vsub.f32 %v697_v15, %v698_v20  ;;  %v669_v35 = vand.u32 4294901760, %v668_v33 }
  0x42   : > { %v654_v25 = vsub.f32 %v652_v17, %v653_v21  ;;  %v662_v32 = vsub.f32 %v660_v18, %v661_v26  ;;  %s611_s22 = scalar_lea.vmem %s10279_s17, %s10288_s30 }
  0x43   : > { %v694_v28 = vand.u32 4294901760, %v693_v22  ;;  %734 = vmatpush.xpose.msra.mxu2 %v697_v15  ;;  %v700_v31 = vand.u32 4294901760, %v699_v23  ;;  %v670_v36 = vsub.f32 %v668_v33, %v669_v35 }
  0x44   : > { %v655_v29 = vand.u32 4294901760, %v654_v25  ;;  %772 = vmatmul.f32.vlgmr.msra.gmra.mxu3 %v653_v21  ;;  %v663_v34 = vand.u32 4294901760, %v662_v32 }
  0x45   : > { %805 = vmatpush.xpose.msrb.mxu0 %v692_v19  ;;  %695 = vmatpush.xpose.msra.mxu1 %v694_v28  ;;  %v671_v37 = vand.u32 4294901760, %v670_v36 }
  0x46   : > { %656 = vmatmul.f32.vlgmr.msra.gmra.mxu0 %v655_v29  ;;  %737 = vmatmul.f32.vlgmr.msra.gmra.mxu2 %v652_v17 }
  0x47   : > { %1071 = vmatpush.msrb.mxu2 %v8698_v24 }
  0x49   : > { %809 = vmatpush.xpose.msrb.mxu0 %v698_v20  ;;  %1073 = vmatpush.msrb.mxu2 %v8702_v30 }
  0x4a   : > { %701 = vmatpush.xpose.msra.mxu1 %v700_v31 }
  0x4c   : > { %778 = vmatmul.f32.gmra.mxu3 %v661_v26 }
  0x4d   : > { %703 = vmatmul.f32.vlgmr.msra.gmra.mxu1 %v651_v12 }
  0x4e   : > { %838 = vmatpush.xpose.msrb.mxu1 %v647_v8  ;;  %664 = vmatmul.f32.gmra.mxu0 %v663_v34 }
  0x4f   : > { %742 = vmatmul.f32.gmra.mxu2 %v660_v18 }
  0x52   : > { %840 = vmatpush.xpose.msrb.mxu1 %v649_v9 }
  0x54   : > { %784 = vmatmul.f32.gmra.mxu3 %v669_v35 }
  0x55   : > { %707 = vmatmul.f32.gmra.mxu1 %v659_v13 }
  0x56   : > { %1189 = vmatpush.msra.mxu1 %v8698_v24  ;;  %672 = vmatmul.f32.gmra.mxu0 %v671_v37 }
  0x57   : > { %747 = vmatmul.f32.gmra.mxu2 %v668_v33 }
  0x58   : > { %1191 = vmatpush.msra.mxu1 %v8702_v30 }
  0x5d   : > { %711 = vmatmul.f32.gmra.mxu1 %v667_v27 }
  0x5e   : > { %811 = vmatmul.f32.vlgmr.msrb.gmra.mxu0 %v651_v12 }
  0x65   : > { %842 = vmatmul.f32.vlgmr.msrb.gmra.mxu1 %v651_v12 }
  0x66   : > { %815 = vmatmul.f32.gmra.mxu0 %v659_v13 }
  0x6d   : > { %846 = vmatmul.f32.gmra.mxu1 %v659_v13 }
  0x6e   : > { %819 = vmatmul.f32.gmra.mxu0 %v667_v27 }
  0x75   : > { %850 = vmatmul.f32.gmra.mxu1 %v667_v27 }
  0xc3   : > { %v657_v38 = vpop.f32.mrf.mxu0 }
  0xc7   : > { %v773_v45 = vpop.f32.mrf.mxu3 }
  0xc9   : > { %v738_v42 = vpop.f32.mrf.mxu2 }
  0xca   : > { %v704_v39 = vpop.f32.mrf.mxu1 }
  0xcb   : > { %v665_v40 = vpop.f32.mrf.mxu0  ;;  %v705_v44 = vadd.f32 %v704_v39, %v657_v38 }
  0xcd   : > { %v739_v47 = vadd.f32 %v738_v42, %v705_v44 }
  0xcf   : > { %v774_v50 = vadd.f32 %v773_v45, %v739_v47  ;;  %v779_v53 = vpop.f32.mrf.mxu3 }
  0xd2   : > { %v708_v41 = vpop.f32.mrf.mxu1  ;;  %v743_v49 = vpop.f32.mrf.mxu2 }
  0xd3   : > { %v673_v43 = vpop.f32.mrf.mxu0  ;;  %v709_v51 = vadd.f32 %v708_v41, %v665_v40 }
  0xd5   : > { %v744_v55 = vadd.f32 %v743_v49, %v709_v51 }
  0xd7   : > { %v780_v59 = vadd.f32 %v779_v53, %v744_v55  ;;  %v785_v8 = vpop.f32.mrf.mxu3 }
  0xda   : > { %v712_v46 = vpop.f32.mrf.mxu1  ;;  %v748_v62 = vpop.f32.mrf.mxu2 }
  0xdb   : > { %v812_v48 = vpop.f32.mrf.mxu0  ;;  %v713_v60 = vadd.f32 %v712_v46, %v673_v43 }
  0xdc   : > { %v813_v52 = vadd.f32 %v812_v48, %v774_v50 }
  0xdd   : > { %v749_v5 = vadd.f32 %v748_v62, %v713_v60 }
  0xdf   : > { %v786_v12 = vadd.f32 %v785_v8, %v749_v5 }
  0xe2   : > { %v843_v54 = vpop.f32.mrf.mxu1 }
  0xe3   : > { %v844_v56 = vadd.f32 %v843_v54, %v813_v52  ;;  %v816_v57 = vpop.f32.mrf.mxu0 }
  0xe4   : > { %v817_v0 = vadd.f32 %v816_v57, %v780_v59 }
  0xe5   : > { %v857_v58 = vmul.f32 0.1, %v844_v56  ;;  %vm854_vm1 = vcmp.ge.f32.partialorder %v844_v56, 0.0 }
  0xe7   : > { %v8707_v61 = vsel %vm854_vm1, %v844_v56, %v857_v58 }
  0xe8   : > { %v863_v63 = vmul.f32 %v8707_v61, %v8707_v61 }
  0xea   : > { %v847_v3 = vpop.f32.mrf.mxu1  ;;  %v867_v4 = vsel %vm866_vm2, %v863_v63, 0.0 }
  0xeb   : > { %v848_v6 = vadd.f32 %v847_v3, %v817_v0  ;;  %v868_v7 = vrot.slane %v867_v4, 4  ;;  %v820_v11 = vpop.f32.mrf.mxu0 }
  0xec   : > { %v821_v16 = vadd.f32 %v820_v11, %v786_v12 }
  0xed   : > { %v858_v9 = vmul.f32 0.1, %v848_v6  ;;  %v869_v10 = vadd.f32 %v868_v7, %v867_v4  ;;  %vm855_vm3 = vcmp.ge.f32.partialorder %v848_v6, 0.0 }
  0xef   : > { %v870_v13 = vrot.slane %v869_v10, 2  ;;  %v8712_v14 = vsel %vm855_vm3, %v848_v6, %v858_v9 }
  0xf0   : > { %v864_v15 = vmul.f32 %v8712_v14, %v8712_v14 }
  0xf1   : > { %v871_v17 = vadd.f32 %v870_v13, %v869_v10 }
  0xf2   : > { %v851_v18 = vpop.f32.mrf.mxu1  ;;  %v874_v19 = vsel %vm866_vm2, %v864_v15, 0.0 }
  0xf3   : > { %v852_v20 = vadd.f32 %v851_v18, %v821_v16  ;;  %v872_v21 = vrot.slane %v871_v17, 1  ;;  %v875_v22 = vrot.slane %v874_v19, 4 }
  0xf5   : > { %v859_v23 = vmul.f32 0.1, %v852_v20  ;;  %v873_v25 = vadd.f32 %v872_v21, %v871_v17  ;;  %v876_v26 = vadd.f32 %v875_v22, %v874_v19  ;;  %vm856_vm4 = vcmp.ge.f32.partialorder %v852_v20, 0.0 }
  0xf7   : > { %8121 = vrsqrt.f32 %v873_v25  ;;  %v877_v27 = vrot.slane %v876_v26, 2  ;;  %v8717_v28 = vsel %vm856_vm4, %v852_v20, %v859_v23  ;;  %vm895_vm5 = vcmp.eq.f32.partialorder %v873_v25, inf }
  0xf8   : > { %v865_v29 = vmul.f32 %v8717_v28, %v8717_v28  ;;  %v898_v50 = vand.u32 2147483648, %v873_v25  ;;  %vm897_vm6 = vcmp.eq.f32.partialorder %v873_v25, 0.0 }
  0xf9   : > { %v878_v31 = vadd.f32 %v877_v27, %v876_v26 }
  0xfa   : > { %v881_v32 = vsel %vm866_vm2, %v865_v29, 0.0 }
  0xfb   : > { %v879_v33 = vrot.slane %v878_v31, 1  ;;  %v882_v34 = vrot.slane %v881_v32, 4 }
  0xfd   : > { %v8122_v35 = vpop.eup %8121  ;;  %v880_v37 = vadd.f32 %v879_v33, %v878_v31  ;;  %v883_v38 = vadd.f32 %v882_v34, %v881_v32 }
  0xfe   : > { %v889_v36 = vmul.f32 %v8122_v35, %v873_v25 }
  0xff   : > { %8123 = vrsqrt.f32 %v880_v37  ;;  %v884_v40 = vrot.slane %v883_v38, 2  ;;  %vm907_vm7 = vcmp.eq.f32.partialorder %v880_v37, inf  ;;  %v910_v62 = vand.u32 2147483648, %v880_v37 }
 0x100   : > { %v890_v39 = vmul.f32 %v8122_v35, %v889_v36  ;;  %vm909_vm8 = vcmp.eq.f32.partialorder %v880_v37, 0.0 }
 0x101   : > { %v885_v42 = vadd.f32 %v884_v40, %v883_v38 }
 0x102   : > { %v891_v41 = vmul.f32 0.5, %v890_v39 }
 0x103   : > { %v886_v44 = vrot.slane %v885_v42, 1 }
 0x104   : > { %v892_v43 = vsub.f32 1.5, %v891_v41 }
 0x105   : > { %v8124_v45 = vpop.eup %8123  ;;  %v887_v48 = vadd.f32 %v886_v44, %v885_v42 }
 0x106   : > { %v893_v46 = vmul.f32 %v8122_v35, %v892_v43  ;;  %v901_v47 = vmul.f32 %v8124_v45, %v880_v37 }
 0x107   : > { %8125 = vrsqrt.f32 %v887_v48  ;;  %vm919_vm11 = vcmp.eq.f32.partialorder %v887_v48, inf  ;;  %v922_v17 = vand.u32 2147483648, %v887_v48  ;;  %vm921_vm13 = vcmp.eq.f32.partialorder %v887_v48, 0.0 }
 0x108   : > { %v894_v49 = vmul.f32 %v893_v46, %v873_v25  ;;  %v902_v51 = vmul.f32 %v8124_v45, %v901_v47 }
 0x10a   : > { %v896_v52 = vsel %vm895_vm5, %v873_v25, %v894_v49  ;;  %v903_v54 = vmul.f32 0.5, %v902_v51 }
 0x10b   : > { %v899_v53 = vsel %vm897_vm6, %v898_v50, %v896_v52 }
 0x10c   : > { %v924_v55 = vadd.f32 1e-08, %v899_v53  ;;  %v904_v56 = vsub.f32 1.5, %v903_v54 }
 0x10d   : > { %v8126_v57 = vpop.eup %8125 }
 0x10e   : > { %8127 = vrcp.f32 %v924_v55  ;;  %v905_v58 = vmul.f32 %v8124_v45, %v904_v56  ;;  %v913_v59 = vmul.f32 %v8126_v57, %v887_v48  ;;  %v938_v10 = vand.u32 2147483648, %v924_v55 }
 0x10f   : > { %v936_v13 = vand.u32 2147483647, %v924_v55  ;;  %vm932_vm10 = vweird.f32 %v924_v55 }
 0x110   : > { %v906_v60 = vmul.f32 %v905_v58, %v880_v37  ;;  %v914_v63 = vmul.f32 %v8126_v57, %v913_v59  ;;  %v939_v18 = vor.u32 1.1754944e-38, %v938_v10 }
 0x111   : > { %vm937_vm14 = vcmp.eq.f32.partialorder %v936_v13, 8.507059e+37 }
 0x112   : > { %v908_v0 = vsel %vm907_vm7, %v880_v37, %v906_v60  ;;  %v915_v5 = vmul.f32 0.5, %v914_v63 }
 0x113   : > { %v911_v4 = vsel %vm909_vm8, %v910_v62, %v908_v0 }
 0x114   : > { %v8128_v3 = vpop.eup %8127  ;;  %v925_v7 = vadd.f32 1e-08, %v911_v4  ;;  %v916_v8 = vsub.f32 1.5, %v915_v5 }
 0x115   : > { %v928_v6 = vmul.f32 %v8128_v3, %v924_v55  ;;  %vm933_vm9 = vweird.f32 %v8128_v3 }
 0x116   : > { %8129 = vrcp.f32 %v925_v7  ;;  %v917_v11 = vmul.f32 %v8126_v57, %v916_v8  ;;  %vm934_vm12 = vmor %vm932_vm10, %vm933_vm9  ;;  %v953_v32 = vand.u32 2147483648, %v925_v7  ;;  %v951_v34 = vand.u32 2147483647, %v925_v7 }
 0x117   : > { %v929_v9 = vsub.f32 1.0, %v928_v6  ;;  %vm947_vm1 = vweird.f32 %v925_v7 }
 0x118   : > { %v918_v15 = vmul.f32 %v917_v11, %v887_v48  ;;  %v954_v37 = vor.u32 1.1754944e-38, %v953_v32  ;;  %vm952_vm4 = vcmp.eq.f32.partialorder %v951_v34, 8.507059e+37 }
 0x119   : > { %v930_v12 = vmul.f32 %v8128_v3, %v929_v9  ;;  %v1120_v9 = vsub.f32 %v8679_v2, %v8702_v30 }
 0x11a   : > { %v920_v19 = vsel %vm919_vm11, %v887_v48, %v918_v15 }
 0x11b   : > { %v931_v16 = vadd.f32 %v8128_v3, %v930_v12  ;;  %v923_v22 = vsel %vm921_vm13, %v922_v17, %v920_v19  ;;  %v1121_v11 = vand.u32 4294901760, %v1120_v9 }
 0x11c   : > { %v8130_v20 = vpop.eup %8129  ;;  %v926_v26 = vadd.f32 1e-08, %v923_v22 }
 0x11d   : > { %v935_v21 = vsel %vm934_vm12, %v8128_v3, %v931_v16  ;;  %v943_v25 = vmul.f32 %v8130_v20, %v925_v7  ;;  %vm948_vm15 = vweird.f32 %v8130_v20  ;;  %v1114_v7 = vsub.f32 %v8677_v1, %v8698_v24 }
 0x11e   : > { %v940_v23 = vsel %vm937_vm14, %v939_v18, %v935_v21  ;;  %8131 = vrcp.f32 %v926_v26  ;;  %vm949_vm3 = vmor %vm947_vm1, %vm948_vm15  ;;  %v968_v44 = vand.u32 2147483648, %v926_v26  ;;  %v966_v46 = vand.u32 2147483647, %v926_v26 }
 0x11f   : > { %v941_v27 = vmul.f32 %v940_v23, %v8707_v61  ;;  %v944_v29 = vsub.f32 1.0, %v943_v25  ;;  %vm962_vm6 = vweird.f32 %v926_v26  ;;  %v1115_v8 = vand.u32 4294901760, %v1114_v7  ;;  %1154 = vmatpush.msra.mxu0 %v1114_v7 }
 0x120   : > { %v969_v49 = vor.u32 1.1754944e-38, %v968_v44  ;;  %vm967_vm8 = vcmp.eq.f32.partialorder %v966_v46, 8.507059e+37  ;;  %v1122_v13 = vsub.f32 %v1120_v9, %v1121_v11 }
 0x121   : > { %v972_v31 = vmul.f32 9.0, %v941_v27  ;;  %v945_v33 = vmul.f32 %v8130_v20, %v944_v29  ;;  %v1116_v10 = vsub.f32 %v1114_v7, %v1115_v8  ;;  %1157 = vmatpush.msra.mxu0 %v1120_v9  ;;  %1228 = vmatpush.msra.mxu2 %v1115_v8 }
 0x122   : > { %v1123_v15 = vand.u32 4294901760, %v1122_v13 }
 0x123   : > { %v975_v35 = vsel %vm866_vm2, %v972_v31, -inf  ;;  %v946_v36 = vadd.f32 %v8130_v20, %v945_v33  ;;  %v1117_v12 = vand.u32 4294901760, %v1116_v10  ;;  %1232 = vmatpush.msra.mxu2 %v1121_v11 }
 0x124   : > { %976 = vmax.xlane.f32.xlu0 %v975_v35  ;;  %v8132_v38 = vpop.eup %8131 }
 0x125   : > { %v950_v39 = vsel %vm949_vm3, %v8130_v20, %v946_v36  ;;  %v958_v41 = vmul.f32 %v8132_v38, %v926_v26  ;;  %vm963_vm5 = vweird.f32 %v8132_v38  ;;  %1118 = vmatpush.msrb.mxu3 %v1117_v12 }
 0x126   : > { %v955_v40 = vsel %vm952_vm4, %v954_v37, %v950_v39  ;;  %vm964_vm7 = vmor %vm962_vm6, %vm963_vm5 }
 0x127   : > { %v956_v61 = vmul.f32 %v955_v40, %v8712_v14  ;;  %v959_v42 = vsub.f32 1.0, %v958_v41  ;;  %1124 = vmatpush.msrb.mxu3 %v1123_v15 }
 0x129   : > { %v973_v43 = vmul.f32 9.0, %v956_v61  ;;  %v960_v45 = vmul.f32 %v8132_v38, %v959_v42  ;;  %1261 = vmatpush.msra.mxu3 %v8698_v24 }
 0x12b   : > { %v978_v47 = vsel %vm866_vm2, %v973_v43, -inf  ;;  %v961_v48 = vadd.f32 %v8132_v38, %v960_v45  ;;  %1263 = vmatpush.msra.mxu3 %v8702_v30 }
 0x12c   : > { %979 = vmax.xlane.f32.xlu0 %v978_v47 }
 0x12d   : > { %v965_v50 = vsel %vm964_vm7, %v8132_v38, %v961_v48 }
 0x12e   : > { %v970_v51 = vsel %vm967_vm8, %v969_v49, %v965_v50 }
 0x12f   : > { %v971_v52 = vmul.f32 %v970_v51, %v8717_v28 }
 0x131   : > { %v974_v53 = vmul.f32 9.0, %v971_v52 }
 0x133   : > { %v981_v14 = vsel %vm866_vm2, %v974_v53, -inf }
 0x134   : > { %982 = vmax.xlane.f32.xlu1 %v981_v14 }
 0x197   : > { %v977_v54 = vpop.xlane.xlu0 %976 }
 0x198   : > { %v984_v55 = vsub.f32 %v972_v31, %v977_v54 }
 0x19a   : > { %v987_v56 = vmul.f32 1.442695, %v984_v55 }
 0x19c   : > { %8133 = vpow2.f32 %v987_v56 }
 0x19f   : > { %v980_v57 = vpop.xlane.xlu0 %979 }
 0x1a0   : > { %v985_v58 = vsub.f32 %v973_v43, %v980_v57 }
 0x1a2   : > { %v8134_v59 = vpop.eup %8133  ;;  %v989_v60 = vmul.f32 1.442695, %v985_v58 }
 0x1a3   : > { %v993_v62 = vsel %vm866_vm2, %v8134_v59, 0.0 }
 0x1a4   : > { %994 = vadd.xlane.f32.xlu1 %v993_v62  ;;  %8135 = vpow2.f32 %v989_v60 }
 0x1a7   : > { %v983_v63 = vpop.xlane.xlu1 %982 }
 0x1a8   : > { %v986_v0 = vsub.f32 %v974_v53, %v983_v63 }
 0x1aa   : > { %v8729_v3 = vpop.eup %8135  ;;  %v991_v28 = vmul.f32 1.442695, %v986_v0 }
 0x1ab   : > { %v996_v4 = vsel %vm866_vm2, %v8729_v3, 0.0 }
 0x1ac   : > { %997 = vadd.xlane.f32.xlu2 %v996_v4  ;;  %8137 = vpow2.f32 %v991_v28 }
 0x1b2   : > { %v8733_v5 = vpop.eup %8137 }
 0x1b3   : > { %v999_v6 = vsel %vm866_vm2, %v8733_v5, 0.0 }
 0x1b4   : > { %1000 = vadd.xlane.f32.xlu2 %v999_v6 }
 0x217   : > { %v995_v1 = vpop.xlane.xlu1 %994 }
 0x218   : > { %8139 = vrcp.f32 %v995_v1  ;;  %v1013_v19 = vand.u32 2147483648, %v995_v1  ;;  %v1011_v21 = vand.u32 2147483647, %v995_v1  ;;  %vm1007_vm10 = vweird.f32 %v995_v1 }
 0x21a   : > { %v1014_v23 = vor.u32 1.1754944e-38, %v1013_v19  ;;  %vm1012_vm12 = vcmp.eq.f32.partialorder %v1011_v21, 8.507059e+37 }
 0x21e   : > { %v8140_v16 = vpop.eup %8139 }
 0x21f   : > { %v1003_v17 = vmul.f32 %v8140_v16, %v995_v1  ;;  %v998_v2 = vpop.xlane.xlu2 %997  ;;  %vm1008_vm9 = vweird.f32 %v8140_v16 }
 0x220   : > { %8141 = vrcp.f32 %v998_v2  ;;  %vm1009_vm11 = vmor %vm1007_vm10, %vm1008_vm9  ;;  %v1028_v32 = vand.u32 2147483648, %v998_v2  ;;  %v1026_v35 = vand.u32 2147483647, %v998_v2  ;;  %vm1022_vm14 = vweird.f32 %v998_v2 }
 0x221   : > { %v1004_v18 = vsub.f32 1.0, %v1003_v17 }
 0x222   : > { %v1029_v39 = vor.u32 1.1754944e-38, %v1028_v32  ;;  %vm1027_vm1 = vcmp.eq.f32.partialorder %v1026_v35, 8.507059e+37 }
 0x223   : > { %v1005_v20 = vmul.f32 %v8140_v16, %v1004_v18 }
 0x225   : > { %v1006_v22 = vadd.f32 %v8140_v16, %v1005_v20 }
 0x226   : > { %v8142_v25 = vpop.eup %8141 }
 0x227   : > { %v1010_v26 = vsel %vm1009_vm11, %v8140_v16, %v1006_v22  ;;  %v1018_v30 = vmul.f32 %v8142_v25, %v998_v2  ;;  %v1001_v27 = vpop.xlane.xlu2 %1000  ;;  %vm1023_vm13 = vweird.f32 %v8142_v25 }
 0x228   : > { %v1015_v24 = vsel %vm1012_vm12, %v1014_v23, %v1010_v26  ;;  %8143 = vrcp.f32 %v1001_v27  ;;  %vm1024_vm15 = vmor %vm1022_vm14, %vm1023_vm13  ;;  %v1043_v47 = vand.u32 2147483648, %v1001_v27  ;;  %v1041_v51 = vand.u32 2147483647, %v1001_v27 }
 0x229   : > { %v1016_v29 = vmul.f32 %v8134_v59, %v1015_v24  ;;  %v1019_v31 = vsub.f32 1.0, %v1018_v30  ;;  %vm1037_vm4 = vweird.f32 %v1001_v27 }
 0x22a   : > { %v1044_v54 = vor.u32 1.1754944e-38, %v1043_v47  ;;  %vm1042_vm6 = vcmp.eq.f32.partialorder %v1041_v51, 8.507059e+37 }
 0x22b   : > { %v1048_v33 = vsel %vm866_vm2, %v1016_v29, 0  ;;  %v1020_v34 = vmul.f32 %v8142_v25, %v1019_v31 }
 0x22c   : > { %v1074_v36 = vand.u32 4294901760, %v1048_v33 }
 0x22d   : > { %v1021_v37 = vadd.f32 %v8142_v25, %v1020_v34 }
 0x22e   : > { %1126 = vmatmul.f32.vlgmr.msrb.gmra.mxu3 %v1074_v36  ;;  %v1075_v38 = vsub.f32 %v1048_v33, %v1074_v36  ;;  %v8144_v40 = vpop.eup %8143 }
 0x22f   : > { %v1025_v41 = vsel %vm1024_vm15, %v8142_v25, %v1021_v37  ;;  %v1033_v43 = vmul.f32 %v8144_v40, %v1001_v27  ;;  %vm1038_vm3 = vweird.f32 %v8144_v40 }
 0x230   : > { %1160 = vmatmul.f32.vlgmr.msra.gmra.mxu0 %v1075_v38  ;;  %v1076_v61 = vand.u32 4294901760, %v1075_v38  ;;  %v1030_v42 = vsel %vm1027_vm1, %v1029_v39, %v1025_v41  ;;  %vm1039_vm5 = vmor %vm1037_vm4, %vm1038_vm3 }
 0x231   : > { %v1031_v45 = vmul.f32 %v8729_v3, %v1030_v42  ;;  %v1034_v46 = vsub.f32 1.0, %v1033_v43  ;;  %v1386_v43 = vld [vmem:[#allocation6 + $0x38] sm:$0xff] }
 0x232   : > { %1195 = vmatmul.f32.vlgmr.msra.gmra.mxu1 %v1076_v61  ;;  %v1077_v44 = vsub.f32 %v1075_v38, %v1076_v61 }
 0x233   : > { %v1051_v49 = vsel %vm866_vm2, %v1031_v45, 0  ;;  %v1035_v50 = vmul.f32 %v8144_v40, %v1034_v46  ;;  %v1385_v45 = vld [vmem:[#allocation6 + $0x30] sm:$0xff] }
 0x234   : > { %v1078_v48 = vand.u32 4294901760, %v1077_v44  ;;  %v1082_v52 = vand.u32 4294901760, %v1051_v49  ;;  %v8763_v44 = vand.u32 4294901760, %v1386_v43  ;;  %v8768_v47 = vand.u32 4294901760, %v1385_v45 }
 0x235   : > { %v1036_v53 = vadd.f32 %v8144_v40, %v1035_v50 }
 0x236   : > { %1079 = vmatmul.f32.vlgmr.msrb.gmra.mxu2 %v1078_v48  ;;  %1130 = vmatmul.f32.gmra.mxu3 %v1082_v52  ;;  %v1083_v14 = vsub.f32 %v1051_v49, %v1082_v52  ;;  %v8766_v46 = vsub.f32 %v1386_v43, %v8763_v44  ;;  %v1384_v48 = vld [vmem:[#allocation6 + $0x28] sm:$0xff]  ;;  %v8774_v50 = vsub.f32 %v1385_v45, %v8768_v47 }
 0x237   : > { %v1040_v55 = vsel %vm1039_vm5, %v8144_v40, %v1036_v53  ;;  %1575 = vmatpush.msrb.mxu3 %v8763_v44  ;;  %1409 = vmatpush.msrb.mxu0 %v8763_v44  ;;  %v8777_v51 = vand.u32 4294901760, %v1384_v48 }
 0x238   : > { %1165 = vmatmul.f32.gmra.mxu0 %v1083_v14  ;;  %v1084_v56 = vand.u32 4294901760, %v1083_v14  ;;  %v1045_v57 = vsel %vm1042_vm6, %v1044_v54, %v1040_v55  ;;  %v1459_v49 = vand.u32 4294901760, %v8766_v46  ;;  %1528 = vmatpush.msrb.mxu2 %v8766_v46  ;;  %v1465_v54 = vand.u32 4294901760, %v8774_v50 }
 0x239   : > { %v1046_v59 = vmul.f32 %v8733_v5, %v1045_v57  ;;  %1577 = vmatpush.msrb.mxu3 %v8768_v47  ;;  %1411 = vmatpush.msrb.mxu0 %v8768_v47  ;;  %v8788_v55 = vsub.f32 %v1384_v48, %v8777_v51  ;;  %v1382_v57 = vld [vmem:[#allocation6 + $0x18] sm:$0xff] }
 0x23a   : > { %1201 = vmatmul.f32.gmra.mxu1 %v1084_v56  ;;  %v1085_v58 = vsub.f32 %v1083_v14, %v1084_v56  ;;  %v1460_v14 = vsub.f32 %v8766_v46, %v1459_v49  ;;  %1531 = vmatpush.msrb.mxu2 %v8774_v50 }
 0x23b   : > { %v1054_v62 = vsel %vm866_vm2, %v1046_v59, 0  ;;  %1579 = vmatpush.msrb.mxu3 %v8777_v51  ;;  %1413 = vmatpush.msrb.mxu0 %v8777_v51  ;;  %v1466_v59 = vsub.f32 %v8774_v50, %v1465_v54 }
 0x23c   : > { %v1086_v60 = vand.u32 4294901760, %v1085_v58  ;;  %v1090_v63 = vand.u32 4294901760, %v1054_v62  ;;  %v1461_v58 = vand.u32 4294901760, %v1460_v14  ;;  %1534 = vmatpush.msrb.mxu2 %v8788_v55 }
 0x23e   : > { %1087 = vmatmul.f32.gmra.mxu2 %v1086_v60  ;;  %1134 = vmatmul.f32.gmra.mxu3 %v1090_v63  ;;  %v1091_v0 = vsub.f32 %v1054_v62, %v1090_v63  ;;  %v1471_v60 = vand.u32 4294901760, %v8788_v55 }
 0x23f   : > { %1462 = vmatpush.msrb.mxu1 %v1461_v58 }
 0x240   : > { %1170 = vmatmul.f32.gmra.mxu0 %v1091_v0  ;;  %v1092_v3 = vand.u32 4294901760, %v1091_v0 }
 0x242   : > { %1207 = vmatmul.f32.gmra.mxu1 %v1092_v3  ;;  %v1093_v28 = vsub.f32 %v1091_v0, %v1092_v3  ;;  %v1381_v0 = vld [vmem:[#allocation6 + $0x10] sm:$0xff]  ;;  %v1467_v3 = vand.u32 4294901760, %v1466_v59 }
 0x244   : > { %v1094_v4 = vand.u32 4294901760, %v1093_v28  ;;  %v1472_v28 = vsub.f32 %v8788_v55, %v1471_v60  ;;  %1468 = vmatpush.msrb.mxu1 %v1467_v3 }
 0x246   : > { %1095 = vmatmul.f32.gmra.mxu2 %v1094_v4  ;;  %1265 = vmatmul.f32.vlgmr.msra.gmra.mxu3 %v1074_v36 }
 0x24e   : > { %1234 = vmatmul.f32.vlgmr.msra.gmra.mxu2 %v1074_v36  ;;  %1269 = vmatmul.f32.gmra.mxu3 %v1082_v52 }
 0x256   : > { %1238 = vmatmul.f32.gmra.mxu2 %v1082_v52  ;;  %1273 = vmatmul.f32.gmra.mxu3 %v1090_v63  ;;  %v1383_v52 = vld [vmem:[#allocation6 + $0x20] sm:$0xff] }
 0x257   : > { %v8791_v56 = vand.u32 4294901760, %v1383_v52 }
 0x259   : > { %v8801_v62 = vsub.f32 %v1383_v52, %v8791_v56  ;;  %1581 = vmatpush.msrb.mxu3 %v8791_v56  ;;  %1415 = vmatpush.msrb.mxu0 %v8791_v56 }
 0x25b   : > { %v1477_v4 = vand.u32 4294901760, %v8801_v62  ;;  %1537 = vmatpush.msrb.mxu2 %v8801_v62 }
 0x25e   : > { %1242 = vmatmul.f32.gmra.mxu2 %v1090_v63  ;;  %v8805_v63 = vand.u32 4294901760, %v1382_v57 }
 0x260   : > { %1583 = vmatpush.msrb.mxu3 %v8805_v63  ;;  %1417 = vmatpush.msrb.mxu0 %v8805_v63 }
 0x2ad   : > { %v1161_v10 = vpop.f32.mrf.mxu0 }
 0x2af   : > { %v1196_v13 = vpop.f32.mrf.mxu1 }
 0x2b1   : > { %v1127_v5 = vpop.f32.mrf.mxu3 }
 0x2b5   : > { %v1166_v2 = vpop.f32.mrf.mxu0 }
 0x2b7   : > { %v1202_v22 = vpop.f32.mrf.mxu1 }
 0x2b9   : > { %v1080_v6 = vpop.f32.mrf.mxu2  ;;  %v1131_v7 = vpop.f32.mrf.mxu3 }
 0x2ba   : > { %v1128_v11 = vadd.f32 %v1127_v5, %v1080_v6  ;;  %v8813_v5 = vand.u32 4294901760, %v1381_v0  ;;  %v8816_v6 = vsub.f32 %v1382_v57, %v8805_v63 }
 0x2bc   : > { %v1162_v15 = vadd.f32 %v1161_v10, %v1128_v11  ;;  %v8824_v10 = vsub.f32 %v1381_v0, %v8813_v5  ;;  %1540 = vmatpush.msrb.mxu2 %v8816_v6  ;;  %1585 = vmatpush.msrb.mxu3 %v8813_v5 }
 0x2bd   : > { %v1171_v31 = vpop.f32.mrf.mxu0  ;;  %1419 = vmatpush.msrb.mxu0 %v8813_v5 }
 0x2be   : > { %v1197_v17 = vadd.f32 %v1196_v13, %v1162_v15  ;;  %v1483_v13 = vand.u32 4294901760, %v8816_v6  ;;  %1543 = vmatpush.msrb.mxu2 %v8824_v10 }
 0x2bf   : > { %v1208_v35 = vpop.f32.mrf.mxu1 }
 0x2c1   : > { %v1088_v8 = vpop.f32.mrf.mxu2  ;;  %v1135_v9 = vpop.f32.mrf.mxu3 }
 0x2c2   : > { %v1132_v16 = vadd.f32 %v1131_v7, %v1088_v8  ;;  %v1380_v7 = vld [vmem:[#allocation6 + $0x8] sm:$0xff]  ;;  %v1473_v8 = vand.u32 4294901760, %v1472_v28 }
 0x2c3   : > { %v8826_v11 = vand.u32 4294901760, %v1380_v7 }
 0x2c4   : > { %v1167_v20 = vadd.f32 %v1166_v2, %v1132_v16  ;;  %1474 = vmatpush.msrb.mxu1 %v1473_v8 }
 0x2c5   : > { %v1494_v2 = vsub.f32 %v1380_v7, %v8826_v11  ;;  %1587 = vmatpush.msrb.mxu3 %v8826_v11  ;;  %1421 = vmatpush.msrb.mxu0 %v8826_v11 }
 0x2c6   : > { %v1203_v26 = vadd.f32 %v1202_v22, %v1167_v20  ;;  %v1484_v20 = vsub.f32 %v8816_v6, %v1483_v13 }
 0x2c7   : > { %1546 = vmatpush.msrb.mxu2 %v1494_v2 }
 0x2c9   : > { %v1096_v12 = vpop.f32.mrf.mxu2  ;;  %v1266_v1 = vpop.f32.mrf.mxu3 }
 0x2ca   : > { %v1136_v25 = vadd.f32 %v1135_v9, %v1096_v12  ;;  %v1478_v9 = vsub.f32 %v8801_v62, %v1477_v4 }
 0x2cc   : > { %v1172_v32 = vadd.f32 %v1171_v31, %v1136_v25  ;;  %v1479_v16 = vand.u32 4294901760, %v1478_v9 }
 0x2ce   : > { %v1209_v36 = vadd.f32 %v1208_v35, %v1172_v32  ;;  %1480 = vmatpush.msrb.mxu1 %v1479_v16 }
 0x2d1   : > { %v1235_v18 = vpop.f32.mrf.mxu2  ;;  %v1270_v30 = vpop.f32.mrf.mxu3 }
 0x2d2   : > { %v1236_v19 = vadd.f32 %v1235_v18, %v1197_v17  ;;  %v1489_v17 = vand.u32 4294901760, %v8824_v10  ;;  %v1379_v18 = vld [vmem:[#allocation6] sm:$0xff] }
 0x2d3   : > { %v8843_v25 = vand.u32 4294901760, %v1379_v18 }
 0x2d4   : > { %v8748_v21 = vadd.f32 %v1266_v1, %v1236_v19  ;;  %v1490_v22 = vsub.f32 %v8824_v10, %v1489_v17 }
 0x2d5   : > { %1589 = vmatpush.msrb.mxu3 %v8843_v25  ;;  %1423 = vmatpush.msrb.mxu0 %v8843_v25 }
 0x2d6   : > { %v1277_v23 = vmul.f32 %v8748_v21, %v8748_v21 }
 0x2d7   : > { %1620 = vmatpush.msra.mxu0 %v1459_v49 }
 0x2d8   : > { %v1280_v24 = vsel %vm617_vm0, %v1277_v23, 0.0  ;;  %v1495_v23 = vand.u32 4294901760, %v1494_v2 }
 0x2d9   : > { %v1239_v27 = vpop.f32.mrf.mxu2  ;;  %1281 = vadd.xlane.f32.xlu0 %v1280_v24  ;;  %v1274_v40 = vpop.f32.mrf.mxu3  ;;  %v1485_v24 = vand.u32 4294901760, %v1484_v20  ;;  %1624 = vmatpush.msra.mxu0 %v1465_v54 }
 0x2da   : > { %v1240_v29 = vadd.f32 %v1239_v27, %v1203_v26  ;;  %v1496_v27 = vsub.f32 %v1494_v2, %v1495_v23  ;;  %v8209_v2 = vld [vmem:[%s10244_s1] sm:$0xff] }
 0x2db   : > { %1486 = vmatpush.msrb.mxu1 %v1485_v24  ;;  %1628 = vmatpush.msra.mxu0 %v1471_v60 }
 0x2dc   : > { %v8753_v33 = vadd.f32 %v1270_v30, %v1240_v29  ;;  %v1491_v30 = vand.u32 4294901760, %v1490_v22  ;;  %v1500_v29 = vsub.f32 %v1379_v18, %v8843_v25  ;;  %v1497_v32 = vand.u32 4294901760, %v1496_v27 }
 0x2dd   : > { %1632 = vmatpush.msra.mxu0 %v1477_v4 }
 0x2de   : > { %v1278_v34 = vmul.f32 %v8753_v33, %v8753_v33  ;;  %v1501_v35 = vand.u32 4294901760, %v1500_v29  ;;  %1549 = vmatpush.msrb.mxu2 %v1500_v29  ;;  %1492 = vmatpush.msrb.mxu1 %v1491_v30 }
 0x2df   : > { %1636 = vmatpush.msra.mxu0 %v1483_v13 }
 0x2e0   : > { %v1283_v37 = vsel %vm617_vm0, %v1278_v34, 0.0  ;;  %1498 = vmatpush.msrb.mxu1 %v1497_v32 }
 0x2e1   : > { %v1243_v38 = vpop.f32.mrf.mxu2  ;;  %1284 = vadd.xlane.f32.xlu1 %v1283_v37  ;;  %1640 = vmatpush.msra.mxu0 %v1489_v17 }
 0x2e2   : > { %v1244_v39 = vadd.f32 %v1243_v38, %v1209_v36 }
 0x2e3   : > { %1644 = vmatpush.msra.mxu0 %v1495_v23 }
 0x2e4   : > { %v8758_v41 = vadd.f32 %v1274_v40, %v1244_v39 }
 0x2e5   : > { %1648 = vmatpush.msra.mxu0 %v1501_v35 }
 0x2e6   : > { %v1279_v61 = vmul.f32 %v8758_v41, %v8758_v41 }
 0x2e8   : > { %v1286_v42 = vsel %vm617_vm0, %v1279_v61, 0.0  ;;  %v1502_v61 = vsub.f32 %v1500_v29, %v1501_v35 }
 0x2e9   : > { %1287 = vadd.xlane.f32.xlu2 %v1286_v42 }
 0x2ea   : > { %v1503_v46 = vand.u32 4294901760, %v1502_v61 }
 0x2ec   : > { %1504 = vmatpush.msrb.mxu1 %v1503_v46 }
 0x2ee   : > { %1671 = vmatpush.msra.mxu1 %v8763_v44 }
 0x2f0   : > { %1673 = vmatpush.msra.mxu1 %v8768_v47 }
 0x2f2   : > { %1675 = vmatpush.msra.mxu1 %v8777_v51 }
 0x2f4   : > { %1677 = vmatpush.msra.mxu1 %v8791_v56 }
 0x2f6   : > { %1679 = vmatpush.msra.mxu1 %v8805_v63 }
 0x2f8   : > { %1681 = vmatpush.msra.mxu1 %v8813_v5 }
 0x2fa   : > { %1683 = vmatpush.msra.mxu1 %v8826_v11 }
 0x2fc   : > { %1685 = vmatpush.msra.mxu1 %v8843_v25 }
 0x34c   : > { %v8781_v53 = vpop.xlane.xlu0 %1281 }
 0x34d   : > { %8145 = vrsqrt.f32 %v8781_v53  ;;  %vm1296_vm2 = vcmp.eq.f32.partialorder %v8781_v53, inf  ;;  %v1299_v42 = vand.u32 2147483648, %v8781_v53  ;;  %vm1298_vm7 = vcmp.eq.f32.partialorder %v8781_v53, 0.0 }
 0x353   : > { %v8146_v12 = vpop.eup %8145 }
 0x354   : > { %v1290_v15 = vmul.f32 %v8146_v12, %v8781_v53  ;;  %v8832_v1 = vpop.xlane.xlu1 %1284 }
 0x355   : > { %8147 = vrsqrt.f32 %v8832_v1  ;;  %vm1308_vm8 = vcmp.eq.f32.partialorder %v8832_v1, inf  ;;  %v1311_v57 = vand.u32 2147483648, %v8832_v1  ;;  %vm1310_vm9 = vcmp.eq.f32.partialorder %v8832_v1, 0.0 }
 0x356   : > { %v1291_v19 = vmul.f32 %v8146_v12, %v1290_v15 }
 0x358   : > { %v1292_v26 = vmul.f32 0.5, %v1291_v19 }
 0x35a   : > { %v1293_v31 = vsub.f32 1.5, %v1292_v26 }
 0x35b   : > { %v8148_v34 = vpop.eup %8147 }
 0x35c   : > { %v1294_v36 = vmul.f32 %v8146_v12, %v1293_v31  ;;  %v1302_v37 = vmul.f32 %v8148_v34, %v8832_v1  ;;  %v1288_v38 = vpop.xlane.xlu2 %1287 }
 0x35d   : > { %8149 = vrsqrt.f32 %v1288_v38  ;;  %vm1320_vm10 = vcmp.eq.f32.partialorder %v1288_v38, inf  ;;  %v1323_v6 = vand.u32 2147483648, %v1288_v38  ;;  %vm1322_vm12 = vcmp.eq.f32.partialorder %v1288_v38, 0.0 }
 0x35e   : > { %v1295_v39 = vmul.f32 %v1294_v36, %v8781_v53  ;;  %v1303_v40 = vmul.f32 %v8148_v34, %v1302_v37  ;;  %v8210_v36 = vld [vmem:[%s10244_s1 + $0x8] sm:$0xff] }
 0x360   : > { %v1297_v43 = vsel %vm1296_vm2, %v8781_v53, %v1295_v39  ;;  %v1304_v45 = vmul.f32 0.5, %v1303_v40 }
 0x361   : > { %v1300_v48 = vsel %vm1298_vm7, %v1299_v42, %v1297_v43 }
 0x362   : > { %v1325_v49 = vadd.f32 1e-08, %v1300_v48  ;;  %v1305_v50 = vsub.f32 1.5, %v1304_v45 }
 0x363   : > { %v8150_v52 = vpop.eup %8149 }
 0x364   : > { %8151 = vrcp.f32 %v1325_v49  ;;  %v1306_v14 = vmul.f32 %v8148_v34, %v1305_v50  ;;  %v1314_v54 = vmul.f32 %v8150_v52, %v1288_v38  ;;  %v1339_v4 = vand.u32 2147483648, %v1325_v49 }
 0x365   : > { %v1337_v8 = vand.u32 2147483647, %v1325_v49  ;;  %vm1333_vm13 = vweird.f32 %v1325_v49 }
 0x366   : > { %v1307_v53 = vmul.f32 %v1306_v14, %v8832_v1  ;;  %v1315_v55 = vmul.f32 %v8150_v52, %v1314_v54  ;;  %v1340_v5 = vor.u32 1.1754944e-38, %v1339_v4  ;;  %v8211_v54 = vld [vmem:[%s10244_s1 + $0x10] sm:$0xff]  ;;  %v8111_v4 = vld [vmem:[#allocation8] ss:$0 sm:$0xff] }
 0x367   : > { %vm1338_vm15 = vcmp.eq.f32.partialorder %v1337_v8, 8.507059e+37 }
 0x368   : > { %v1309_v58 = vsel %vm1308_vm8, %v8832_v1, %v1307_v53  ;;  %v1316_v44 = vmul.f32 0.5, %v1315_v55 }
 0x369   : > { %v1312_v59 = vsel %vm1310_vm9, %v1311_v57, %v1309_v58 }
 0x36a   : > { %v8152_v47 = vpop.eup %8151  ;;  %v1326_v60 = vadd.f32 1e-08, %v1312_v59  ;;  %v1317_v62 = vsub.f32 1.5, %v1316_v44 }
 0x36b   : > { %v1329_v0 = vmul.f32 %v8152_v47, %v1325_v49  ;;  %vm1334_vm11 = vweird.f32 %v8152_v47 }
 0x36c   : > { %8153 = vrcp.f32 %v1326_v60  ;;  %v1318_v3 = vmul.f32 %v8150_v52, %v1317_v62  ;;  %vm1335_vm14 = vmor %vm1333_vm13, %vm1334_vm11  ;;  %v1354_v11 = vand.u32 2147483648, %v1326_v60  ;;  %v1352_v20 = vand.u32 2147483647, %v1326_v60 }
 0x36d   : > { %v1330_v28 = vsub.f32 1.0, %v1329_v0  ;;  %vm1348_vm3 = vweird.f32 %v1326_v60 }
 0x36e   : > { %v1319_v51 = vmul.f32 %v1318_v3, %v1288_v38  ;;  %v1355_v26 = vor.u32 1.1754944e-38, %v1354_v11  ;;  %vm1353_vm5 = vcmp.eq.f32.partialorder %v1352_v20, 8.507059e+37 }
 0x36f   : > { %v1331_v7 = vmul.f32 %v8152_v47, %v1330_v28 }
 0x370   : > { %v1321_v56 = vsel %vm1320_vm10, %v1288_v38, %v1319_v51 }
 0x371   : > { %v1324_v9 = vsel %vm1322_vm12, %v1323_v6, %v1321_v56  ;;  %v1332_v10 = vadd.f32 %v8152_v47, %v1331_v7 }
 0x372   : > { %v8154_v63 = vpop.eup %8153  ;;  %v1327_v12 = vadd.f32 1e-08, %v1324_v9 }
 0x373   : > { %v1336_v13 = vsel %vm1335_vm14, %v8152_v47, %v1332_v10  ;;  %v1344_v15 = vmul.f32 %v8154_v63, %v1326_v60  ;;  %vm1349_vm1 = vweird.f32 %v8154_v63 }
 0x374   : > { %8155 = vrcp.f32 %v1327_v12  ;;  %v1341_v1 = vsel %vm1338_vm15, %v1340_v5, %v1336_v13  ;;  %vm1350_vm4 = vmor %vm1348_vm3, %vm1349_vm1  ;;  %v1369_v35 = vand.u32 2147483648, %v1327_v12  ;;  %v1367_v39 = vand.u32 2147483647, %v1327_v12 }
 0x375   : > { %v1342_v16 = vmul.f32 %v1341_v1, %v8748_v21  ;;  %v1345_v17 = vsub.f32 1.0, %v1344_v15  ;;  %vm1363_vm2 = vweird.f32 %v1327_v12 }
 0x376   : > { %vm1368_vm8 = vcmp.eq.f32.partialorder %v1367_v39, 8.507059e+37 }
 0x377   : > { %v1373_v18 = vsub.f32 %v1342_v16, %v8209_v2  ;;  %v1346_v19 = vmul.f32 %v8154_v63, %v1345_v17 }
 0x379   : > { %v1376_v22 = vmul.f32 %v1373_v18, %v1373_v18  ;;  %v1347_v23 = vadd.f32 %v8154_v63, %v1346_v19 }
 0x37a   : > { %v8156_v25 = vpop.eup %8155 }
 0x37b   : > { %v1392_v24 = vsel %vm617_vm0, %v1376_v22, 0  ;;  %v1351_v30 = vsel %vm1350_vm4, %v8154_v63, %v1347_v23  ;;  %v1359_v21 = vmul.f32 %v8156_v25, %v1327_v12  ;;  %vm1364_vm6 = vweird.f32 %v8156_v25 }
 0x37c   : > { %v1424_v27 = vand.u32 4294901760, %v1392_v24  ;;  %v1356_v29 = vsel %vm1353_vm5, %v1355_v26, %v1351_v30  ;;  %vm1365_vm7 = vmor %vm1363_vm2, %vm1364_vm6  ;;  %vm1804_vm5 = vcmask 516096  }
 0x37d   : > { %v1357_v31 = vmul.f32 %v1356_v29, %v8753_v33  ;;  %v1360_v32 = vsub.f32 1.0, %v1359_v21  ;;  %v1370_v33 = vor.u32 1.1754944e-38, %v1369_v35 }
 0x37e   : > { %1506 = vmatmul.f32.vlgmr.msrb.gmra.mxu1 %v1424_v27  ;;  %v1425_v34 = vsub.f32 %v1392_v24, %v1424_v27 }
 0x37f   : > { %v1374_v37 = vsub.f32 %v1357_v31, %v8210_v36  ;;  %v1361_v38 = vmul.f32 %v8156_v25, %v1360_v32 }
 0x380   : > { %1552 = vmatmul.f32.vlgmr.msrb.gmra.mxu2 %v1425_v34  ;;  %v1426_v40 = vand.u32 4294901760, %v1425_v34 }
 0x381   : > { %v1377_v61 = vmul.f32 %v1374_v37, %v1374_v37  ;;  %v1362_v42 = vadd.f32 %v8156_v25, %v1361_v38 }
 0x382   : > { %1593 = vmatmul.f32.vlgmr.msrb.gmra.mxu3 %v1426_v40  ;;  %v1427_v43 = vsub.f32 %v1425_v34, %v1426_v40 }
 0x383   : > { %v1395_v45 = vsel %vm617_vm0, %v1377_v61, 0  ;;  %v1366_v46 = vsel %vm1365_vm7, %v8156_v25, %v1362_v42 }
 0x384   : > { %v1428_v48 = vand.u32 4294901760, %v1427_v43  ;;  %v1432_v49 = vand.u32 4294901760, %v1395_v45  ;;  %v1371_v50 = vsel %vm1368_vm8, %v1370_v33, %v1366_v46  ;;  %v1821_v33 = vld [vmem:[#allocation9 + $0x38] sm:$0xff]  ;;  %v1820_v46 = vld [vmem:[#allocation9 + $0x30] sm:$0xff] }
 0x385   : > { %v1372_v52 = vmul.f32 %v1371_v50, %v8758_v41  ;;  %v1819_v50 = vld [vmem:[#allocation9 + $0x28] sm:$0xff] }
 0x386   : > { %1429 = vmatmul.f32.vlgmr.msrb.gmra.mxu0 %v1428_v48  ;;  %1510 = vmatmul.f32.gmra.mxu1 %v1432_v49  ;;  %v1433_v14 = vsub.f32 %v1395_v45, %v1432_v49  ;;  %v8908_v45 = vand.u32 4294901760, %v1821_v33  ;;  %v8910_v48 = vand.u32 4294901760, %v1820_v46 }
 0x387   : > { %v1375_v53 = vsub.f32 %v1372_v52, %v8211_v54 }
 0x388   : > { %1557 = vmatmul.f32.gmra.mxu2 %v1433_v14  ;;  %v1434_v55 = vand.u32 4294901760, %v1433_v14  ;;  %2010 = vmatpush.msrb.mxu1 %v8908_v45  ;;  %v8918_v52 = vsub.f32 %v1820_v46, %v8910_v48 }
 0x389   : > { %v1378_v57 = vmul.f32 %v1375_v53, %v1375_v53  ;;  %1844 = vmatpush.msra.mxu2 %v8908_v45  ;;  %v1818_v53 = vld [vmem:[#allocation9 + $0x20] sm:$0xff] }
 0x38a   : > { %1599 = vmatmul.f32.gmra.mxu3 %v1434_v55  ;;  %v1435_v58 = vsub.f32 %v1433_v14, %v1434_v55  ;;  %v8920_v14 = vand.u32 4294901760, %v1819_v50  ;;  %2012 = vmatpush.msrb.mxu1 %v8910_v48 }
 0x38b   : > { %v1398_v44 = vsel %vm617_vm0, %v1378_v57, 0  ;;  %v1900_v57 = vand.u32 4294901760, %v8918_v52  ;;  %1846 = vmatpush.msra.mxu2 %v8910_v48 }
 0x38c   : > { %v1436_v59 = vand.u32 4294901760, %v1435_v58  ;;  %v1440_v47 = vand.u32 4294901760, %v1398_v44  ;;  %v8927_v58 = vsub.f32 %v1819_v50, %v8920_v14  ;;  %2014 = vmatpush.msrb.mxu1 %v8920_v14 }
 0x38d   : > { %1848 = vmatpush.msra.mxu2 %v8920_v14 }
 0x38e   : > { %1437 = vmatmul.f32.gmra.mxu0 %v1436_v59  ;;  %1514 = vmatmul.f32.gmra.mxu1 %v1440_v47  ;;  %v1441_v41 = vsub.f32 %v1398_v44, %v1440_v47  ;;  %v8929_v44 = vand.u32 4294901760, %v1818_v53 }
 0x390   : > { %1562 = vmatmul.f32.gmra.mxu2 %v1441_v41  ;;  %v1442_v60 = vand.u32 4294901760, %v1441_v41  ;;  %2016 = vmatpush.msrb.mxu1 %v8929_v44 }
 0x391   : > { %1850 = vmatpush.msra.mxu2 %v8929_v44 }
 0x392   : > { %1605 = vmatmul.f32.gmra.mxu3 %v1442_v60  ;;  %v1443_v62 = vsub.f32 %v1441_v41, %v1442_v60  ;;  %v1817_v60 = vld [vmem:[#allocation9 + $0x18] sm:$0xff] }
 0x394   : > { %v1444_v0 = vand.u32 4294901760, %v1443_v62 }
 0x396   : > { %1445 = vmatmul.f32.gmra.mxu0 %v1444_v0  ;;  %1687 = vmatmul.f32.vlgmr.msra.gmra.mxu1 %v1424_v27 }
 0x39e   : > { %1650 = vmatmul.f32.vlgmr.msra.gmra.mxu0 %v1424_v27  ;;  %1691 = vmatmul.f32.gmra.mxu1 %v1432_v49 }
 0x3a6   : > { %1654 = vmatmul.f32.gmra.mxu0 %v1432_v49  ;;  %1695 = vmatmul.f32.gmra.mxu1 %v1440_v47  ;;  %v8913_v49 = vsub.f32 %v1821_v33, %v8908_v45 }
 0x3a8   : > { %v1894_v54 = vand.u32 4294901760, %v8913_v49  ;;  %1963 = vmatpush.msrb.mxu0 %v8913_v49 }
 0x3aa   : > { %v1895_v41 = vsub.f32 %v8913_v49, %v1894_v54  ;;  %1966 = vmatpush.msrb.mxu0 %v8918_v52 }
 0x3ac   : > { %v1896_v0 = vand.u32 4294901760, %v1895_v41  ;;  %1969 = vmatpush.msrb.mxu0 %v8927_v58 }
 0x3ae   : > { %1658 = vmatmul.f32.gmra.mxu0 %v1440_v47  ;;  %1897 = vmatpush.msra.mxu3 %v1896_v0 }
 0x3fb   : > { %v1507_v3 = vpop.f32.mrf.mxu1 }
 0x403   : > { %v1430_v28 = vpop.f32.mrf.mxu0  ;;  %v1511_v51 = vpop.f32.mrf.mxu1 }
 0x404   : > { %v1431_v7 = vadd.f32 %v8111_v4, %v1430_v28  ;;  %v1553_v56 = vpop.f32.mrf.mxu2  ;;  %v1906_v28 = vand.u32 4294901760, %v8927_v58 }
 0x405   : > { %v1594_v63 = vpop.f32.mrf.mxu3 }
 0x406   : > { %v1508_v9 = vadd.f32 %v1507_v3, %v1431_v7  ;;  %v1901_v3 = vsub.f32 %v8918_v52, %v1900_v57 }
 0x408   : > { %v1554_v12 = vadd.f32 %v1553_v56, %v1508_v9  ;;  %v1902_v56 = vand.u32 4294901760, %v1901_v3  ;;  %v1907_v9 = vsub.f32 %v8927_v58, %v1906_v28 }
 0x40a   : > { %v1595_v15 = vadd.f32 %v1594_v63, %v1554_v12  ;;  %1903 = vmatpush.msra.mxu3 %v1902_v56 }
 0x40b   : > { %v1438_v6 = vpop.f32.mrf.mxu0  ;;  %v1515_v8 = vpop.f32.mrf.mxu1 }
 0x40c   : > { %v1439_v5 = vadd.f32 %v8111_v4, %v1438_v6  ;;  %v1558_v16 = vpop.f32.mrf.mxu2  ;;  %v8951_v6 = vand.u32 4294901760, %v1817_v60 }
 0x40d   : > { %v1600_v20 = vpop.f32.mrf.mxu3 }
 0x40e   : > { %v1512_v1 = vadd.f32 %v1511_v51, %v1439_v5  ;;  %v1816_v51 = vld [vmem:[#allocation9 + $0x10] sm:$0xff]  ;;  %v8961_v12 = vsub.f32 %v1817_v60, %v8951_v6  ;;  %2018 = vmatpush.msrb.mxu1 %v8951_v6  ;;  %1852 = vmatpush.msra.mxu2 %v8951_v6 }
 0x40f   : > { %v8953_v7 = vand.u32 4294901760, %v1816_v51 }
 0x410   : > { %v1559_v2 = vadd.f32 %v1558_v16, %v1512_v1  ;;  %v1908_v1 = vand.u32 4294901760, %v1907_v9  ;;  %v1814_v16 = vld [vmem:[#allocation9] sm:$0xff] }
 0x411   : > { %v8965_v5 = vsub.f32 %v1816_v51, %v8953_v7  ;;  %2020 = vmatpush.msrb.mxu1 %v8953_v7  ;;  %1854 = vmatpush.msra.mxu2 %v8953_v7  ;;  %v2140_v51 = vld [vmem:[#allocation11 + $0x30] sm:$0xff] }
 0x412   : > { %v1601_v23 = vadd.f32 %v1600_v20, %v1559_v2  ;;  %v1918_v2 = vand.u32 4294901760, %v8961_v12  ;;  %1909 = vmatpush.msra.mxu3 %v1908_v1  ;;  %v9056_v9 = vand.u32 4294901760, %v2140_v51 }
 0x413   : > { %v1446_v10 = vpop.f32.mrf.mxu0  ;;  %v1688_v13 = vpop.f32.mrf.mxu1 }
 0x414   : > { %v1447_v18 = vadd.f32 %v8111_v4, %v1446_v10  ;;  %v1563_v27 = vpop.f32.mrf.mxu2  ;;  %v8949_v4 = vsub.f32 %v1818_v53, %v8929_v44  ;;  %v1815_v10 = vld [vmem:[#allocation9 + $0x8] sm:$0xff] }
 0x415   : > { %v1606_v34 = vpop.f32.mrf.mxu3 }
 0x416   : > { %v1516_v25 = vadd.f32 %v1515_v8, %v1447_v18  ;;  %v1912_v63 = vand.u32 4294901760, %v8949_v4  ;;  %1972 = vmatpush.msrb.mxu0 %v8949_v4  ;;  %v1924_v18 = vand.u32 4294901760, %v8965_v5 }
 0x418   : > { %v1564_v29 = vadd.f32 %v1563_v27, %v1516_v25  ;;  %1975 = vmatpush.msrb.mxu0 %v8961_v12  ;;  %v1919_v27 = vsub.f32 %v8961_v12, %v1918_v2 }
 0x41a   : > { %v1607_v35 = vadd.f32 %v1606_v34, %v1564_v29  ;;  %1978 = vmatpush.msrb.mxu0 %v8965_v5 }
 0x41b   : > { %v1651_v17 = vpop.f32.mrf.mxu0  ;;  %v1692_v24 = vpop.f32.mrf.mxu1 }
 0x41c   : > { %v1652_v11 = vadd.f32 %v1651_v17, %v1595_v15 }
 0x41e   : > { %v8890_v19 = vadd.f32 %v1688_v13, %v1652_v11  ;;  %v8967_v13 = vand.u32 4294901760, %v1815_v10  ;;  %v1913_v11 = vsub.f32 %v8949_v4, %v1912_v63 }
 0x420   : > { %v1699_v22 = vmul.f32 %v8890_v19, %v8890_v19  ;;  %v8978_v20 = vsub.f32 %v1815_v10, %v8967_v13  ;;  %2022 = vmatpush.msrb.mxu1 %v8967_v13  ;;  %1856 = vmatpush.msra.mxu2 %v8967_v13  ;;  %v2139_v10 = vld [vmem:[#allocation11 + $0x28] sm:$0xff] }
 0x422   : > { %v1702_v26 = vsel %vm617_vm0, %v1699_v22, 0.0  ;;  %v1930_v34 = vand.u32 4294901760, %v8978_v20  ;;  %1981 = vmatpush.msrb.mxu0 %v8978_v20 }
 0x423   : > { %v1655_v30 = vpop.f32.mrf.mxu0  ;;  %1703 = vadd.xlane.f32.xlu0 %v1702_v26  ;;  %v1696_v39 = vpop.f32.mrf.mxu1  ;;  %v8984_v26 = vand.u32 4294901760, %v1814_v16 }
 0x424   : > { %v1656_v21 = vadd.f32 %v1655_v30, %v1601_v23 }
 0x425   : > { %2024 = vmatpush.msrb.mxu1 %v8984_v26  ;;  %1858 = vmatpush.msra.mxu2 %v8984_v26 }
 0x426   : > { %v8895_v31 = vadd.f32 %v1692_v24, %v1656_v21  ;;  %v1914_v21 = vand.u32 4294901760, %v1913_v11 }
 0x427   : > { %2055 = vmatpush.msrb.mxu2 %v1894_v54 }
 0x428   : > { %v1700_v32 = vmul.f32 %v8895_v31, %v8895_v31  ;;  %1915 = vmatpush.msra.mxu3 %v1914_v21 }
 0x429   : > { %2059 = vmatpush.msrb.mxu2 %v1900_v57  ;;  %v2141_v57 = vld [vmem:[#allocation11 + $0x38] sm:$0xff] }
 0x42a   : > { %v1705_v36 = vsel %vm617_vm0, %v1700_v32, 0.0  ;;  %v1925_v32 = vsub.f32 %v8965_v5, %v1924_v18  ;;  %v9036_v0 = vand.u32 4294901760, %v2141_v57  ;;  %v2138_v5 = vld [vmem:[#allocation11 + $0x20] sm:$0xff] }
 0x42b   : > { %v1659_v37 = vpop.f32.mrf.mxu0  ;;  %1706 = vadd.xlane.f32.xlu1 %v1705_v36  ;;  %2063 = vmatpush.msrb.mxu2 %v1906_v28  ;;  %v9076_v11 = vand.u32 4294901760, %v2138_v5 }
 0x42c   : > { %v1660_v38 = vadd.f32 %v1659_v37, %v1607_v35  ;;  %v9002_v35 = vsub.f32 %v1814_v16, %v8984_v26  ;;  %v9067_v16 = vand.u32 4294901760, %v2139_v10 }
 0x42d   : > { %2067 = vmatpush.msrb.mxu2 %v1912_v63  ;;  %v9095_v21 = vsub.f32 %v2138_v5, %v9076_v11 }
 0x42e   : > { %v8900_v40 = vadd.f32 %v1696_v39, %v1660_v38  ;;  %v1920_v38 = vand.u32 4294901760, %v1919_v27  ;;  %v1936_v33 = vand.u32 4294901760, %v9002_v35  ;;  %1984 = vmatpush.msrb.mxu0 %v9002_v35 }
 0x42f   : > { %2071 = vmatpush.msrb.mxu2 %v1918_v2 }
 0x430   : > { %v1701_v61 = vmul.f32 %v8900_v40, %v8900_v40  ;;  %1921 = vmatpush.msra.mxu3 %v1920_v38  ;;  %2155 = vmatpush.msra.mxu0 %v9036_v0  ;;  %v2223_v38 = vand.u32 4294901760, %v9095_v21 }
 0x431   : > { %2075 = vmatpush.msrb.mxu2 %v1924_v18 }
 0x432   : > { %v1708_v42 = vsel %vm617_vm0, %v1701_v61, 0.0  ;;  %v1926_v61 = vand.u32 4294901760, %v1925_v32  ;;  %2157 = vmatpush.msra.mxu0 %v9056_v9 }
 0x433   : > { %1709 = vadd.xlane.f32.xlu2 %v1708_v42  ;;  %v1931_v42 = vsub.f32 %v8978_v20, %v1930_v34  ;;  %2079 = vmatpush.msrb.mxu2 %v1930_v34 }
 0x434   : > { %1927 = vmatpush.msra.mxu3 %v1926_v61  ;;  %2159 = vmatpush.msra.mxu0 %v9067_v16 }
 0x435   : > { %v1932_v53 = vand.u32 4294901760, %v1931_v42  ;;  %2083 = vmatpush.msrb.mxu2 %v1936_v33 }
 0x436   : > { %2161 = vmatpush.msra.mxu0 %v9076_v11 }
 0x437   : > { %1933 = vmatpush.msra.mxu3 %v1932_v53  ;;  %v2135_v53 = vld [vmem:[#allocation11 + $0x8] sm:$0xff] }
 0x496   : > { %v8905_v43 = vpop.xlane.xlu0 %1703 }
 0x497   : > { %8157 = vrsqrt.f32 %v8905_v43  ;;  %vm1718_vm9 = vcmp.eq.f32.partialorder %v8905_v43, inf  ;;  %v1721_v29 = vand.u32 2147483648, %v8905_v43  ;;  %vm1720_vm10 = vcmp.eq.f32.partialorder %v8905_v43, 0.0 }
 0x49d   : > { %v8158_v55 = vpop.eup %8157 }
 0x49e   : > { %v1712_v59 = vmul.f32 %v8158_v55, %v8905_v43  ;;  %v8933_v47 = vpop.xlane.xlu1 %1706 }
 0x49f   : > { %8159 = vrsqrt.f32 %v8933_v47  ;;  %vm1730_vm11 = vcmp.eq.f32.partialorder %v8933_v47, inf  ;;  %v1733_v52 = vand.u32 2147483648, %v8933_v47  ;;  %vm1732_vm12 = vcmp.eq.f32.partialorder %v8933_v47, 0.0 }
 0x4a0   : > { %v1713_v62 = vmul.f32 %v8158_v55, %v1712_v59 }
 0x4a2   : > { %v1714_v8 = vmul.f32 0.5, %v1713_v62 }
 0x4a4   : > { %v1715_v15 = vsub.f32 1.5, %v1714_v8 }
 0x4a5   : > { %v8160_v17 = vpop.eup %8159 }
 0x4a6   : > { %v1716_v22 = vmul.f32 %v8158_v55, %v1715_v15  ;;  %v1724_v23 = vmul.f32 %v8160_v17, %v8933_v47  ;;  %v8982_v25 = vpop.xlane.xlu2 %1709  ;;  %v1937_v55 = vsub.f32 %v9002_v35, %v1936_v33  ;;  %v9123_v33 = vld [vmem:[%s605_s13] sm:$0x7] }
 0x4a7   : > { %8161 = vrsqrt.f32 %v8982_v25  ;;  %vm1742_vm13 = vcmp.eq.f32.partialorder %v8982_v25, inf  ;;  %vm1744_vm14 = vcmp.eq.f32.partialorder %v8982_v25, 0.0 }
 0x4a8   : > { %v1717_v24 = vmul.f32 %v1716_v22, %v8905_v43  ;;  %v1725_v30 = vmul.f32 %v8160_v17, %v1724_v23  ;;  %v1938_v54 = vand.u32 4294901760, %v1937_v55  ;;  %v9088_v22 = vsub.f32 %v2139_v10, %v9067_v16 }
 0x4aa   : > { %v1719_v36 = vsel %vm1718_vm9, %v8905_v43, %v1717_v24  ;;  %v1726_v37 = vmul.f32 0.5, %v1725_v30  ;;  %1939 = vmatpush.msra.mxu3 %v1938_v54 }
 0x4ab   : > { %v1722_v39 = vsel %vm1720_vm10, %v1721_v29, %v1719_v36 }
 0x4ac   : > { %v9016_v43 = vadd.f32 1e-08, %v1722_v39  ;;  %v1727_v46 = vsub.f32 1.5, %v1726_v37  ;;  %2106 = vmatpush.msrb.mxu3 %v8908_v45 }
 0x4ad   : > { %v8162_v50 = vpop.eup %8161 }
 0x4ae   : > { %8163 = vrcp.f32 %v9016_v43  ;;  %v1728_v59 = vmul.f32 %v8160_v17, %v1727_v46  ;;  %v1736_v49 = vmul.f32 %v8162_v50, %v8982_v25  ;;  %2108 = vmatpush.msrb.mxu3 %v8910_v48  ;;  %v1759_v45 = vand.u32 2147483647, %v9016_v43 }
 0x4af   : > { %v1761_v12 = vand.u32 2147483648, %v9016_v43  ;;  %v1745_v48 = vand.u32 2147483648, %v8982_v25  ;;  %vm1755_vm15 = vweird.f32 %v9016_v43 }
 0x4b0   : > { %v1729_v41 = vmul.f32 %v1728_v59, %v8933_v47  ;;  %v1737_v60 = vmul.f32 %v8162_v50, %v1736_v49  ;;  %2110 = vmatpush.msrb.mxu3 %v8920_v14  ;;  %v9074_v14 = vsub.f32 %v2140_v51, %v9056_v9  ;;  %vm9078_vm3 = vcmp.eq.f32.partialorder %v1759_v45, 8.507059e+37  ;;  %v2134_v49 = vld [vmem:[#allocation11] sm:$0xff] }
 0x4b1   : > { %v1762_v24 = vor.u32 1.1754944e-38, %v1761_v12  ;;  %v1800_v12 = vrot.slane %v9123_v33, 1 }
 0x4b2   : > { %v1731_v62 = vsel %vm1730_vm11, %v8933_v47, %v1729_v41  ;;  %v1738_v58 = vmul.f32 0.5, %v1737_v60  ;;  %v9054_v47 = vsub.f32 %v2141_v57, %v9036_v0  ;;  %2112 = vmatpush.msrb.mxu3 %v8929_v44  ;;  %v2137_v44 = vld [vmem:[#allocation11 + $0x18] sm:$0xff]  ;;  %v2211_v30 = vand.u32 4294901760, %v9074_v14 }
 0x4b3   : > { %v1734_v28 = vsel %vm1732_vm12, %v1733_v52, %v1731_v62  ;;  %v9108_v32 = vand.u32 4294901760, %v2137_v44  ;;  %v9145_v57 = vand.u32 4294901760, %v2135_v53 }
 0x4b4   : > { %v8164_v3 = vpop.eup %8163  ;;  %v9046_v8 = vadd.f32 1e-08, %v1734_v28  ;;  %v1739_v56 = vsub.f32 1.5, %v1738_v58  ;;  %v2205_v1 = vand.u32 4294901760, %v9054_v47  ;;  %2114 = vmatpush.msrb.mxu3 %v8951_v6  ;;  %v2217_v6 = vand.u32 4294901760, %v9088_v22 }
 0x4b5   : > { %v1751_v4 = vmul.f32 %v8164_v3, %v9016_v43  ;;  %vm1756_vm1 = vweird.f32 %v8164_v3  ;;  %v2212_v37 = vsub.f32 %v9074_v14, %v2211_v30  ;;  %2163 = vmatpush.msra.mxu0 %v9108_v32  ;;  %v9143_v52 = vsub.f32 %v2137_v44, %v9108_v32 }
 0x4b6   : > { %8165 = vrcp.f32 %v9046_v8  ;;  %v1740_v15 = vmul.f32 %v8162_v50, %v1739_v56  ;;  %v2206_v20 = vsub.f32 %v9054_v47, %v2205_v1  ;;  %vm1757_vm4 = vmor %vm1755_vm15, %vm1756_vm1  ;;  %2116 = vmatpush.msrb.mxu3 %v8953_v7  ;;  %v2218_v7 = vsub.f32 %v9088_v22, %v2217_v6 }
 0x4b7   : > { %v1752_v63 = vsub.f32 1.0, %v1751_v4  ;;  %v2213_v46 = vand.u32 4294901760, %v2212_v37  ;;  %v2224_v50 = vsub.f32 %v9095_v21, %v2223_v38  ;;  %v1774_v59 = vand.u32 2147483647, %v9046_v8 }
 0x4b8   : > { %v1741_v18 = vmul.f32 %v1740_v15, %v8982_v25  ;;  %v2207_v29 = vand.u32 4294901760, %v2206_v20  ;;  %2118 = vmatpush.msrb.mxu3 %v8967_v13  ;;  %v2219_v54 = vand.u32 4294901760, %v2218_v7  ;;  %v9151_v58 = vand.u32 4294901760, %v2134_v49 }
 0x4b9   : > { %v1753_v17 = vmul.f32 %v8164_v3, %v1752_v63  ;;  %v2225_v41 = vand.u32 4294901760, %v2224_v50  ;;  %vm1770_vm2 = vweird.f32 %v9046_v8  ;;  %v9156_v28 = vsub.f32 %v2135_v53, %v9145_v57 }
 0x4ba   : > { %v1743_v27 = vsel %vm1742_vm13, %v8982_v25, %v1741_v18  ;;  %2208 = vmatpush.msra.mxu1 %v2207_v29  ;;  %v2136_v25 = vld [vmem:[#allocation11 + $0x10] sm:$0xff]  ;;  %2120 = vmatpush.msrb.mxu3 %v8984_v26  ;;  %v2229_v26 = vand.u32 4294901760, %v9143_v52  ;;  %v9161_v56 = vsub.f32 %v2134_v49, %v9151_v58  ;;  %vm1775_vm8 = vcmp.eq.f32.partialorder %v1774_v59, 8.507059e+37 }
 0x4bb   : > { %v1754_v23 = vadd.f32 %v8164_v3, %v1753_v17  ;;  %v1746_v36 = vsel %vm1744_vm14, %v1745_v48, %v1743_v27  ;;  %v9137_v60 = vand.u32 4294901760, %v2136_v25  ;;  %v2241_v63 = vand.u32 4294901760, %v9156_v28 }
 0x4bc   : > { %v8166_v34 = vpop.eup %8165  ;;  %v9120_v42 = vadd.f32 1e-08, %v1746_v36  ;;  %2214 = vmatpush.msra.mxu1 %v2213_v46  ;;  %v2247_v20 = vand.u32 4294901760, %v9161_v56  ;;  %v1801_v50 = vrot.slane %v9123_v33, 2  ;;  %vm2906_vm14 = vcmask 64512  }
 0x4bd   : > { %v1758_v35 = vsel %vm1757_vm4, %v8164_v3, %v1754_v23  ;;  %v1766_v61 = vmul.f32 %v8166_v34, %v9046_v8  ;;  %vm1771_vm6 = vweird.f32 %v8166_v34  ;;  %2165 = vmatpush.msra.mxu0 %v9137_v60  ;;  %v9149_v62 = vsub.f32 %v2136_v25, %v9137_v60 }
 0x4be   : > { %v1763_v39 = vsel %vm9078_vm3, %v1762_v24, %v1758_v35  ;;  %8167 = vrcp.f32 %v9120_v42  ;;  %2220 = vmatpush.msra.mxu1 %v2219_v54  ;;  %vm1772_vm7 = vmor %vm1770_vm2, %vm1771_vm6  ;;  %v2242_v18 = vsub.f32 %v9156_v28, %v2241_v63  ;;  %v1791_v27 = vand.u32 2147483648, %v9120_v42 }
 0x4bf   : > { %v1764_v43 = vmul.f32 %v1763_v39, %v8890_v19  ;;  %v1767_v55 = vsub.f32 1.0, %v1766_v61  ;;  %v1776_v19 = vand.u32 2147483648, %v9046_v8  ;;  %2167 = vmatpush.msra.mxu0 %v9145_v57  ;;  %v2235_v4 = vand.u32 4294901760, %v9149_v62 }
 0x4c0   : > { %2226 = vmatpush.msra.mxu1 %v2225_v41  ;;  %v2230_v8 = vsub.f32 %v9143_v52, %v2229_v26  ;;  %v1789_v36 = vand.u32 2147483647, %v9120_v42  ;;  %vm1785_vm10 = vweird.f32 %v9120_v42 }
 0x4c1   : > { %1795 = vst.msk [vmem:[#allocation2] sm:$0xff] %vm617_vm0, %v1764_v43  ;;  %v1768_v13 = vmul.f32 %v8166_v34, %v1767_v55  ;;  %v1777_v51 = vor.u32 1.1754944e-38, %v1776_v19  ;;  %v2236_v5 = vsub.f32 %v9149_v62, %v2235_v4  ;;  %2169 = vmatpush.msra.mxu0 %v9151_v58  ;;  %v1792_v43 = vor.u32 1.1754944e-38, %v1791_v27 }
 0x4c2   : > { %1805 = vst.msk [vmem:[#allocation2 + $0x6] sm:$0x1] %vm1804_vm5, %v9123_v33  ;;  %v2231_v2 = vand.u32 4294901760, %v2230_v8  ;;  %vm1790_vm12 = vcmp.eq.f32.partialorder %v1789_v36, 8.507059e+37 }
 0x4c3   : > { %v1769_v3 = vadd.f32 %v8166_v34, %v1768_v13  ;;  %v2237_v24 = vand.u32 4294901760, %v2236_v5 }
 0x4c4   : > { %v8168_v45 = vpop.eup %8167  ;;  %2232 = vmatpush.msra.mxu1 %v2231_v2 }
 0x4c5   : > { %v1773_v10 = vsel %vm1772_vm7, %v8166_v34, %v1769_v3  ;;  %v1781_v15 = vmul.f32 %v8168_v45, %v9120_v42  ;;  %v2248_v34 = vsub.f32 %v9161_v56, %v2247_v20  ;;  %vm1786_vm9 = vweird.f32 %v8168_v45  ;;  %v8112_v3 = vld [vmem:[%s10249_s6] ss:$0 sm:$0xff] }
 0x4c6   : > { %v1778_v48 = vsel %vm1775_vm8, %v1777_v51, %v1773_v10  ;;  %2238 = vmatpush.msra.mxu1 %v2237_v24  ;;  %vm1787_vm11 = vmor %vm1785_vm10, %vm1786_vm9 }
 0x4c7   : > { %v1779_v17 = vmul.f32 %v1778_v48, %v8895_v31  ;;  %v1782_v44 = vsub.f32 1.0, %v1781_v15  ;;  %v2243_v31 = vand.u32 4294901760, %v2242_v18  ;;  %v2249_v39 = vand.u32 4294901760, %v2248_v34 }
 0x4c9   : > { %v9178_v23 = vld [vmem:[#allocation2] sm:$0xff]  ;;  %1796 = vst.msk [vmem:[#allocation2 + $0x8] sm:$0xff] %vm617_vm0, %v1779_v17  ;;  %v1783_v35 = vmul.f32 %v8168_v45, %v1782_v44  ;;  %2244 = vmatpush.msra.mxu1 %v2243_v31 }
 0x4ca   : > { %v1827_v29 = vsel %vm617_vm0, %v9178_v23, 0  ;;  %1806 = vst.msk [vmem:[#allocation2 + $0xe] sm:$0x1] %vm1804_vm5, %v1800_v12 }
 0x4cb   : > { %v9189_v37 = vand.u32 4294901760, %v1827_v29  ;;  %v1784_v61 = vadd.f32 %v8168_v45, %v1783_v35  ;;  %2250 = vmatpush.msra.mxu1 %v2249_v39 }
 0x4cd   : > { %1941 = vmatmul.f32.vlgmr.msra.gmra.mxu3 %v9189_v37  ;;  %v9194_v25 = vsub.f32 %v1827_v29, %v9189_v37  ;;  %v1788_v46 = vsel %vm1787_vm11, %v8168_v45, %v1784_v61  ;;  %v8113_v29 = vld [vmem:[%s10251_s8] ss:$0 sm:$0xff] }
 0x4ce   : > { %2321 = vmatpush.msra.mxu3 %v9036_v0  ;;  %v1793_v42 = vsel %vm1790_vm12, %v1792_v43, %v1788_v46 }
 0x4cf   : > { %1987 = vmatmul.f32.vlgmr.msrb.gmra.mxu0 %v9194_v25  ;;  %v9199_v7 = vand.u32 4294901760, %v9194_v25  ;;  %v1794_v53 = vmul.f32 %v1793_v42, %v8900_v40 }
 0x4d0   : > { %2323 = vmatpush.msra.mxu3 %v9056_v9  ;;  %2366 = vmatpush.msrb.mxu0 %v2205_v1 }
 0x4d1   : > { %2028 = vmatmul.f32.vlgmr.msrb.gmra.mxu1 %v9199_v7  ;;  %v1862_v55 = vsub.f32 %v9194_v25, %v9199_v7  ;;  %v9209_v59 = vld [vmem:[#allocation2 + $0x8] sm:$0xff]  ;;  %1797 = vst.msk [vmem:[#allocation2 + $0x10] sm:$0xff] %vm617_vm0, %v1794_v53 }
 0x4d2   : > { %2325 = vmatpush.msra.mxu3 %v9067_v16  ;;  %2417 = vmatpush.msrb.mxu1 %v9036_v0  ;;  %v1830_v40 = vsel %vm617_vm0, %v9209_v59, 0  ;;  %1807 = vst.msk [vmem:[#allocation2 + $0x16] sm:$0x1] %vm1804_vm5, %v1801_v50 }
 0x4d3   : > { %v1863_v33 = vand.u32 4294901760, %v1862_v55  ;;  %2370 = vmatpush.msrb.mxu0 %v2211_v30  ;;  %v9219_v49 = vand.u32 4294901760, %v1830_v40 }
 0x4d4   : > { %2327 = vmatpush.msra.mxu3 %v9076_v11  ;;  %2419 = vmatpush.msrb.mxu1 %v9056_v9 }
 0x4d5   : > { %1864 = vmatmul.f32.vlgmr.msra.gmra.mxu2 %v1863_v33  ;;  %2374 = vmatpush.msrb.mxu0 %v2217_v6  ;;  %v1868_v0 = vsub.f32 %v1830_v40, %v9219_v49 }
 0x4d6   : > { %1945 = vmatmul.f32.gmra.mxu3 %v9219_v49  ;;  %2274 = vmatpush.msra.mxu2 %v9054_v47 }
 0x4d7   : > { %2329 = vmatpush.msra.mxu3 %v9108_v32  ;;  %2378 = vmatpush.msrb.mxu0 %v2223_v38  ;;  %v1869_v1 = vand.u32 4294901760, %v1868_v0 }
 0x4d8   : > { %1992 = vmatmul.f32.gmra.mxu0 %v1868_v0  ;;  %2421 = vmatpush.msrb.mxu1 %v9067_v16 }
 0x4d9   : > { %2277 = vmatpush.msra.mxu2 %v9074_v14  ;;  %2331 = vmatpush.msra.mxu3 %v9137_v60  ;;  %v1870_v9 = vsub.f32 %v1868_v0, %v1869_v1  ;;  %v9236_v30 = vld [vmem:[#allocation2 + $0x10] sm:$0xff] }
 0x4da   : > { %2034 = vmatmul.f32.gmra.mxu1 %v1869_v1  ;;  %2382 = vmatpush.msrb.mxu0 %v2229_v26  ;;  %v1833_v6 = vsel %vm617_vm0, %v9236_v30, 0 }
 0x4db   : > { %2423 = vmatpush.msrb.mxu1 %v9076_v11  ;;  %2280 = vmatpush.msra.mxu2 %v9088_v22  ;;  %v1871_v47 = vand.u32 4294901760, %v1870_v9  ;;  %v1875_v16 = vand.u32 4294901760, %v1833_v6 }
 0x4dc   : > { %2333 = vmatpush.msra.mxu3 %v9145_v57  ;;  %2386 = vmatpush.msrb.mxu0 %v2235_v4 }
 0x4dd   : > { %2425 = vmatpush.msrb.mxu1 %v9108_v32  ;;  %2283 = vmatpush.msra.mxu2 %v9095_v21  ;;  %v1876_v14 = vsub.f32 %v1833_v6, %v1875_v16 }
 0x4de   : > { %1872 = vmatmul.f32.gmra.mxu2 %v1871_v47  ;;  %2335 = vmatpush.msra.mxu3 %v9151_v58 }
 0x4df   : > { %1949 = vmatmul.f32.gmra.mxu3 %v1875_v16  ;;  %2390 = vmatpush.msrb.mxu0 %v2241_v63  ;;  %v1877_v11 = vand.u32 4294901760, %v1876_v14 }
 0x4e0   : > { %2427 = vmatpush.msrb.mxu1 %v9137_v60  ;;  %2286 = vmatpush.msra.mxu2 %v9143_v52 }
 0x4e1   : > { %1997 = vmatmul.f32.gmra.mxu0 %v1876_v14  ;;  %v1878_v22 = vsub.f32 %v1876_v14, %v1877_v11 }
 0x4e2   : > { %2394 = vmatpush.msrb.mxu0 %v2247_v20  ;;  %2429 = vmatpush.msrb.mxu1 %v9145_v57 }
 0x4e3   : > { %2040 = vmatmul.f32.gmra.mxu1 %v1877_v11  ;;  %2289 = vmatpush.msra.mxu2 %v9149_v62  ;;  %v1879_v21 = vand.u32 4294901760, %v1878_v22 }
 0x4e4   : > { %2431 = vmatpush.msrb.mxu1 %v9151_v58 }
 0x4e5   : > { %2292 = vmatpush.msra.mxu2 %v9156_v28 }
 0x4e6   : > { %1880 = vmatmul.f32.gmra.mxu2 %v1879_v21 }
 0x4e7   : > { %2122 = vmatmul.f32.vlgmr.msrb.gmra.mxu3 %v9189_v37  ;;  %2295 = vmatpush.msra.mxu2 %v9161_v56 }
 0x4e9   : > { %2175 = vmatmul.f32.vlgmr.msra.gmra.mxu0 %v1863_v33 }
 0x4eb   : > { %2252 = vmatmul.f32.vlgmr.msra.gmra.mxu1 %v9189_v37 }
 0x4ee   : > { %2085 = vmatmul.f32.vlgmr.msrb.gmra.mxu2 %v9189_v37 }
 0x4ef   : > { %2126 = vmatmul.f32.gmra.mxu3 %v9219_v49 }
 0x4f1   : > { %2183 = vmatmul.f32.gmra.mxu0 %v1871_v47 }
 0x4f3   : > { %2256 = vmatmul.f32.gmra.mxu1 %v9219_v49 }
 0x4f6   : > { %2089 = vmatmul.f32.gmra.mxu2 %v9219_v49 }
 0x4f7   : > { %2130 = vmatmul.f32.gmra.mxu3 %v1875_v16 }
 0x4f9   : > { %2191 = vmatmul.f32.gmra.mxu0 %v1879_v21 }
 0x4fb   : > { %2260 = vmatmul.f32.gmra.mxu1 %v1875_v16 }
 0x4fe   : > { %2093 = vmatmul.f32.gmra.mxu2 %v1875_v16 }
 0x4ff   : > { %2339 = vmatmul.f32.vlgmr.msra.gmra.mxu3 %v9199_v7 }
 0x501   : > { %2396 = vmatmul.f32.vlgmr.msrb.gmra.mxu0 %v9189_v37 }
 0x503   : > { %2433 = vmatmul.f32.vlgmr.msrb.gmra.mxu1 %v9189_v37 }
 0x506   : > { %2298 = vmatmul.f32.vlgmr.msra.gmra.mxu2 %v9194_v25 }
 0x507   : > { %2345 = vmatmul.f32.gmra.mxu3 %v1869_v1 }
 0x509   : > { %2400 = vmatmul.f32.gmra.mxu0 %v9219_v49 }
 0x50b   : > { %2437 = vmatmul.f32.gmra.mxu1 %v9219_v49 }
 0x50e   : > { %2303 = vmatmul.f32.gmra.mxu2 %v1868_v0 }
 0x50f   : > { %2351 = vmatmul.f32.gmra.mxu3 %v1877_v11 }
 0x511   : > { %2404 = vmatmul.f32.gmra.mxu0 %v1875_v16 }
 0x513   : > { %2441 = vmatmul.f32.gmra.mxu1 %v1875_v16 }
 0x516   : > { %2308 = vmatmul.f32.gmra.mxu2 %v1876_v14 }
 0x54c   : > { %v1988_v32 = vpop.f32.mrf.mxu0 }
 0x54e   : > { %v2029_v38 = vpop.f32.mrf.mxu1 }
 0x550   : > { %v1942_v19 = vpop.f32.mrf.mxu3 }
 0x555   : > { %v1993_v54 = vpop.f32.mrf.mxu0 }
 0x557   : > { %v2035_v13 = vpop.f32.mrf.mxu1 }
 0x558   : > { %v1865_v41 = vpop.f32.mrf.mxu2 }
 0x559   : > { %v1946_v60 = vpop.f32.mrf.mxu3  ;;  %v1866_v4 = vadd.f32 %v8112_v3, %v1865_v41 }
 0x55b   : > { %v1943_v45 = vadd.f32 %v1942_v19, %v1866_v4 }
 0x55d   : > { %v1989_v12 = vadd.f32 %v1988_v32, %v1943_v45 }
 0x55e   : > { %v1998_v57 = vpop.f32.mrf.mxu0 }
 0x55f   : > { %v2030_v5 = vadd.f32 %v2029_v38, %v1989_v12 }
 0x560   : > { %v9271_v58 = vpop.f32.mrf.mxu1 }
 0x561   : > { %v1873_v52 = vpop.f32.mrf.mxu2 }
 0x562   : > { %v1950_v62 = vpop.f32.mrf.mxu3  ;;  %v1874_v48 = vadd.f32 %v8112_v3, %v1873_v52 }
 0x564   : > { %v1947_v2 = vadd.f32 %v1946_v60, %v1874_v48 }
 0x566   : > { %v2176_v51 = vpop.f32.mrf.mxu0  ;;  %v1994_v44 = vadd.f32 %v1993_v54, %v1947_v2 }
 0x567   : > { %v2177_v37 = vadd.f32 %v8113_v29, %v2176_v51 }
 0x568   : > { %v2253_v56 = vpop.f32.mrf.mxu1  ;;  %v2036_v35 = vadd.f32 %v2035_v13, %v1994_v44 }
 0x569   : > { %v1881_v26 = vpop.f32.mrf.mxu2  ;;  %v2254_v43 = vadd.f32 %v2253_v56, %v2177_v37  ;;  %v2997_v37 = vand.u32 4294901760, %v9178_v23 }
 0x56a   : > { %v2123_v28 = vpop.f32.mrf.mxu3  ;;  %v1882_v0 = vadd.f32 %v8112_v3, %v1881_v26 }
 0x56c   : > { %v1951_v14 = vadd.f32 %v1950_v62, %v1882_v0 }
 0x56e   : > { %v2184_v63 = vpop.f32.mrf.mxu0  ;;  %v1999_v52 = vadd.f32 %v1998_v57, %v1951_v14 }
 0x56f   : > { %v2185_v33 = vadd.f32 %v8113_v29, %v2184_v63 }
 0x570   : > { %v2257_v15 = vpop.f32.mrf.mxu1 }
 0x571   : > { %v2086_v10 = vpop.f32.mrf.mxu2  ;;  %v2258_v6 = vadd.f32 %v2257_v15, %v2185_v33 }
 0x572   : > { %v2127_v8 = vpop.f32.mrf.mxu3  ;;  %v2087_v18 = vadd.f32 %v2086_v10, %v2030_v5  ;;  %v2042_v10 = vadd.f32 %v9271_v58, %v1999_v52 }
 0x574   : > { %v2124_v24 = vadd.f32 %v2123_v28, %v2087_v18 }
 0x576   : > { %v2192_v27 = vpop.f32.mrf.mxu0  ;;  %v2446_v36 = vsel %vm617_vm0, %v2124_v24, 0 }
 0x577   : > { %v9282_v61 = vand.u32 4294901760, %v2446_v36  ;;  %v2193_v60 = vadd.f32 %v8113_v29, %v2192_v27 }
 0x578   : > { %v2261_v31 = vpop.f32.mrf.mxu1 }
 0x579   : > { %v2090_v17 = vpop.f32.mrf.mxu2  ;;  %v9285_v42 = vsub.f32 %v2446_v36, %v9282_v61  ;;  %v2262_v56 = vadd.f32 %v2261_v31, %v2193_v60 }
 0x57a   : > { %v9276_v20 = vpop.f32.mrf.mxu3  ;;  %v2091_v39 = vadd.f32 %v2090_v17, %v2036_v35 }
 0x57b   : > { %v2470_v9 = vand.u32 4294901760, %v9285_v42 }
 0x57c   : > { %v2128_v46 = vadd.f32 %v2127_v8, %v2091_v39 }
 0x57d   : > { %v2471_v38 = vsub.f32 %v9285_v42, %v2470_v9 }
 0x57e   : > { %v2397_v7 = vpop.f32.mrf.mxu0  ;;  %v2598_v40 = vsel %vm617_vm0, %v2128_v46, 0 }
 0x57f   : > { %v9289_v47 = vand.u32 4294901760, %v2598_v40  ;;  %v2472_v28 = vand.u32 4294901760, %v2471_v38 }
 0x580   : > { %v2434_v55 = vpop.f32.mrf.mxu1 }
 0x581   : > { %v2094_v34 = vpop.f32.mrf.mxu2  ;;  %v9296_v19 = vsub.f32 %v2598_v40, %v9289_v47 }
 0x582   : > { %v2340_v25 = vpop.f32.mrf.mxu3  ;;  %v2095_v15 = vadd.f32 %v2094_v34, %v2042_v10 }
 0x583   : > { %v2622_v51 = vand.u32 4294901760, %v9296_v19 }
 0x584   : > { %v2132_v29 = vadd.f32 %v9276_v20, %v2095_v15 }
 0x585   : > { %v2623_v48 = vsub.f32 %v9296_v19, %v2622_v51 }
 0x586   : > { %v2401_v54 = vpop.f32.mrf.mxu0 }
 0x587   : > { %v2624_v27 = vand.u32 4294901760, %v2623_v48 }
 0x588   : > { %v2438_v3 = vpop.f32.mrf.mxu1 }
 0x589   : > { %v2299_v50 = vpop.f32.mrf.mxu2 }
 0x58a   : > { %v2300_v53 = vadd.f32 %v2299_v50, %v2254_v43  ;;  %v2346_v11 = vpop.f32.mrf.mxu3 }
 0x58c   : > { %v2341_v49 = vadd.f32 %v2340_v25, %v2300_v53  ;;  %v2750_v25 = vsel %vm617_vm0, %v2132_v29, 0 }
 0x58d   : > { %v2772_v50 = vand.u32 4294901760, %v2750_v25 }
 0x58e   : > { %v2398_v1 = vadd.f32 %v2397_v7, %v2341_v49  ;;  %v2405_v44 = vpop.f32.mrf.mxu0  ;;  %v3024_v7 = vsub.f32 %v9178_v23, %v2997_v37 }
 0x58f   : > { %v2773_v33 = vsub.f32 %v2750_v25, %v2772_v50 }
 0x590   : > { %v2435_v16 = vadd.f32 %v2434_v55, %v2398_v1  ;;  %v2442_v31 = vpop.f32.mrf.mxu1  ;;  %v3025_v55 = vand.u32 4294901760, %v3024_v7 }
 0x591   : > { %v2304_v22 = vpop.f32.mrf.mxu2  ;;  %v2774_v49 = vand.u32 4294901760, %v2773_v33 }
 0x592   : > { %v2305_v21 = vadd.f32 %v2304_v22, %v2258_v6  ;;  %v2449_v32 = vsel %vm617_vm0, %v2435_v16, 0  ;;  %v2352_v5 = vpop.f32.mrf.mxu3  ;;  %v3026_v40 = vsub.f32 %v3024_v7, %v3025_v55  ;;  %v9320_v6 = vand.u32 4294901760, %v9209_v59 }
 0x593   : > { %v2466_v41 = vand.u32 4294901760, %v2449_v32  ;;  %v2775_v1 = vsub.f32 %v2773_v33, %v2774_v49 }
 0x594   : > { %v2347_v13 = vadd.f32 %v2346_v11, %v2305_v21 }
 0x595   : > { %2467 = vmatpush.xpose.msrb.mxu2 %v2466_v41  ;;  %v2493_v62 = vsub.f32 %v2449_v32, %v2466_v41 }
 0x596   : > { %v2402_v26 = vadd.f32 %v2401_v54, %v2347_v13 }
 0x597   : > { %v2494_v4 = vand.u32 4294901760, %v2493_v62 }
 0x598   : > { %v2439_v45 = vadd.f32 %v2438_v3, %v2402_v26  ;;  %2473 = vmatmul.f32.vlgmr.msrb.gmra.mxu2 %v2472_v28 }
 0x599   : > { %2520 = vmatpush.xpose.msra.mxu2 %v2493_v62  ;;  %v2309_v8 = vpop.f32.mrf.mxu2  ;;  %v2495_v63 = vsub.f32 %v2493_v62, %v2494_v4 }
 0x59a   : > { %v2310_v12 = vadd.f32 %v2309_v8, %v2262_v56  ;;  %v2601_v57 = vsel %vm617_vm0, %v2439_v45, 0 }
 0x59b   : > { %v2496_v17 = vand.u32 4294901760, %v2495_v63  ;;  %v2618_v2 = vand.u32 4294901760, %v2601_v57 }
 0x59c   : > { %v2353_v18 = vadd.f32 %v2352_v5, %v2310_v12 }
 0x59d   : > { %2569 = vmatpush.xpose.msrb.mxu2 %v2494_v4  ;;  %2497 = vmatpush.xpose.msrb.mxu3 %v2496_v17  ;;  %v2645_v24 = vsub.f32 %v2601_v57, %v2618_v2 }
 0x59e   : > { %2619 = vmatpush.xpose.msra.mxu0 %v2618_v2  ;;  %v2406_v58 = vadd.f32 %v2405_v44, %v2353_v18 }
 0x59f   : > { %v2646_v35 = vand.u32 4294901760, %v2645_v24 }
 0x5a0   : > { %v2443_v36 = vadd.f32 %v2442_v31, %v2406_v58  ;;  %2499 = vmatmul.f32.vlgmr.msrb.gmra.mxu3 %v9282_v61  ;;  %2523 = vmatmul.f32.vlgmr.msra.gmra.mxu2 %v9285_v42  ;;  %v3027_v42 = vand.u32 4294901760, %v3026_v40 }
 0x5a1   : > { %2543 = vmatpush.xpose.msra.mxu3 %v2466_v41  ;;  %2625 = vmatmul.f32.vlgmr.msra.gmra.mxu0 %v2624_v27  ;;  %v2647_v34 = vsub.f32 %v2645_v24, %v2646_v35 }
 0x5a2   : > { %2672 = vmatpush.xpose.msra.mxu2 %v2645_v24  ;;  %2721 = vmatpush.xpose.msrb.mxu0 %v2646_v35  ;;  %v2753_v39 = vsel %vm617_vm0, %v2443_v36, 0 }
 0x5a3   : > { %v2648_v43 = vand.u32 4294901760, %v2647_v34  ;;  %v2770_v20 = vand.u32 4294901760, %v2753_v39 }
 0x5a5   : > { %2591 = vmatpush.xpose.msrb.mxu3 %v2466_v41  ;;  %2649 = vmatpush.xpose.msra.mxu1 %v2648_v43  ;;  %v2797_v46 = vsub.f32 %v2753_v39, %v2770_v20 }
 0x5a7   : > { %2824 = vmatpush.xpose.msra.mxu0 %v2797_v46  ;;  %v2798_v53 = vand.u32 4294901760, %v2797_v46 }
 0x5a8   : > { %2547 = vmatmul.f32.vlgmr.msra.gmra.mxu3 %v2470_v9  ;;  %2571 = vmatmul.f32.vlgmr.msrb.gmra.mxu2 %v9282_v61  ;;  %v2776_v9 = vand.u32 4294901760, %v2775_v1 }
 0x5a9   : > { %2743 = vmatpush.xpose.msrb.mxu1 %v2618_v2  ;;  %2695 = vmatpush.xpose.msra.mxu3 %v2618_v2  ;;  %v2799_v23 = vsub.f32 %v2797_v46, %v2798_v53 }
 0x5aa   : > { %2651 = vmatmul.f32.vlgmr.msra.gmra.mxu1 %v9289_v47  ;;  %2723 = vmatmul.f32.vlgmr.msrb.gmra.mxu0 %v9289_v47 }
 0x5ab   : > { %2771 = vmatpush.xpose.msrb.mxu2 %v2770_v20  ;;  %2998 = vmatpush.msrb.mxu0 %v2997_v37  ;;  %v2800_v0 = vand.u32 4294901760, %v2799_v23 }
 0x5ad   : > { %2847 = vmatpush.xpose.msra.mxu1 %v2770_v20 }
 0x5b0   : > { %2593 = vmatmul.f32.vlgmr.msrb.gmra.mxu3 %v9282_v61  ;;  %2675 = vmatmul.f32.vlgmr.msra.gmra.mxu2 %v9296_v19  ;;  %v9326_v61 = vsub.f32 %v9209_v59, %v9320_v6  ;;  %v1811_v19 = vlaneseq }
 0x5b1   : > { %2801 = vmatpush.xpose.msrb.mxu3 %v2800_v0  ;;  %2873 = vmatpush.xpose.msra.mxu2 %v2798_v53 }
 0x5b2   : > { %2745 = vmatmul.f32.vlgmr.msrb.gmra.mxu1 %v9289_v47  ;;  %2827 = vmatmul.f32.vlgmr.msra.gmra.mxu0 %v2773_v33  ;;  %v3174_v47 = vand.u32 4294901760, %v9326_v61  ;;  %v9333_v60 = vand.u32 127, %v1811_v19 }
 0x5b3   : > { %3028 = vmatpush.msrb.mxu1 %v3027_v42  ;;  %3100 = vmatpush.msra.mxu0 %v3025_v55 }
 0x5b4   : > { %v3175_v16 = vsub.f32 %v9326_v61, %v3174_v47  ;;  %vm1813_vm13 = vcmp.le.s32.totalorder %v9333_v60, 6 }
 0x5b6   : > { %v3176_v14 = vand.u32 4294901760, %v3175_v16 }
 0x5b8   : > { %2699 = vmatmul.f32.vlgmr.msra.gmra.mxu3 %v2622_v51  ;;  %2777 = vmatmul.f32.vlgmr.msrb.gmra.mxu2 %v2776_v9 }
 0x5b9   : > { %2895 = vmatpush.xpose.msra.mxu3 %v2770_v20  ;;  %3051 = vmatpush.msrb.mxu2 %v3024_v7 }
 0x5ba   : > { %2851 = vmatmul.f32.vlgmr.msra.gmra.mxu1 %v2774_v49 }
 0x5bb   : > { %3122 = vmatpush.msra.mxu1 %v2997_v37 }
 0x5c0   : > { %2803 = vmatmul.f32.vlgmr.msrb.gmra.mxu3 %v2772_v50  ;;  %2875 = vmatmul.f32.vlgmr.msra.gmra.mxu2 %v2772_v50 }
 0x5c1   : > { %3074 = vmatpush.msrb.mxu3 %v2997_v37  ;;  %3147 = vmatpush.msra.mxu2 %v9320_v6 }
 0x5c8   : > { %2897 = vmatmul.f32.vlgmr.msra.gmra.mxu3 %v2772_v50 }
 0x5c9   : > { %3177 = vmatpush.msra.mxu3 %v3176_v14 }
 0x61b   : > { %v2474_v11 = vpop.f32.mrf.mxu2 }
 0x61e   : > { %v2626_v13 = vpop.f32.mrf.mxu0 }
 0x623   : > { %v2500_v22 = vpop.f32.mrf.mxu3  ;;  %v2524_v21 = vpop.f32.mrf.mxu2 }
 0x624   : > { %v2501_v32 = vadd.f32 %v2500_v22, %v2474_v11 }
 0x626   : > { %v2525_v54 = vadd.f32 %v2524_v21, %v2501_v32 }
 0x627   : > { %v2652_v3 = vpop.f32.mrf.mxu1  ;;  %v2724_v10 = vpop.f32.mrf.mxu0 }
 0x628   : > { %v2653_v56 = vadd.f32 %v2652_v3, %v2626_v13 }
 0x62b   : > { %v2548_v59 = vpop.f32.mrf.mxu3  ;;  %v2572_v38 = vpop.f32.mrf.mxu2 }
 0x62c   : > { %v2549_v41 = vadd.f32 %v2548_v59, %v2525_v54 }
 0x62e   : > { %v2573_v52 = vadd.f32 %v2572_v38, %v2549_v41  ;;  %v9352_v38 = vand.u32 4294901760, %v9236_v30 }
 0x62f   : > { %v2746_v12 = vpop.f32.mrf.mxu1  ;;  %v2828_v44 = vpop.f32.mrf.mxu0 }
 0x633   : > { %v2594_v62 = vpop.f32.mrf.mxu3  ;;  %v2676_v28 = vpop.f32.mrf.mxu2 }
 0x634   : > { %v2595_v26 = vadd.f32 %v2594_v62, %v2573_v52  ;;  %v2677_v45 = vadd.f32 %v2676_v28, %v2653_v56  ;;  %v9356_v52 = vsub.f32 %v9236_v30, %v9352_v38 }
 0x636   : > { %v2903_v51 = vsel %vm1813_vm13, %v2595_v26, -1e+30 }
 0x637   : > { %v2907_v4 = vsel %vm2906_vm14, %v2903_v51, -inf  ;;  %v2852_v58 = vpop.f32.mrf.mxu1 }
 0x638   : > { %2908 = vmax.xlane.f32.xlu0 %v2907_v4  ;;  %v3323_v4 = vand.u32 4294901760, %v9356_v52 }
 0x63b   : > { %v2700_v8 = vpop.f32.mrf.mxu3  ;;  %v2778_v48 = vpop.f32.mrf.mxu2 }
 0x63c   : > { %v2701_v63 = vadd.f32 %v2700_v8, %v2677_v45 }
 0x63e   : > { %v2725_v57 = vadd.f32 %v2724_v10, %v2701_v63 }
 0x640   : > { %v2747_v15 = vadd.f32 %v2746_v12, %v2725_v57  ;;  %v3324_v57 = vsub.f32 %v9356_v52, %v3323_v4 }
 0x642   : > { %v2904_v5 = vsel %vm1813_vm13, %v2747_v15, -1e+30 }
 0x643   : > { %v2804_v17 = vpop.f32.mrf.mxu3  ;;  %v2910_v2 = vsel %vm2906_vm14, %v2904_v5, -inf  ;;  %v2876_v29 = vpop.f32.mrf.mxu2 }
 0x644   : > { %v2805_v18 = vadd.f32 %v2804_v17, %v2778_v48  ;;  %2911 = vmax.xlane.f32.xlu1 %v2910_v2 }
 0x646   : > { %v2829_v24 = vadd.f32 %v2828_v44, %v2805_v18  ;;  %v3325_v44 = vand.u32 4294901760, %v3324_v57  ;;  %v3426_v57 = vld [vmem:[#allocation12] sm:$0xff] }
 0x648   : > { %v2853_v27 = vadd.f32 %v2852_v58, %v2829_v24 }
 0x64a   : > { %v2877_v31 = vadd.f32 %v2876_v29, %v2853_v27 }
 0x64b   : > { %v2898_v35 = vpop.f32.mrf.mxu3 }
 0x64c   : > { %v2899_v36 = vadd.f32 %v2898_v35, %v2877_v31 }
 0x64e   : > { %v2905_v34 = vsel %vm1813_vm13, %v2899_v36, -1e+30 }
 0x64f   : > { %v2913_v37 = vsel %vm2906_vm14, %v2905_v34, -inf }
 0x650   : > { %2914 = vmax.xlane.f32.xlu2 %v2913_v37 }
 0x6ab   : > { %v2909_v39 = vpop.xlane.xlu0 %2908 }
 0x6ac   : > { %v2916_v25 = vsub.f32 %v2903_v51, %v2909_v39 }
 0x6ae   : > { %v2919_v43 = vmul.f32 1.442695, %v2916_v25 }
 0x6b0   : > { %8169 = vpow2.f32 %v2919_v43 }
 0x6b6   : > { %v8170_v20 = vpop.eup %8169 }
 0x6b7   : > { %v2912_v46 = vpop.xlane.xlu1 %2911  ;;  %v2925_v7 = vsel %vm2906_vm14, %v8170_v20, 0.0 }
 0x6b8   : > { %v2917_v50 = vsub.f32 %v2904_v5, %v2912_v46  ;;  %2926 = vadd.xlane.f32.xlu0 %v2925_v7 }
 0x6ba   : > { %v2921_v53 = vmul.f32 1.442695, %v2917_v50 }
 0x6bc   : > { %8171 = vpow2.f32 %v2921_v53 }
 0x6c2   : > { %v8172_v55 = vpop.eup %8171 }
 0x6c3   : > { %v2915_v33 = vpop.xlane.xlu2 %2914  ;;  %v2928_v23 = vsel %vm2906_vm14, %v8172_v55, 0.0 }
 0x6c4   : > { %v2918_v40 = vsub.f32 %v2905_v34, %v2915_v33  ;;  %2929 = vadd.xlane.f32.xlu1 %v2928_v23 }
 0x6c6   : > { %v2923_v49 = vmul.f32 1.442695, %v2918_v40  ;;  %v3433_v40 = vld [vmem:[#allocation12 + $0x38] sm:$0xff] }
 0x6c8   : > { %8173 = vpow2.f32 %v2923_v49  ;;  %v9377_v49 = vand.u32 4294901760, %v3433_v40 }
 0x6ce   : > { %v9347_v0 = vpop.eup %8173 }
 0x6cf   : > { %v2931_v42 = vsel %vm2906_vm14, %v9347_v0, 0.0 }
 0x6d0   : > { %2932 = vadd.xlane.f32.xlu2 %v2931_v42  ;;  %v9380_v42 = vsub.f32 %v3433_v40, %v9377_v49 }
 0x72b   : > { %v2927_v1 = vpop.xlane.xlu0 %2926 }
 0x72c   : > { %8175 = vrcp.f32 %v2927_v1  ;;  %v2945_v11 = vand.u32 2147483648, %v2927_v1  ;;  %v2943_v21 = vand.u32 2147483647, %v2927_v1  ;;  %vm2939_vm1 = vweird.f32 %v2927_v1 }
 0x72e   : > { %v2946_v19 = vor.u32 1.1754944e-38, %v2945_v11  ;;  %vm2944_vm4 = vcmp.eq.f32.partialorder %v2943_v21, 8.507059e+37 }
 0x732   : > { %v8176_v9 = vpop.eup %8175 }
 0x733   : > { %v2935_v16 = vmul.f32 %v8176_v9, %v2927_v1  ;;  %vm2940_vm15 = vweird.f32 %v8176_v9 }
 0x734   : > { %vm2941_vm3 = vmor %vm2939_vm1, %vm2940_vm15 }
 0x735   : > { %v2936_v14 = vsub.f32 1.0, %v2935_v16  ;;  %v3506_v16 = vand.u32 4294901760, %v9380_v42 }
 0x737   : > { %v2937_v22 = vmul.f32 %v8176_v9, %v2936_v14  ;;  %v2930_v32 = vpop.xlane.xlu1 %2929  ;;  %v3507_v21 = vsub.f32 %v9380_v42, %v3506_v16 }
 0x738   : > { %8177 = vrcp.f32 %v2930_v32  ;;  %v2960_v56 = vand.u32 2147483648, %v2930_v32  ;;  %v2958_v8 = vand.u32 2147483647, %v2930_v32  ;;  %vm2954_vm6 = vweird.f32 %v2930_v32 }
 0x739   : > { %v2938_v59 = vadd.f32 %v8176_v9, %v2937_v22  ;;  %v3430_v22 = vld [vmem:[#allocation12 + $0x20] sm:$0xff] }
 0x73a   : > { %v2961_v48 = vor.u32 1.1754944e-38, %v2960_v56  ;;  %vm2959_vm7 = vcmp.eq.f32.partialorder %v2958_v8, 8.507059e+37 }
 0x73b   : > { %v2942_v54 = vsel %vm2941_vm3, %v8176_v9, %v2938_v59  ;;  %v3431_v9 = vld [vmem:[#allocation12 + $0x28] sm:$0xff] }
 0x73c   : > { %v2947_v41 = vsel %vm2944_vm4, %v2946_v19, %v2942_v54  ;;  %v9391_v11 = vand.u32 4294901760, %v3431_v9  ;;  %v3429_v19 = vld [vmem:[#allocation12 + $0x18] sm:$0xff]  ;;  %v3508_v54 = vand.u32 4294901760, %v3507_v21 }
 0x73d   : > { %v2948_v13 = vmul.f32 %v8170_v20, %v2947_v41 }
 0x73e   : > { %v8178_v3 = vpop.eup %8177  ;;  %v9400_v59 = vsub.f32 %v3431_v9, %v9391_v11 }
 0x73f   : > { %v2950_v62 = vmul.f32 %v8178_v3, %v2930_v32  ;;  %v2980_v26 = vsel %vm2906_vm14, %v2948_v13, 0  ;;  %vm2955_vm5 = vweird.f32 %v8178_v3 }
 0x740   : > { %v2999_v28 = vand.u32 4294901760, %v2980_v26  ;;  %vm2956_vm2 = vmor %vm2954_vm6, %vm2955_vm5  ;;  %v3518_v13 = vand.u32 4294901760, %v9400_v59 }
 0x741   : > { %v2951_v51 = vsub.f32 1.0, %v2950_v62  ;;  %v3428_v62 = vld [vmem:[#allocation12 + $0x10] sm:$0xff] }
 0x742   : > { %3030 = vmatmul.f32.vlgmr.msrb.gmra.mxu1 %v2999_v28  ;;  %v3000_v45 = vsub.f32 %v2980_v26, %v2999_v28 }
 0x743   : > { %v2952_v10 = vmul.f32 %v8178_v3, %v2951_v51  ;;  %3223 = vmatpush.msrb.mxu1 %v9320_v6  ;;  %v2933_v63 = vpop.xlane.xlu2 %2932 }
 0x744   : > { %8179 = vrcp.f32 %v2933_v63  ;;  %3054 = vmatmul.f32.vlgmr.msrb.gmra.mxu2 %v3000_v45  ;;  %v3001_v12 = vand.u32 4294901760, %v3000_v45  ;;  %v2975_v31 = vand.u32 2147483648, %v2933_v63  ;;  %v2973_v34 = vand.u32 2147483647, %v2933_v63 }
 0x745   : > { %v2953_v30 = vadd.f32 %v8178_v3, %v2952_v10  ;;  %3249 = vmatpush.msrb.mxu2 %v3174_v47  ;;  %vm2969_vm9 = vweird.f32 %v2933_v63 }
 0x746   : > { %3078 = vmatmul.f32.vlgmr.msrb.gmra.mxu3 %v3001_v12  ;;  %v3002_v5 = vsub.f32 %v3000_v45, %v3001_v12  ;;  %v2976_v39 = vor.u32 1.1754944e-38, %v2975_v31  ;;  %vm2974_vm11 = vcmp.eq.f32.partialorder %v2973_v34, 8.507059e+37  ;;  %v3427_v45 = vld [vmem:[#allocation12 + $0x8] sm:$0xff] }
 0x747   : > { %v2957_v15 = vsel %vm2956_vm2, %v8178_v3, %v2953_v30  ;;  %3271 = vmatpush.msrb.mxu3 %v9320_v6  ;;  %v3463_v3 = vand.u32 4294901760, %v3429_v19  ;;  %v3467_v30 = vand.u32 4294901760, %v3427_v45 }
 0x748   : > { %v2962_v17 = vsel %vm2959_vm7, %v2961_v48, %v2957_v15  ;;  %v3003_v18 = vand.u32 4294901760, %v3002_v5 }
 0x749   : > { %v2963_v2 = vmul.f32 %v8172_v55, %v2962_v17  ;;  %v3529_v56 = vsub.f32 %v3429_v19, %v3463_v3  ;;  %v3541_v5 = vsub.f32 %v3427_v45, %v3467_v30  ;;  %v3469_v17 = vand.u32 4294901760, %v3426_v57 }
 0x74a   : > { %v8180_v24 = vpop.eup %8179  ;;  %3124 = vmatmul.f32.vlgmr.msra.gmra.mxu1 %v2999_v28  ;;  %3004 = vmatmul.f32.vlgmr.msrb.gmra.mxu0 %v3003_v18 }
 0x74b   : > { %v2965_v47 = vmul.f32 %v8180_v24, %v2933_v63  ;;  %3326 = vmatpush.msra.mxu1 %v3325_v44  ;;  %v3129_v58 = vsel %vm2906_vm14, %v2963_v2, 0  ;;  %3200 = vmatpush.msrb.mxu0 %v9326_v61  ;;  %vm2970_vm8 = vweird.f32 %v8180_v24  ;;  %v3530_v12 = vand.u32 4294901760, %v3529_v56 }
 0x74c   : > { %v3148_v27 = vand.u32 4294901760, %v3129_v58  ;;  %vm2971_vm10 = vmor %vm2969_vm9, %vm2970_vm8  ;;  %v3542_v44 = vand.u32 4294901760, %v3541_v5 }
 0x74d   : > { %v2966_v29 = vsub.f32 1.0, %v2965_v47  ;;  %v3531_v2 = vsub.f32 %v3529_v56, %v3530_v12 }
 0x74e   : > { %v3149_v35 = vsub.f32 %v3129_v58, %v3148_v27  ;;  %3179 = vmatmul.f32.vlgmr.msra.gmra.mxu3 %v3148_v27 }
 0x74f   : > { %v2967_v36 = vmul.f32 %v8180_v24, %v2966_v29  ;;  %3372 = vmatpush.msra.mxu3 %v9352_v38  ;;  %v3532_v47 = vand.u32 4294901760, %v3531_v2 }
 0x750   : > { %v3150_v6 = vand.u32 4294901760, %v3149_v35 }
 0x751   : > { %v2968_v37 = vadd.f32 %v8180_v24, %v2967_v36 }
 0x752   : > { %3227 = vmatmul.f32.vlgmr.msrb.gmra.mxu1 %v3150_v6  ;;  %v3151_v25 = vsub.f32 %v3149_v35, %v3150_v6  ;;  %3102 = vmatmul.f32.vlgmr.msra.gmra.mxu0 %v2999_v28  ;;  %v3519_v28 = vsub.f32 %v9400_v59, %v3518_v13 }
 0x753   : > { %v2972_v43 = vsel %vm2971_vm10, %v8180_v24, %v2968_v37  ;;  %3420 = vmatpush.msrb.mxu1 %v9352_v38  ;;  %3296 = vmatpush.msra.mxu0 %v9352_v38  ;;  %v9403_v38 = vand.u32 4294901760, %v3430_v22  ;;  %v3547_v24 = vsub.f32 %v3426_v57, %v3469_v17 }
 0x754   : > { %v2977_v61 = vsel %vm2974_vm11, %v2976_v39, %v2972_v43  ;;  %v3152_v20 = vand.u32 4294901760, %v3151_v25  ;;  %v3520_v10 = vand.u32 4294901760, %v3519_v28 }
 0x755   : > { %v2978_v46 = vmul.f32 %v9347_v0, %v2977_v61  ;;  %v3432_v0 = vld [vmem:[#allocation12 + $0x30] sm:$0xff]  ;;  %v3548_v29 = vand.u32 4294901760, %v3547_v24 }
 0x756   : > { %3153 = vmatmul.f32.vlgmr.msra.gmra.mxu2 %v3152_v20  ;;  %3273 = vmatmul.f32.vlgmr.msrb.gmra.mxu3 %v3148_v27  ;;  %v9382_v1 = vand.u32 4294901760, %v3432_v0 }
 0x757   : > { %3349 = vmatpush.msra.mxu2 %v9356_v52  ;;  %v3278_v7 = vsel %vm2906_vm14, %v2978_v46, 0  ;;  %v3523_v52 = vsub.f32 %v3430_v22, %v9403_v38  ;;  %3509 = vmatpush.msrb.mxu3 %v3508_v54 }
 0x758   : > { %v3297_v50 = vand.u32 4294901760, %v3278_v7  ;;  %v9388_v14 = vsub.f32 %v3432_v0, %v9382_v1 }
 0x759   : > { %v3524_v51 = vand.u32 4294901760, %v3523_v52 }
 0x75a   : > { %v3298_v53 = vsub.f32 %v3278_v7, %v3297_v50  ;;  %3328 = vmatmul.f32.vlgmr.msra.gmra.mxu1 %v3297_v50  ;;  %3203 = vmatmul.f32.vlgmr.msrb.gmra.mxu0 %v3149_v35  ;;  %v3512_v32 = vand.u32 4294901760, %v9388_v14  ;;  %v3549_v35 = vsub.f32 %v3547_v24, %v3548_v29 }
 0x75b   : > { %3398 = vmatpush.msrb.mxu0 %v3323_v4  ;;  %3622 = vmatpush.msra.mxu1 %v9377_v49  ;;  %v3465_v4 = vand.u32 4294901760, %v3428_v62  ;;  %v3525_v8 = vsub.f32 %v3523_v52, %v3524_v51 }
 0x75c   : > { %v3299_v55 = vand.u32 4294901760, %v3298_v53  ;;  %v3513_v41 = vsub.f32 %v9388_v14, %v3512_v32  ;;  %v3550_v36 = vand.u32 4294901760, %v3549_v35 }
 0x75d   : > { %3624 = vmatpush.msra.mxu1 %v9382_v1  ;;  %v3535_v63 = vsub.f32 %v3428_v62, %v3465_v4  ;;  %v3526_v48 = vand.u32 4294901760, %v3525_v8 }
 0x75e   : > { %3251 = vmatmul.f32.vlgmr.msrb.gmra.mxu2 %v3148_v27  ;;  %v3300_v33 = vsub.f32 %v3298_v53, %v3299_v55  ;;  %3376 = vmatmul.f32.vlgmr.msra.gmra.mxu3 %v3299_v55  ;;  %v3514_v26 = vand.u32 4294901760, %v3513_v41  ;;  %v3543_v27 = vsub.f32 %v3541_v5, %v3542_v44 }
 0x75f   : > { %3456 = vmatpush.msrb.mxu2 %v9377_v49  ;;  %3626 = vmatpush.msra.mxu1 %v9391_v11  ;;  %v3536_v15 = vand.u32 4294901760, %v3535_v63 }
 0x760   : > { %v3301_v23 = vand.u32 4294901760, %v3300_v33  ;;  %3515 = vmatpush.msrb.mxu3 %v3514_v26  ;;  %v3544_v31 = vand.u32 4294901760, %v3543_v27 }
 0x761   : > { %3458 = vmatpush.msrb.mxu2 %v9382_v1  ;;  %3628 = vmatpush.msra.mxu1 %v9403_v38  ;;  %v3537_v18 = vsub.f32 %v3535_v63, %v3536_v15 }
 0x762   : > { %3422 = vmatmul.f32.vlgmr.msrb.gmra.mxu1 %v3297_v50  ;;  %3302 = vmatmul.f32.vlgmr.msra.gmra.mxu0 %v3301_v23 }
 0x763   : > { %3575 = vmatpush.msra.mxu0 %v9380_v42  ;;  %3460 = vmatpush.msrb.mxu2 %v9391_v11  ;;  %v3538_v58 = vand.u32 4294901760, %v3537_v18  ;;  %v3756_v18 = vld [vmem:[#allocation9 + $0x70] sm:$0xff] }
 0x764   : > { %3630 = vmatpush.msra.mxu1 %v3463_v3  ;;  %3521 = vmatpush.msrb.mxu3 %v3520_v10 }
 0x765   : > { %3578 = vmatpush.msra.mxu0 %v9388_v14  ;;  %3462 = vmatpush.msrb.mxu2 %v9403_v38 }
 0x766   : > { %3352 = vmatmul.f32.vlgmr.msra.gmra.mxu2 %v3298_v53  ;;  %3632 = vmatpush.msra.mxu1 %v3465_v4 }
 0x767   : > { %3581 = vmatpush.msra.mxu0 %v9400_v59  ;;  %3464 = vmatpush.msrb.mxu2 %v3463_v3 }
 0x768   : > { %3634 = vmatpush.msra.mxu1 %v3467_v30  ;;  %3527 = vmatpush.msrb.mxu3 %v3526_v48 }
 0x769   : > { %3584 = vmatpush.msra.mxu0 %v3523_v52  ;;  %3466 = vmatpush.msrb.mxu2 %v3465_v4 }
 0x76a   : > { %3400 = vmatmul.f32.vlgmr.msrb.gmra.mxu0 %v3297_v50  ;;  %3636 = vmatpush.msra.mxu1 %v3469_v17 }
 0x76b   : > { %3587 = vmatpush.msra.mxu0 %v3529_v56  ;;  %3468 = vmatpush.msrb.mxu2 %v3467_v30 }
 0x76c   : > { %3533 = vmatpush.msrb.mxu3 %v3532_v47  ;;  %v3755_v47 = vld [vmem:[#allocation9 + $0x68] sm:$0xff] }
 0x76d   : > { %3590 = vmatpush.msra.mxu0 %v3535_v63  ;;  %3470 = vmatpush.msrb.mxu2 %v3469_v17 }
 0x76e   : > { %3539 = vmatpush.msrb.mxu3 %v3538_v58 }
 0x76f   : > { %3593 = vmatpush.msra.mxu0 %v3541_v5  ;;  %3667 = vmatpush.msra.mxu2 %v3506_v16 }
 0x770   : > { %3545 = vmatpush.msrb.mxu3 %v3544_v31  ;;  %v3754_v31 = vld [vmem:[#allocation9 + $0x60] sm:$0xff] }
 0x771   : > { %3596 = vmatpush.msra.mxu0 %v3547_v24  ;;  %3671 = vmatpush.msra.mxu2 %v3512_v32  ;;  %v9428_v24 = vand.u32 4294901760, %v3756_v18 }
 0x772   : > { %3551 = vmatpush.msrb.mxu3 %v3550_v36 }
 0x773   : > { %3675 = vmatpush.msra.mxu2 %v3518_v13  ;;  %v9434_v27 = vsub.f32 %v3756_v18, %v9428_v24 }
 0x774   : > { %3718 = vmatpush.msra.mxu3 %v9377_v49 }
 0x775   : > { %3679 = vmatpush.msra.mxu2 %v3524_v51  ;;  %v3837_v36 = vand.u32 4294901760, %v9434_v27 }
 0x776   : > { %3720 = vmatpush.msra.mxu3 %v9382_v1 }
 0x777   : > { %3683 = vmatpush.msra.mxu2 %v3530_v12 }
 0x778   : > { %3722 = vmatpush.msra.mxu3 %v9391_v11 }
 0x779   : > { %3687 = vmatpush.msra.mxu2 %v3536_v15 }
 0x77a   : > { %3724 = vmatpush.msra.mxu3 %v9403_v38 }
 0x77b   : > { %3691 = vmatpush.msra.mxu2 %v3542_v44 }
 0x77c   : > { %3726 = vmatpush.msra.mxu3 %v3463_v3 }
 0x77d   : > { %3695 = vmatpush.msra.mxu2 %v3548_v29  ;;  %v9437_v29 = vand.u32 4294901760, %v3755_v47 }
 0x77e   : > { %3728 = vmatpush.msra.mxu3 %v3465_v4 }
 0x780   : > { %3730 = vmatpush.msra.mxu3 %v3467_v30 }
 0x782   : > { %3732 = vmatpush.msra.mxu3 %v3469_v17  ;;  %v3757_v17 = vld [vmem:[#allocation9 + $0x78] sm:$0xff] }
 0x783   : > { %v9423_v2 = vand.u32 4294901760, %v3757_v17 }
 0x785   : > { %v9426_v44 = vsub.f32 %v3757_v17, %v9423_v2  ;;  %3781 = vmatpush.msrb.mxu0 %v9423_v2 }
 0x787   : > { %v3831_v58 = vand.u32 4294901760, %v9426_v44  ;;  %3783 = vmatpush.msrb.mxu0 %v9428_v24 }
 0x789   : > { %v3832_v35 = vsub.f32 %v9426_v44, %v3831_v58  ;;  %3785 = vmatpush.msrb.mxu0 %v9437_v29 }
 0x7bf   : > { %v3031_v34 = vpop.f32.mrf.mxu1 }
 0x7c7   : > { %v3005_v6 = vpop.f32.mrf.mxu0  ;;  %v3055_v39 = vpop.f32.mrf.mxu2 }
 0x7c8   : > { %v3032_v37 = vadd.f32 %v3031_v34, %v3005_v6  ;;  %v3125_v46 = vpop.f32.mrf.mxu1  ;;  %v9446_v34 = vsub.f32 %v3755_v47, %v9437_v29  ;;  %v9449_v6 = vand.u32 4294901760, %v3754_v31 }
 0x7c9   : > { %v3079_v43 = vpop.f32.mrf.mxu3 }
 0x7ca   : > { %v3056_v25 = vadd.f32 %v3055_v39, %v3032_v37  ;;  %v3753_v37 = vld [vmem:[#allocation9 + $0x58] sm:$0xff]  ;;  %v3833_v39 = vand.u32 4294901760, %v3832_v35  ;;  %3787 = vmatpush.msrb.mxu0 %v9449_v6 }
 0x7cc   : > { %v3080_v61 = vadd.f32 %v3079_v43, %v3056_v25  ;;  %v3838_v25 = vsub.f32 %v9434_v27, %v3837_v36  ;;  %v3843_v43 = vand.u32 4294901760, %v9446_v34  ;;  %3834 = vmatpush.msrb.mxu1 %v3833_v39 }
 0x7cf   : > { %v3103_v20 = vpop.f32.mrf.mxu0 }
 0x7d0   : > { %v3104_v7 = vadd.f32 %v3103_v20, %v3080_v61  ;;  %v3228_v1 = vpop.f32.mrf.mxu1  ;;  %v3848_v61 = vsub.f32 %v3754_v31, %v9449_v6  ;;  %v9460_v20 = vand.u32 4294901760, %v3753_v37 }
 0x7d1   : > { %v3180_v33 = vpop.f32.mrf.mxu3 }
 0x7d2   : > { %v3126_v50 = vadd.f32 %v3125_v46, %v3104_v7  ;;  %v3752_v46 = vld [vmem:[#allocation9 + $0x50] sm:$0xff]  ;;  %v3839_v7 = vand.u32 4294901760, %v3838_v25  ;;  %3789 = vmatpush.msrb.mxu0 %v9460_v20 }
 0x7d4   : > { %v3439_v53 = vsel %vm617_vm0, %v3126_v50, 0  ;;  %v3844_v50 = vsub.f32 %v9446_v34, %v3843_v43  ;;  %3840 = vmatpush.msrb.mxu1 %v3839_v7 }
 0x7d5   : > { %v3471_v55 = vand.u32 4294901760, %v3439_v53 }
 0x7d7   : > { %v3472_v23 = vsub.f32 %v3439_v53, %v3471_v55  ;;  %3553 = vmatmul.f32.vlgmr.msrb.gmra.mxu3 %v3471_v55  ;;  %v3204_v40 = vpop.f32.mrf.mxu0  ;;  %v9464_v53 = vand.u32 4294901760, %v3752_v46 }
 0x7d8   : > { %v3329_v19 = vpop.f32.mrf.mxu1  ;;  %3947 = vmatpush.msrb.mxu3 %v9423_v2 }
 0x7d9   : > { %v3154_v49 = vpop.f32.mrf.mxu2  ;;  %v3473_v0 = vand.u32 4294901760, %v3472_v23  ;;  %3599 = vmatmul.f32.vlgmr.msra.gmra.mxu0 %v3472_v23  ;;  %v3274_v22 = vpop.f32.mrf.mxu3 }
 0x7da   : > { %v3181_v42 = vadd.f32 %v3180_v33, %v3154_v49  ;;  %3949 = vmatpush.msrb.mxu3 %v9428_v24  ;;  %v3854_v33 = vsub.f32 %v3753_v37, %v9460_v20  ;;  %v3860_v49 = vsub.f32 %v3752_v46, %v9464_v53  ;;  %3791 = vmatpush.msrb.mxu0 %v9464_v53  ;;  %v4074_v37 = vld [vmem:[#allocation11 + $0x50] sm:$0xff] }
 0x7db   : > { %v3474_v9 = vsub.f32 %v3472_v23, %v3473_v0  ;;  %3640 = vmatmul.f32.vlgmr.msra.gmra.mxu1 %v3473_v0  ;;  %v3751_v23 = vld [vmem:[#allocation9 + $0x48] sm:$0xff] }
 0x7dc   : > { %v3205_v16 = vadd.f32 %v3204_v40, %v3181_v42  ;;  %3951 = vmatpush.msrb.mxu3 %v9437_v29  ;;  %v3845_v40 = vand.u32 4294901760, %v3844_v50  ;;  %v9469_v0 = vand.u32 4294901760, %v3751_v23 }
 0x7dd   : > { %v3475_v14 = vand.u32 4294901760, %v3474_v9  ;;  %v3750_v9 = vld [vmem:[#allocation9 + $0x40] sm:$0xff] }
 0x7de   : > { %v3229_v11 = vadd.f32 %v3228_v1, %v3205_v16  ;;  %3953 = vmatpush.msrb.mxu3 %v9449_v6  ;;  %v3855_v1 = vand.u32 4294901760, %v3854_v33  ;;  %3846 = vmatpush.msrb.mxu1 %v3845_v40  ;;  %v3861_v16 = vand.u32 4294901760, %v3860_v49 }
 0x7df   : > { %3476 = vmatmul.f32.vlgmr.msrb.gmra.mxu2 %v3475_v14  ;;  %v3303_v59 = vpop.f32.mrf.mxu0  ;;  %v3866_v14 = vsub.f32 %v3751_v23, %v9469_v0  ;;  %3793 = vmatpush.msrb.mxu0 %v9469_v0 }
 0x7e0   : > { %v3330_v13 = vadd.f32 %v3329_v19, %v3303_v59  ;;  %v3423_v10 = vpop.f32.mrf.mxu1  ;;  %3900 = vmatpush.msrb.mxu2 %v9426_v44  ;;  %3955 = vmatpush.msrb.mxu3 %v9460_v20  ;;  %v3862_v59 = vsub.f32 %v3860_v49, %v3861_v16 }
 0x7e1   : > { %v3252_v21 = vpop.f32.mrf.mxu2  ;;  %v3377_v26 = vpop.f32.mrf.mxu3 }
 0x7e2   : > { %v3253_v32 = vadd.f32 %v3252_v21, %v3229_v11  ;;  %3903 = vmatpush.msrb.mxu2 %v9434_v27  ;;  %3957 = vmatpush.msrb.mxu3 %v9464_v53  ;;  %v9474_v11 = vand.u32 4294901760, %v3750_v9  ;;  %v3856_v21 = vsub.f32 %v3854_v33, %v3855_v1  ;;  %v4075_v27 = vld [vmem:[#allocation11 + $0x58] sm:$0xff] }
 0x7e4   : > { %v3275_v38 = vadd.f32 %v3274_v22, %v3253_v32  ;;  %3906 = vmatpush.msrb.mxu2 %v9446_v34  ;;  %3959 = vmatpush.msrb.mxu3 %v9469_v0  ;;  %v3872_v19 = vsub.f32 %v3750_v9, %v9474_v11  ;;  %v9532_v34 = vand.u32 4294901760, %v4075_v27 }
 0x7e5   : > { %3795 = vmatpush.msrb.mxu0 %v9474_v11 }
 0x7e6   : > { %v3442_v54 = vsel %vm617_vm0, %v3275_v38, 0  ;;  %3909 = vmatpush.msrb.mxu2 %v3848_v61  ;;  %v3867_v38 = vand.u32 4294901760, %v3866_v14  ;;  %3961 = vmatpush.msrb.mxu3 %v9474_v11 }
 0x7e7   : > { %v3479_v41 = vand.u32 4294901760, %v3442_v54  ;;  %v3401_v4 = vpop.f32.mrf.mxu0  ;;  %3992 = vmatpush.msra.mxu0 %v3831_v58 }
 0x7e8   : > { %3912 = vmatpush.msrb.mxu2 %v3854_v33 }
 0x7e9   : > { %v3353_v52 = vpop.f32.mrf.mxu2  ;;  %3557 = vmatmul.f32.gmra.mxu3 %v3479_v41  ;;  %v3480_v3 = vsub.f32 %v3442_v54, %v3479_v41  ;;  %v3857_v54 = vand.u32 4294901760, %v3856_v21  ;;  %3996 = vmatpush.msra.mxu0 %v3837_v36 }
 0x7ea   : > { %v3354_v62 = vadd.f32 %v3353_v52, %v3330_v13  ;;  %3915 = vmatpush.msrb.mxu2 %v3860_v49  ;;  %v3868_v13 = vsub.f32 %v3866_v14, %v3867_v38  ;;  %v3873_v52 = vand.u32 4294901760, %v3872_v19 }
 0x7eb   : > { %3604 = vmatmul.f32.gmra.mxu0 %v3480_v3  ;;  %v3481_v28 = vand.u32 4294901760, %v3480_v3 }
 0x7ec   : > { %v3378_v51 = vadd.f32 %v3377_v26, %v3354_v62  ;;  %3918 = vmatpush.msrb.mxu2 %v3866_v14  ;;  %v3869_v62 = vand.u32 4294901760, %v3868_v13  ;;  %v3874_v26 = vsub.f32 %v3872_v19, %v3873_v52  ;;  %4000 = vmatpush.msra.mxu0 %v3843_v43 }
 0x7ed   : > { %3646 = vmatmul.f32.gmra.mxu1 %v3481_v28  ;;  %v3482_v56 = vsub.f32 %v3480_v3, %v3481_v28 }
 0x7ee   : > { %v3402_v45 = vadd.f32 %v3401_v4, %v3378_v51  ;;  %3921 = vmatpush.msrb.mxu2 %v3872_v19  ;;  %v3875_v28 = vand.u32 4294901760, %v3874_v26  ;;  %v9492_v4 = vld [vmem:[%s10253_s10] ss:$0 sm:$0xff] }
 0x7ef   : > { %v3483_v8 = vand.u32 4294901760, %v3482_v56  ;;  %v4079_v56 = vld [vmem:[#allocation11 + $0x78] sm:$0xff] }
 0x7f0   : > { %v3424_v63 = vadd.f32 %v3423_v10, %v3402_v45  ;;  %v9495_v10 = vand.u32 4294901760, %v4079_v56 }
 0x7f1   : > { %3484 = vmatmul.f32.gmra.mxu2 %v3483_v8  ;;  %v4078_v8 = vld [vmem:[#allocation11 + $0x70] sm:$0xff] }
 0x7f2   : > { %v3445_v30 = vsel %vm617_vm0, %v3424_v63, 0  ;;  %v9499_v63 = vsub.f32 %v4079_v56, %v9495_v10 }
 0x7f3   : > { %v3487_v12 = vand.u32 4294901760, %v3445_v30 }
 0x7f5   : > { %3561 = vmatmul.f32.gmra.mxu3 %v3487_v12  ;;  %v3488_v57 = vsub.f32 %v3445_v30, %v3487_v12  ;;  %v9502_v30 = vand.u32 4294901760, %v4078_v8 }
 0x7f7   : > { %3609 = vmatmul.f32.gmra.mxu0 %v3488_v57  ;;  %v3489_v48 = vand.u32 4294901760, %v3488_v57  ;;  %v9513_v17 = vsub.f32 %v4078_v8, %v9502_v30 }
 0x7f9   : > { %3652 = vmatmul.f32.gmra.mxu1 %v3489_v48  ;;  %v3490_v15 = vsub.f32 %v3488_v57, %v3489_v48  ;;  %v4077_v57 = vld [vmem:[#allocation11 + $0x68] sm:$0xff]  ;;  %v4150_v44 = vand.u32 4294901760, %v9513_v17 }
 0x7fb   : > { %v3491_v5 = vand.u32 4294901760, %v3490_v15  ;;  %v4144_v15 = vand.u32 4294901760, %v9499_v63  ;;  %v4151_v35 = vsub.f32 %v9513_v17, %v4150_v44 }
 0x7fd   : > { %3492 = vmatmul.f32.gmra.mxu2 %v3491_v5  ;;  %3734 = vmatmul.f32.vlgmr.msra.gmra.mxu3 %v3471_v55  ;;  %v9510_v5 = vand.u32 4294901760, %v4077_v57  ;;  %v4145_v18 = vsub.f32 %v9499_v63, %v4144_v15  ;;  %v4152_v25 = vand.u32 4294901760, %v4151_v35 }
 0x7ff   : > { %v9524_v47 = vsub.f32 %v4077_v57, %v9510_v5  ;;  %v4146_v31 = vand.u32 4294901760, %v4145_v18 }
 0x801   : > { %v4156_v36 = vand.u32 4294901760, %v9524_v47  ;;  %4147 = vmatpush.msra.mxu3 %v4146_v31 }
 0x803   : > { %v4157_v43 = vsub.f32 %v9524_v47, %v4156_v36  ;;  %4153 = vmatpush.msra.mxu3 %v4152_v25 }
 0x805   : > { %3697 = vmatmul.f32.vlgmr.msra.gmra.mxu2 %v3471_v55  ;;  %3738 = vmatmul.f32.gmra.mxu3 %v3479_v41  ;;  %v3849_v55 = vand.u32 4294901760, %v3848_v61 }
 0x806   : > { %4094 = vmatpush.msra.mxu2 %v9495_v10 }
 0x807   : > { %v3850_v42 = vsub.f32 %v3848_v61, %v3849_v55  ;;  %4004 = vmatpush.msra.mxu0 %v3849_v55  ;;  %v9541_v61 = vand.u32 4294901760, %v4074_v37  ;;  %v4158_v55 = vand.u32 4294901760, %v4157_v43 }
 0x808   : > { %4096 = vmatpush.msra.mxu2 %v9502_v30 }
 0x809   : > { %v3851_v22 = vand.u32 4294901760, %v3850_v42  ;;  %4008 = vmatpush.msra.mxu0 %v3855_v1  ;;  %v9554_v40 = vsub.f32 %v4074_v37, %v9541_v61  ;;  %v4072_v42 = vld [vmem:[#allocation11 + $0x40] sm:$0xff]  ;;  %4159 = vmatpush.msra.mxu3 %v4158_v55 }
 0x80a   : > { %4098 = vmatpush.msra.mxu2 %v9510_v5  ;;  %v9565_v14 = vand.u32 4294901760, %v4072_v42 }
 0x80b   : > { %3852 = vmatpush.msrb.mxu1 %v3851_v22  ;;  %4012 = vmatpush.msra.mxu0 %v3861_v16  ;;  %v4174_v16 = vand.u32 4294901760, %v9554_v40 }
 0x80d   : > { %3701 = vmatmul.f32.gmra.mxu2 %v3479_v41  ;;  %3742 = vmatmul.f32.gmra.mxu3 %v3487_v12  ;;  %v3863_v41 = vand.u32 4294901760, %v3862_v59  ;;  %v4175_v19 = vsub.f32 %v9554_v40, %v4174_v16 }
 0x80e   : > { %3858 = vmatpush.msrb.mxu1 %v3857_v54  ;;  %4016 = vmatpush.msra.mxu0 %v3867_v38 }
 0x810   : > { %3864 = vmatpush.msrb.mxu1 %v3863_v41  ;;  %4020 = vmatpush.msra.mxu0 %v3873_v52  ;;  %v9577_v41 = vsub.f32 %v4072_v42, %v9565_v14 }
 0x812   : > { %3870 = vmatpush.msrb.mxu1 %v3869_v62  ;;  %v4186_v26 = vand.u32 4294901760, %v9577_v41 }
 0x814   : > { %3876 = vmatpush.msrb.mxu1 %v3875_v28  ;;  %v4187_v8 = vsub.f32 %v9577_v41, %v4186_v26 }
 0x815   : > { %3705 = vmatmul.f32.gmra.mxu2 %v3487_v12 }
 0x816   : > { %4043 = vmatpush.msra.mxu1 %v9423_v2  ;;  %v4076_v2 = vld [vmem:[#allocation11 + $0x60] sm:$0xff] }
 0x818   : > { %4045 = vmatpush.msra.mxu1 %v9428_v24  ;;  %v9521_v24 = vand.u32 4294901760, %v4076_v2 }
 0x81a   : > { %4047 = vmatpush.msra.mxu1 %v9437_v29  ;;  %4100 = vmatpush.msra.mxu2 %v9521_v24 }
 0x81c   : > { %4049 = vmatpush.msra.mxu1 %v9449_v6  ;;  %v9535_v6 = vsub.f32 %v4076_v2, %v9521_v24  ;;  %4102 = vmatpush.msra.mxu2 %v9532_v34  ;;  %v4188_v2 = vand.u32 4294901760, %v4187_v8 }
 0x81e   : > { %4051 = vmatpush.msra.mxu1 %v9460_v20  ;;  %v9544_v20 = vsub.f32 %v4075_v27, %v9532_v34  ;;  %v4162_v50 = vand.u32 4294901760, %v9535_v6  ;;  %4104 = vmatpush.msra.mxu2 %v9541_v61 }
 0x820   : > { %4053 = vmatpush.msra.mxu1 %v9464_v53  ;;  %v4073_v53 = vld [vmem:[#allocation11 + $0x48] sm:$0xff]  ;;  %v4168_v33 = vand.u32 4294901760, %v9544_v20  ;;  %v4163_v49 = vsub.f32 %v9535_v6, %v4162_v50 }
 0x821   : > { %v9551_v23 = vand.u32 4294901760, %v4073_v53 }
 0x822   : > { %4055 = vmatpush.msra.mxu1 %v9469_v0  ;;  %v4169_v9 = vsub.f32 %v9544_v20, %v4168_v33 }
 0x823   : > { %4106 = vmatpush.msra.mxu2 %v9551_v23  ;;  %v9568_v22 = vsub.f32 %v4073_v53, %v9551_v23 }
 0x824   : > { %4057 = vmatpush.msra.mxu1 %v9474_v11  ;;  %v4170_v38 = vand.u32 4294901760, %v4169_v9 }
 0x825   : > { %4108 = vmatpush.msra.mxu2 %v9565_v14  ;;  %v4180_v54 = vand.u32 4294901760, %v9568_v22 }
 0x827   : > { %v4181_v62 = vsub.f32 %v9568_v22, %v4180_v54 }
 0x856   : > { %v3600_v39 = vpop.f32.mrf.mxu0 }
 0x858   : > { %v3641_v0 = vpop.f32.mrf.mxu1 }
 0x85a   : > { %v3554_v32 = vpop.f32.mrf.mxu3 }
 0x862   : > { %v3477_v3 = vpop.f32.mrf.mxu2 }
 0x863   : > { %v3478_v12 = vadd.f32 %v9492_v4, %v3477_v3  ;;  %v4176_v3 = vand.u32 4294901760, %v4175_v19 }
 0x865   : > { %v3555_v58 = vadd.f32 %v3554_v32, %v3478_v12  ;;  %v4164_v32 = vand.u32 4294901760, %v4163_v49 }
 0x867   : > { %v3601_v7 = vadd.f32 %v3600_v39, %v3555_v58  ;;  %4165 = vmatpush.msra.mxu3 %v4164_v32 }
 0x868   : > { %v3605_v52 = vpop.f32.mrf.mxu0 }
 0x869   : > { %v3642_v11 = vadd.f32 %v3641_v0, %v3601_v7  ;;  %4171 = vmatpush.msra.mxu3 %v4170_v38 }
 0x86a   : > { %v3647_v57 = vpop.f32.mrf.mxu1 }
 0x86b   : > { %4177 = vmatpush.msra.mxu3 %v4176_v3 }
 0x86c   : > { %v9486_v51 = vpop.f32.mrf.mxu3 }
 0x874   : > { %v3485_v45 = vpop.f32.mrf.mxu2  ;;  %v3610_v37 = vpop.f32.mrf.mxu0 }
 0x875   : > { %v3486_v46 = vadd.f32 %v9492_v4, %v3485_v45  ;;  %v4182_v45 = vand.u32 4294901760, %v4181_v62 }
 0x876   : > { %v3653_v7 = vpop.f32.mrf.mxu1 }
 0x877   : > { %v3559_v21 = vadd.f32 %v9486_v51, %v3486_v46  ;;  %4183 = vmatpush.msra.mxu3 %v4182_v45 }
 0x878   : > { %v9505_v48 = vpop.f32.mrf.mxu3 }
 0x879   : > { %v3606_v56 = vadd.f32 %v3605_v52, %v3559_v21  ;;  %4189 = vmatpush.msra.mxu3 %v4188_v2 }
 0x87b   : > { %v3648_v27 = vadd.f32 %v3647_v57, %v3606_v56 }
 0x880   : > { %v3493_v29 = vpop.f32.mrf.mxu2  ;;  %v3735_v1 = vpop.f32.mrf.mxu3 }
 0x881   : > { %v3494_v28 = vadd.f32 %v9492_v4, %v3493_v29 }
 0x883   : > { %v3563_v18 = vadd.f32 %v9505_v48, %v3494_v28 }
 0x885   : > { %v3611_v43 = vadd.f32 %v3610_v37, %v3563_v18 }
 0x887   : > { %v3654_v49 = vadd.f32 %v3653_v7, %v3611_v43 }
 0x888   : > { %v3698_v59 = vpop.f32.mrf.mxu2  ;;  %v3739_v29 = vpop.f32.mrf.mxu3 }
 0x889   : > { %v3699_v13 = vadd.f32 %v3698_v59, %v3642_v11 }
 0x88b   : > { %v3736_v51 = vadd.f32 %v3735_v1, %v3699_v13 }
 0x88d   : > { %v9587_v12 = vmax.f32 %v3736_v51, 0.0 }
 0x88f   : > { %v3764_v58 = vsel %vm617_vm0, %v9587_v12, 0 }
 0x890   : > { %v9592_v4 = vand.u32 4294901760, %v3764_v58  ;;  %v3702_v31 = vpop.f32.mrf.mxu2  ;;  %v3743_v9 = vpop.f32.mrf.mxu3 }
 0x891   : > { %v3703_v35 = vadd.f32 %v3702_v31, %v3648_v27 }
 0x892   : > { %v9595_v39 = vsub.f32 %v3764_v58, %v9592_v4  ;;  %3878 = vmatmul.f32.vlgmr.msrb.gmra.mxu1 %v9592_v4 }
 0x893   : > { %v3740_v25 = vadd.f32 %v3739_v29, %v3703_v35  ;;  %4260 = vmatpush.msrb.mxu1 %v9495_v10 }
 0x894   : > { %3924 = vmatmul.f32.vlgmr.msrb.gmra.mxu2 %v9595_v39  ;;  %v9601_v48 = vand.u32 4294901760, %v9595_v39 }
 0x895   : > { %v9603_v46 = vmax.f32 %v3740_v25, 0.0  ;;  %4262 = vmatpush.msrb.mxu1 %v9502_v30  ;;  %4305 = vmatpush.msrb.mxu2 %v4144_v15 }
 0x896   : > { %3965 = vmatmul.f32.vlgmr.msrb.gmra.mxu3 %v9601_v48  ;;  %v3799_v53 = vsub.f32 %v9595_v39, %v9601_v48 }
 0x897   : > { %v3767_v55 = vsel %vm617_vm0, %v9603_v46, 0  ;;  %4264 = vmatpush.msrb.mxu1 %v9510_v5  ;;  %4309 = vmatpush.msrb.mxu2 %v4150_v44 }
 0x898   : > { %v9616_v42 = vand.u32 4294901760, %v3767_v55  ;;  %v3706_v0 = vpop.f32.mrf.mxu2  ;;  %v3800_v1 = vand.u32 4294901760, %v3799_v53  ;;  %4356 = vmatpush.msrb.mxu3 %v9495_v10 }
 0x899   : > { %v3707_v15 = vadd.f32 %v3706_v0, %v3654_v49  ;;  %4266 = vmatpush.msrb.mxu1 %v9521_v24  ;;  %4313 = vmatpush.msrb.mxu2 %v4156_v36 }
 0x89a   : > { %3801 = vmatmul.f32.vlgmr.msrb.gmra.mxu0 %v3800_v1  ;;  %3882 = vmatmul.f32.gmra.mxu1 %v9616_v42  ;;  %v3805_v21 = vsub.f32 %v3767_v55, %v9616_v42 }
 0x89b   : > { %v3744_v11 = vadd.f32 %v3743_v9, %v3707_v15  ;;  %4358 = vmatpush.msrb.mxu3 %v9502_v30  ;;  %4213 = vmatpush.msrb.mxu0 %v9499_v63 }
 0x89c   : > { %3929 = vmatmul.f32.gmra.mxu2 %v3805_v21  ;;  %v3806_v44 = vand.u32 4294901760, %v3805_v21  ;;  %4268 = vmatpush.msrb.mxu1 %v9532_v34 }
 0x89d   : > { %v9627_v10 = vmax.f32 %v3744_v11, 0.0  ;;  %4317 = vmatpush.msrb.mxu2 %v4162_v50  ;;  %4360 = vmatpush.msrb.mxu3 %v9510_v5 }
 0x89e   : > { %3971 = vmatmul.f32.gmra.mxu3 %v3806_v44  ;;  %v3807_v36 = vsub.f32 %v3805_v21, %v3806_v44  ;;  %4216 = vmatpush.msrb.mxu0 %v9513_v17 }
 0x89f   : > { %v3770_v30 = vsel %vm617_vm0, %v9627_v10, 0  ;;  %4270 = vmatpush.msrb.mxu1 %v9541_v61  ;;  %4321 = vmatpush.msrb.mxu2 %v4168_v33 }
 0x8a0   : > { %v3812_v63 = vand.u32 4294901760, %v3770_v30  ;;  %v3808_v32 = vand.u32 4294901760, %v3807_v36  ;;  %4362 = vmatpush.msrb.mxu3 %v9521_v24  ;;  %4219 = vmatpush.msrb.mxu0 %v9524_v47 }
 0x8a1   : > { %4272 = vmatpush.msrb.mxu1 %v9551_v23  ;;  %4325 = vmatpush.msrb.mxu2 %v4174_v16 }
 0x8a2   : > { %3809 = vmatmul.f32.gmra.mxu0 %v3808_v32  ;;  %3886 = vmatmul.f32.gmra.mxu1 %v3812_v63  ;;  %v3813_v5 = vsub.f32 %v3770_v30, %v3812_v63 }
 0x8a3   : > { %4364 = vmatpush.msrb.mxu3 %v9532_v34  ;;  %4222 = vmatpush.msrb.mxu0 %v9535_v6 }
 0x8a4   : > { %3934 = vmatmul.f32.gmra.mxu2 %v3813_v5  ;;  %v3814_v17 = vand.u32 4294901760, %v3813_v5  ;;  %4274 = vmatpush.msrb.mxu1 %v9565_v14 }
 0x8a5   : > { %4329 = vmatpush.msrb.mxu2 %v4180_v54  ;;  %4366 = vmatpush.msrb.mxu3 %v9541_v61 }
 0x8a6   : > { %3977 = vmatmul.f32.gmra.mxu3 %v3814_v17  ;;  %v3815_v24 = vsub.f32 %v3813_v5, %v3814_v17  ;;  %4225 = vmatpush.msrb.mxu0 %v9544_v20 }
 0x8a7   : > { %4333 = vmatpush.msrb.mxu2 %v4186_v26  ;;  %4368 = vmatpush.msrb.mxu3 %v9551_v23 }
 0x8a8   : > { %v3816_v47 = vand.u32 4294901760, %v3815_v24  ;;  %4228 = vmatpush.msrb.mxu0 %v9554_v40 }
 0x8a9   : > { %4370 = vmatpush.msrb.mxu3 %v9565_v14  ;;  %v8115_v14 = vld [vmem:[%s10249_s6 + $0x1] ss:$0 sm:$0xff] }
 0x8aa   : > { %3817 = vmatmul.f32.gmra.mxu0 %v3816_v47  ;;  %4059 = vmatmul.f32.vlgmr.msra.gmra.mxu1 %v9592_v4 }
 0x8ab   : > { %4231 = vmatpush.msrb.mxu0 %v9568_v22 }
 0x8ac   : > { %4114 = vmatmul.f32.vlgmr.msra.gmra.mxu2 %v3800_v1 }
 0x8ad   : > { %4234 = vmatpush.msrb.mxu0 %v9577_v41 }
 0x8ae   : > { %4191 = vmatmul.f32.vlgmr.msra.gmra.mxu3 %v9592_v4 }
 0x8b2   : > { %4022 = vmatmul.f32.vlgmr.msra.gmra.mxu0 %v9592_v4  ;;  %4063 = vmatmul.f32.gmra.mxu1 %v9616_v42 }
 0x8b4   : > { %4122 = vmatmul.f32.gmra.mxu2 %v3808_v32 }
 0x8b6   : > { %4195 = vmatmul.f32.gmra.mxu3 %v9616_v42 }
 0x8ba   : > { %4026 = vmatmul.f32.gmra.mxu0 %v9616_v42  ;;  %4067 = vmatmul.f32.gmra.mxu1 %v3812_v63 }
 0x8bc   : > { %4130 = vmatmul.f32.gmra.mxu2 %v3816_v47 }
 0x8be   : > { %4199 = vmatmul.f32.gmra.mxu3 %v3812_v63 }
 0x8c2   : > { %4030 = vmatmul.f32.gmra.mxu0 %v3812_v63  ;;  %4278 = vmatmul.f32.vlgmr.msrb.gmra.mxu1 %v9601_v48 }
 0x8c4   : > { %4335 = vmatmul.f32.vlgmr.msrb.gmra.mxu2 %v9592_v4 }
 0x8c6   : > { %4372 = vmatmul.f32.vlgmr.msrb.gmra.mxu3 %v9592_v4  ;;  %v8116_v4 = vld [vmem:[%s10251_s8 + $0x1] ss:$0 sm:$0xff] }
 0x8ca   : > { %4237 = vmatmul.f32.vlgmr.msrb.gmra.mxu0 %v9595_v39  ;;  %4284 = vmatmul.f32.gmra.mxu1 %v3806_v44 }
 0x8cc   : > { %4339 = vmatmul.f32.gmra.mxu2 %v9616_v42 }
 0x8ce   : > { %4376 = vmatmul.f32.gmra.mxu3 %v9616_v42 }
 0x8d2   : > { %4242 = vmatmul.f32.gmra.mxu0 %v3805_v21  ;;  %4290 = vmatmul.f32.gmra.mxu1 %v3814_v17 }
 0x8d4   : > { %4343 = vmatmul.f32.gmra.mxu2 %v3812_v63 }
 0x8d6   : > { %4380 = vmatmul.f32.gmra.mxu3 %v3812_v63 }
 0x8da   : > { %4247 = vmatmul.f32.gmra.mxu0 %v3813_v5 }
 0x90f   : > { %v3879_v34 = vpop.f32.mrf.mxu1 }
 0x917   : > { %v3802_v6 = vpop.f32.mrf.mxu0  ;;  %v3883_v61 = vpop.f32.mrf.mxu1 }
 0x918   : > { %v3925_v20 = vpop.f32.mrf.mxu2  ;;  %v3803_v54 = vadd.f32 %v8115_v14, %v3802_v6 }
 0x919   : > { %v3966_v50 = vpop.f32.mrf.mxu3 }
 0x91a   : > { %v3880_v41 = vadd.f32 %v3879_v34, %v3803_v54 }
 0x91c   : > { %v3926_v26 = vadd.f32 %v3925_v20, %v3880_v41 }
 0x91e   : > { %v3967_v51 = vadd.f32 %v3966_v50, %v3926_v26 }
 0x91f   : > { %v3810_v33 = vpop.f32.mrf.mxu0  ;;  %v3887_v23 = vpop.f32.mrf.mxu1 }
 0x920   : > { %v3930_v40 = vpop.f32.mrf.mxu2  ;;  %v3811_v28 = vadd.f32 %v8115_v14, %v3810_v33 }
 0x921   : > { %v3972_v16 = vpop.f32.mrf.mxu3 }
 0x922   : > { %v3884_v45 = vadd.f32 %v3883_v61, %v3811_v28 }
 0x924   : > { %v3931_v58 = vadd.f32 %v3930_v40, %v3884_v45 }
 0x926   : > { %v3973_v31 = vadd.f32 %v3972_v16, %v3931_v58 }
 0x927   : > { %v3818_v22 = vpop.f32.mrf.mxu0  ;;  %v4060_v59 = vpop.f32.mrf.mxu1 }
 0x928   : > { %v3935_v38 = vpop.f32.mrf.mxu2  ;;  %v3819_v44 = vadd.f32 %v8115_v14, %v3818_v22 }
 0x929   : > { %v9672_v19 = vpop.f32.mrf.mxu3 }
 0x92a   : > { %v3888_v17 = vadd.f32 %v3887_v23, %v3819_v44 }
 0x92c   : > { %v3936_v14 = vadd.f32 %v3935_v38, %v3888_v17 }
 0x92f   : > { %v4023_v13 = vpop.f32.mrf.mxu0  ;;  %v4064_v3 = vpop.f32.mrf.mxu1 }
 0x930   : > { %v4115_v52 = vpop.f32.mrf.mxu2  ;;  %v4024_v57 = vadd.f32 %v4023_v13, %v3967_v51 }
 0x931   : > { %v4192_v62 = vpop.f32.mrf.mxu3  ;;  %v4116_v25 = vadd.f32 %v8116_v4, %v4115_v52 }
 0x932   : > { %v4061_v27 = vadd.f32 %v4060_v59, %v4024_v57 }
 0x933   : > { %v4193_v53 = vadd.f32 %v4192_v62, %v4116_v25  ;;  %v3979_v62 = vadd.f32 %v9672_v19, %v3936_v14 }
 0x934   : > { %v4385_v37 = vsel %vm617_vm0, %v4061_v27, 0 }
 0x935   : > { %v9680_v48 = vand.u32 4294901760, %v4385_v37 }
 0x937   : > { %v4027_v56 = vpop.f32.mrf.mxu0  ;;  %v9674_v18 = vpop.f32.mrf.mxu1  ;;  %v9683_v42 = vsub.f32 %v4385_v37, %v9680_v48 }
 0x938   : > { %v4123_v8 = vpop.f32.mrf.mxu2  ;;  %v4028_v43 = vadd.f32 %v4027_v56, %v3973_v31 }
 0x939   : > { %v4196_v2 = vpop.f32.mrf.mxu3  ;;  %v4124_v21 = vadd.f32 %v8116_v4, %v4123_v8  ;;  %v4409_v36 = vand.u32 4294901760, %v9683_v42 }
 0x93a   : > { %v4065_v55 = vadd.f32 %v4064_v3, %v4028_v43  ;;  %v4933_v43 = vand.u32 4294901760, %v9587_v12 }
 0x93b   : > { %v4197_v32 = vadd.f32 %v4196_v2, %v4124_v21  ;;  %v4410_v34 = vsub.f32 %v9683_v42, %v4409_v36 }
 0x93c   : > { %v4537_v9 = vsel %vm617_vm0, %v4065_v55, 0 }
 0x93d   : > { %v9687_v63 = vand.u32 4294901760, %v4537_v9  ;;  %v4411_v23 = vand.u32 4294901760, %v4410_v34 }
 0x93f   : > { %v4031_v29 = vpop.f32.mrf.mxu0  ;;  %v4279_v7 = vpop.f32.mrf.mxu1  ;;  %v9694_v20 = vsub.f32 %v4537_v9, %v9687_v63 }
 0x940   : > { %v4131_v35 = vpop.f32.mrf.mxu2  ;;  %v4032_v45 = vadd.f32 %v4031_v29, %v3979_v62 }
 0x941   : > { %v4200_v39 = vpop.f32.mrf.mxu3  ;;  %v4132_v40 = vadd.f32 %v8116_v4, %v4131_v35  ;;  %v4561_v41 = vand.u32 4294901760, %v9694_v20 }
 0x942   : > { %v4069_v35 = vadd.f32 %v9674_v18, %v4032_v45 }
 0x943   : > { %v4201_v52 = vadd.f32 %v4200_v39, %v4132_v40  ;;  %v4562_v56 = vsub.f32 %v9694_v20, %v4561_v41 }
 0x945   : > { %v4563_v31 = vand.u32 4294901760, %v4562_v56 }
 0x947   : > { %v4238_v49 = vpop.f32.mrf.mxu0  ;;  %v4285_v24 = vpop.f32.mrf.mxu1 }
 0x948   : > { %v4239_v0 = vadd.f32 %v4238_v49, %v4193_v53  ;;  %v4336_v1 = vpop.f32.mrf.mxu2  ;;  %v4689_v53 = vsel %vm617_vm0, %v4069_v35, 0 }
 0x949   : > { %v4373_v15 = vpop.f32.mrf.mxu3 }
 0x94a   : > { %v4280_v11 = vadd.f32 %v4279_v7, %v4239_v0  ;;  %v4960_v0 = vsub.f32 %v9587_v12, %v4933_v43 }
 0x94c   : > { %v4337_v30 = vadd.f32 %v4336_v1, %v4280_v11  ;;  %v4711_v1 = vand.u32 4294901760, %v4689_v53  ;;  %v4961_v9 = vand.u32 4294901760, %v4960_v0 }
 0x94e   : > { %v4374_v5 = vadd.f32 %v4373_v15, %v4337_v30  ;;  %v4712_v21 = vsub.f32 %v4689_v53, %v4711_v1  ;;  %v4962_v11 = vsub.f32 %v4960_v0, %v4961_v9 }
 0x94f   : > { %v4243_v47 = vpop.f32.mrf.mxu0  ;;  %v4291_v8 = vpop.f32.mrf.mxu1 }
 0x950   : > { %v4388_v6 = vsel %vm617_vm0, %v4374_v5, 0  ;;  %v4244_v61 = vadd.f32 %v4243_v47, %v4197_v32  ;;  %v4340_v33 = vpop.f32.mrf.mxu2  ;;  %v4713_v44 = vand.u32 4294901760, %v4712_v21  ;;  %v9718_v5 = vand.u32 4294901760, %v9603_v46 }
 0x951   : > { %v4405_v50 = vand.u32 4294901760, %v4388_v6  ;;  %v4377_v59 = vpop.f32.mrf.mxu3 }
 0x952   : > { %v4286_v16 = vadd.f32 %v4285_v24, %v4244_v61 }
 0x953   : > { %v4432_v22 = vsub.f32 %v4388_v6, %v4405_v50  ;;  %4406 = vmatpush.xpose.msra.mxu0 %v4405_v50 }
 0x954   : > { %v4341_v54 = vadd.f32 %v4340_v33, %v4286_v16 }
 0x955   : > { %v4433_v13 = vand.u32 4294901760, %v4432_v22 }
 0x956   : > { %v4378_v3 = vadd.f32 %v4377_v59, %v4341_v54  ;;  %4412 = vmatmul.f32.vlgmr.msra.gmra.mxu0 %v4411_v23 }
 0x957   : > { %4459 = vmatpush.xpose.msrb.mxu0 %v4432_v22  ;;  %v4248_v26 = vpop.f32.mrf.mxu0  ;;  %v4434_v28 = vsub.f32 %v4432_v22, %v4433_v13 }
 0x958   : > { %v4540_v51 = vsel %vm617_vm0, %v4378_v3, 0  ;;  %v4249_v38 = vadd.f32 %v4248_v26, %v4201_v52  ;;  %v4344_v4 = vpop.f32.mrf.mxu2 }
 0x959   : > { %v4557_v57 = vand.u32 4294901760, %v4540_v51  ;;  %v4435_v2 = vand.u32 4294901760, %v4434_v28  ;;  %v4381_v37 = vpop.f32.mrf.mxu3 }
 0x95a   : > { %v4292_v58 = vadd.f32 %v4291_v8, %v4249_v38 }
 0x95b   : > { %4508 = vmatpush.xpose.msra.mxu0 %v4433_v13  ;;  %v4584_v27 = vsub.f32 %v4540_v51, %v4557_v57  ;;  %4436 = vmatpush.xpose.msra.mxu1 %v4435_v2 }
 0x95c   : > { %4558 = vmatpush.xpose.msra.mxu2 %v4557_v57  ;;  %v4345_v19 = vadd.f32 %v4344_v4, %v4292_v58 }
 0x95d   : > { %v4585_v39 = vand.u32 4294901760, %v4584_v27 }
 0x95e   : > { %v4382_v25 = vadd.f32 %v4381_v37, %v4345_v19  ;;  %4438 = vmatmul.f32.vlgmr.msra.gmra.mxu1 %v9680_v48  ;;  %4462 = vmatmul.f32.vlgmr.msrb.gmra.mxu0 %v9683_v42  ;;  %v4963_v42 = vand.u32 4294901760, %v4962_v11 }
 0x95f   : > { %4482 = vmatpush.xpose.msrb.mxu1 %v4405_v50  ;;  %4564 = vmatmul.f32.vlgmr.msra.gmra.mxu2 %v4563_v31  ;;  %v4586_v29 = vsub.f32 %v4584_v27, %v4585_v39 }
 0x960   : > { %4611 = vmatpush.xpose.msrb.mxu0 %v4584_v27  ;;  %v4692_v7 = vsel %vm617_vm0, %v4382_v25, 0  ;;  %4660 = vmatpush.xpose.msrb.mxu2 %v4585_v39 }
 0x961   : > { %v4709_v55 = vand.u32 4294901760, %v4692_v7  ;;  %v4587_v18 = vand.u32 4294901760, %v4586_v29 }
 0x963   : > { %4530 = vmatpush.xpose.msra.mxu1 %v4405_v50  ;;  %v4736_v49 = vsub.f32 %v4692_v7, %v4709_v55  ;;  %4588 = vmatpush.xpose.msra.mxu3 %v4587_v18 }
 0x965   : > { %v4737_v15 = vand.u32 4294901760, %v4736_v49  ;;  %4763 = vmatpush.xpose.msra.mxu2 %v4736_v49 }
 0x966   : > { %4486 = vmatmul.f32.vlgmr.msrb.gmra.mxu1 %v4409_v36  ;;  %4510 = vmatmul.f32.vlgmr.msra.gmra.mxu0 %v9680_v48  ;;  %v4714_v36 = vsub.f32 %v4712_v21, %v4713_v44 }
 0x967   : > { %4682 = vmatpush.xpose.msrb.mxu3 %v4557_v57  ;;  %4634 = vmatpush.xpose.msrb.mxu1 %v4557_v57  ;;  %v4738_v12 = vsub.f32 %v4736_v49, %v4737_v15 }
 0x968   : > { %4590 = vmatmul.f32.vlgmr.msra.gmra.mxu3 %v9687_v63  ;;  %4662 = vmatmul.f32.vlgmr.msrb.gmra.mxu2 %v9687_v63  ;;  %v4715_v32 = vand.u32 4294901760, %v4714_v36 }
 0x969   : > { %4710 = vmatpush.xpose.msra.mxu0 %v4709_v55  ;;  %4934 = vmatpush.msrb.mxu2 %v4933_v43  ;;  %v4739_v30 = vand.u32 4294901760, %v4738_v12 }
 0x96b   : > { %4786 = vmatpush.xpose.msra.mxu3 %v4709_v55 }
 0x96e   : > { %4532 = vmatmul.f32.vlgmr.msra.gmra.mxu1 %v9680_v48  ;;  %4614 = vmatmul.f32.vlgmr.msrb.gmra.mxu0 %v9694_v20  ;;  %v9724_v48 = vsub.f32 %v9603_v46, %v9718_v5 }
 0x96f   : > { %4740 = vmatpush.xpose.msra.mxu1 %v4739_v30  ;;  %4812 = vmatpush.xpose.msrb.mxu0 %v4737_v15 }
 0x970   : > { %4684 = vmatmul.f32.vlgmr.msrb.gmra.mxu3 %v9687_v63  ;;  %4766 = vmatmul.f32.vlgmr.msra.gmra.mxu2 %v4712_v21  ;;  %v5110_v63 = vand.u32 4294901760, %v9724_v48 }
 0x971   : > { %4964 = vmatpush.msrb.mxu3 %v4963_v42  ;;  %5036 = vmatpush.msra.mxu2 %v4961_v9 }
 0x972   : > { %v5111_v17 = vsub.f32 %v9724_v48, %v5110_v63 }
 0x974   : > { %v5112_v24 = vand.u32 4294901760, %v5111_v17 }
 0x976   : > { %4638 = vmatmul.f32.vlgmr.msrb.gmra.mxu1 %v4561_v41  ;;  %4716 = vmatmul.f32.vlgmr.msra.gmra.mxu0 %v4715_v32 }
 0x977   : > { %4834 = vmatpush.xpose.msrb.mxu1 %v4709_v55  ;;  %4987 = vmatpush.msra.mxu0 %v4960_v0 }
 0x978   : > { %4790 = vmatmul.f32.vlgmr.msra.gmra.mxu3 %v4713_v44 }
 0x979   : > { %5058 = vmatpush.msra.mxu3 %v4933_v43 }
 0x97e   : > { %4742 = vmatmul.f32.vlgmr.msra.gmra.mxu1 %v4711_v1  ;;  %4814 = vmatmul.f32.vlgmr.msrb.gmra.mxu0 %v4711_v1 }
 0x97f   : > { %5010 = vmatpush.msra.mxu1 %v4933_v43  ;;  %5083 = vmatpush.msrb.mxu0 %v9718_v5 }
 0x986   : > { %4836 = vmatmul.f32.vlgmr.msrb.gmra.mxu1 %v4711_v1 }
 0x987   : > { %5113 = vmatpush.msrb.mxu1 %v5112_v24 }
 0x9d3   : > { %v4413_v47 = vpop.f32.mrf.mxu0 }
 0x9db   : > { %v4439_v34 = vpop.f32.mrf.mxu1  ;;  %v4463_v6 = vpop.f32.mrf.mxu0 }
 0x9dc   : > { %v4440_v61 = vadd.f32 %v4439_v34, %v4413_v47 }
 0x9de   : > { %v4464_v50 = vadd.f32 %v4463_v6, %v4440_v61  ;;  %v9747_v61 = vand.u32 4294901760, %v9627_v10 }
 0x9e2   : > { %v4565_v40 = vpop.f32.mrf.mxu2 }
 0x9e3   : > { %v4487_v46 = vpop.f32.mrf.mxu1  ;;  %v4511_v20 = vpop.f32.mrf.mxu0 }
 0x9e4   : > { %v4488_v33 = vadd.f32 %v4487_v46, %v4464_v50 }
 0x9e6   : > { %v4512_v16 = vadd.f32 %v4511_v20, %v4488_v33 }
 0x9eb   : > { %v4591_v14 = vpop.f32.mrf.mxu3  ;;  %v4533_v22 = vpop.f32.mrf.mxu1 }
 0x9ec   : > { %v4534_v59 = vadd.f32 %v4533_v22, %v4512_v16  ;;  %v4615_v23 = vpop.f32.mrf.mxu0  ;;  %v4592_v54 = vadd.f32 %v4591_v14, %v4565_v40  ;;  %v4663_v3 = vpop.f32.mrf.mxu2  ;;  %v9751_v40 = vsub.f32 %v9627_v10, %v9747_v61 }
 0x9ee   : > { %v4840_v41 = vsel %vm1813_vm13, %v4534_v59, -1e+30  ;;  %v4616_v52 = vadd.f32 %v4615_v23, %v4592_v54 }
 0x9ef   : > { %v4843_v13 = vsel %vm2906_vm14, %v4840_v41, -inf }
 0x9f0   : > { %4844 = vmax.xlane.f32.xlu0 %v4843_v13 }
 0x9f3   : > { %v4639_v62 = vpop.f32.mrf.mxu1  ;;  %v4685_v28 = vpop.f32.mrf.mxu3 }
 0x9f4   : > { %v4640_v26 = vadd.f32 %v4639_v62, %v4616_v52  ;;  %v4717_v38 = vpop.f32.mrf.mxu0  ;;  %v4767_v58 = vpop.f32.mrf.mxu2 }
 0x9f6   : > { %v4664_v51 = vadd.f32 %v4663_v3, %v4640_v26 }
 0x9f8   : > { %v4686_v56 = vadd.f32 %v4685_v28, %v4664_v51 }
 0x9fa   : > { %v4841_v45 = vsel %vm1813_vm13, %v4686_v56, -1e+30 }
 0x9fb   : > { %v4743_v8 = vpop.f32.mrf.mxu1  ;;  %v4846_v57 = vsel %vm2906_vm14, %v4841_v45, -inf  ;;  %v4791_v4 = vpop.f32.mrf.mxu3 }
 0x9fc   : > { %v4744_v2 = vadd.f32 %v4743_v8, %v4717_v38  ;;  %4847 = vmax.xlane.f32.xlu1 %v4846_v57  ;;  %v4815_v31 = vpop.f32.mrf.mxu0 }
 0x9fe   : > { %v4768_v27 = vadd.f32 %v4767_v58, %v4744_v2 }
 0xa00   : > { %v4792_v19 = vadd.f32 %v4791_v4, %v4768_v27 }
 0xa02   : > { %v4816_v35 = vadd.f32 %v4815_v31, %v4792_v19 }
 0xa03   : > { %v4837_v37 = vpop.f32.mrf.mxu1 }
 0xa04   : > { %v4838_v39 = vadd.f32 %v4837_v37, %v4816_v35 }
 0xa06   : > { %v4842_v25 = vsel %vm1813_vm13, %v4838_v39, -1e+30 }
 0xa07   : > { %v4849_v29 = vsel %vm2906_vm14, %v4842_v25, -inf }
 0xa08   : > { %4850 = vmax.xlane.f32.xlu2 %v4849_v29 }
 0xa63   : > { %v4845_v43 = vpop.xlane.xlu0 %4844 }
 0xa64   : > { %v4852_v7 = vsub.f32 %v4840_v41, %v4845_v43  ;;  %v5259_v41 = vand.u32 4294901760, %v9751_v40 }
 0xa66   : > { %v4855_v53 = vmul.f32 1.442695, %v4852_v7  ;;  %v5260_v51 = vsub.f32 %v9751_v40, %v5259_v41 }
 0xa68   : > { %8181 = vpow2.f32 %v4855_v53  ;;  %v5261_v58 = vand.u32 4294901760, %v5260_v51  ;;  %v5363_v51 = vld [vmem:[#allocation12 + $0x40] sm:$0xff] }
 0xa6e   : > { %v8182_v55 = vpop.eup %8181 }
 0xa6f   : > { %v4848_v18 = vpop.xlane.xlu1 %4847  ;;  %v4861_v49 = vsel %vm2906_vm14, %v8182_v55, 0.0 }
 0xa70   : > { %v4853_v0 = vsub.f32 %v4841_v45, %v4848_v18  ;;  %4862 = vadd.xlane.f32.xlu0 %v4861_v49 }
 0xa72   : > { %v4857_v1 = vmul.f32 1.442695, %v4853_v0 }
 0xa74   : > { %8183 = vpow2.f32 %v4857_v1 }
 0xa7a   : > { %v8184_v15 = vpop.eup %8183 }
 0xa7b   : > { %v4851_v9 = vpop.xlane.xlu2 %4850  ;;  %v4864_v21 = vsel %vm2906_vm14, %v8184_v15, 0.0 }
 0xa7c   : > { %v4854_v12 = vsub.f32 %v4842_v25, %v4851_v9  ;;  %4865 = vadd.xlane.f32.xlu1 %v4864_v21 }
 0xa7e   : > { %v4859_v11 = vmul.f32 1.442695, %v4854_v12  ;;  %v5370_v12 = vld [vmem:[#allocation12 + $0x78] sm:$0xff] }
 0xa80   : > { %8185 = vpow2.f32 %v4859_v11  ;;  %v9772_v11 = vand.u32 4294901760, %v5370_v12 }
 0xa86   : > { %v9742_v44 = vpop.eup %8185 }
 0xa87   : > { %v4867_v30 = vsel %vm2906_vm14, %v9742_v44, 0.0 }
 0xa88   : > { %4868 = vadd.xlane.f32.xlu2 %v4867_v30  ;;  %v9775_v30 = vsub.f32 %v5370_v12, %v9772_v11 }
 0xae3   : > { %v4863_v42 = vpop.xlane.xlu0 %4862 }
 0xae4   : > { %8187 = vrcp.f32 %v4863_v42  ;;  %v4881_v24 = vand.u32 2147483648, %v4863_v42  ;;  %v4879_v34 = vand.u32 2147483647, %v4863_v42  ;;  %vm4875_vm15 = vweird.f32 %v4863_v42 }
 0xae6   : > { %v4882_v20 = vor.u32 1.1754944e-38, %v4881_v24  ;;  %vm4880_vm3 = vcmp.eq.f32.partialorder %v4879_v34, 8.507059e+37 }
 0xaea   : > { %v8188_v36 = vpop.eup %8187 }
 0xaeb   : > { %v4871_v32 = vmul.f32 %v8188_v36, %v4863_v42  ;;  %vm4876_vm12 = vweird.f32 %v8188_v36 }
 0xaec   : > { %vm4877_vm1 = vmor %vm4875_vm15, %vm4876_vm12 }
 0xaed   : > { %v4872_v17 = vsub.f32 1.0, %v4871_v32  ;;  %v5444_v32 = vand.u32 4294901760, %v9775_v30 }
 0xaef   : > { %v4873_v47 = vmul.f32 %v8188_v36, %v4872_v17  ;;  %v4866_v6 = vpop.xlane.xlu1 %4865  ;;  %v5445_v34 = vsub.f32 %v9775_v30, %v5444_v32 }
 0xaf0   : > { %8189 = vrcp.f32 %v4866_v6  ;;  %v4896_v13 = vand.u32 2147483648, %v4866_v6  ;;  %v4894_v62 = vand.u32 2147483647, %v4866_v6  ;;  %vm4890_vm5 = vweird.f32 %v4866_v6 }
 0xaf1   : > { %v4874_v46 = vadd.f32 %v8188_v36, %v4873_v47  ;;  %v5367_v47 = vld [vmem:[#allocation12 + $0x60] sm:$0xff] }
 0xaf2   : > { %v4897_v38 = vor.u32 1.1754944e-38, %v4896_v13  ;;  %vm4895_vm2 = vcmp.eq.f32.partialorder %v4894_v62, 8.507059e+37 }
 0xaf3   : > { %v4878_v50 = vsel %vm4877_vm1, %v8188_v36, %v4874_v46  ;;  %v5368_v36 = vld [vmem:[#allocation12 + $0x68] sm:$0xff]  ;;  %v9798_v46 = vand.u32 4294901760, %v5367_v47 }
 0xaf4   : > { %v4883_v33 = vsel %vm4880_vm3, %v4882_v20, %v4878_v50  ;;  %v9786_v24 = vand.u32 4294901760, %v5368_v36  ;;  %v5366_v20 = vld [vmem:[#allocation12 + $0x58] sm:$0xff]  ;;  %v5446_v50 = vand.u32 4294901760, %v5445_v34 }
 0xaf5   : > { %v4884_v16 = vmul.f32 %v8182_v55, %v4883_v33 }
 0xaf6   : > { %v8190_v14 = vpop.eup %8189 }
 0xaf7   : > { %v4886_v22 = vmul.f32 %v8190_v14, %v4866_v6  ;;  %v4916_v59 = vsel %vm2906_vm14, %v4884_v16, 0  ;;  %vm4891_vm4 = vweird.f32 %v8190_v14  ;;  %v5461_v16 = vsub.f32 %v5367_v47, %v9798_v46 }
 0xaf8   : > { %v4935_v23 = vand.u32 4294901760, %v4916_v59  ;;  %vm4892_vm6 = vmor %vm4890_vm5, %vm4891_vm4 }
 0xaf9   : > { %v4887_v54 = vsub.f32 1.0, %v4886_v22  ;;  %v5365_v22 = vld [vmem:[#allocation12 + $0x50] sm:$0xff] }
 0xafa   : > { %4966 = vmatmul.f32.vlgmr.msrb.gmra.mxu3 %v4935_v23  ;;  %v4936_v52 = vsub.f32 %v4916_v59, %v4935_v23 }
 0xafb   : > { %v4888_v3 = vmul.f32 %v8190_v14, %v4887_v54  ;;  %5159 = vmatpush.msrb.mxu3 %v9718_v5  ;;  %v4869_v26 = vpop.xlane.xlu2 %4868  ;;  %v5462_v54 = vand.u32 4294901760, %v5461_v16 }
 0xafc   : > { %8191 = vrcp.f32 %v4869_v26  ;;  %4990 = vmatmul.f32.vlgmr.msra.gmra.mxu0 %v4936_v52  ;;  %v4937_v28 = vand.u32 4294901760, %v4936_v52  ;;  %v4911_v35 = vand.u32 2147483648, %v4869_v26  ;;  %v4909_v25 = vand.u32 2147483647, %v4869_v26 }
 0xafd   : > { %v4889_v10 = vadd.f32 %v8190_v14, %v4888_v3  ;;  %5185 = vmatpush.msra.mxu0 %v5110_v63  ;;  %vm4905_vm8 = vweird.f32 %v4869_v26  ;;  %v5463_v62 = vsub.f32 %v5461_v16, %v5462_v54 }
 0xafe   : > { %5014 = vmatmul.f32.vlgmr.msra.gmra.mxu1 %v4937_v28  ;;  %v4938_v45 = vsub.f32 %v4936_v52, %v4937_v28  ;;  %v4912_v43 = vor.u32 1.1754944e-38, %v4911_v35  ;;  %vm4910_vm10 = vcmp.eq.f32.partialorder %v4909_v25, 8.507059e+37  ;;  %v5364_v52 = vld [vmem:[#allocation12 + $0x48] sm:$0xff] }
 0xaff   : > { %v4893_v56 = vsel %vm4892_vm6, %v8190_v14, %v4889_v10  ;;  %5207 = vmatpush.msra.mxu1 %v9718_v5  ;;  %v5401_v14 = vand.u32 4294901760, %v5366_v20  ;;  %v5405_v10 = vand.u32 4294901760, %v5364_v52 }
 0xb00   : > { %v4898_v8 = vsel %vm4895_vm2, %v4897_v38, %v4893_v56  ;;  %v4939_v2 = vand.u32 4294901760, %v4938_v45  ;;  %v5464_v38 = vand.u32 4294901760, %v5463_v62 }
 0xb01   : > { %v4899_v57 = vmul.f32 %v8184_v15, %v4898_v8  ;;  %v5467_v13 = vsub.f32 %v5366_v20, %v5401_v14  ;;  %v5479_v45 = vsub.f32 %v5364_v52, %v5405_v10  ;;  %v5407_v8 = vand.u32 4294901760, %v5363_v51 }
 0xb02   : > { %v8192_v27 = vpop.eup %8191  ;;  %5060 = vmatmul.f32.vlgmr.msra.gmra.mxu3 %v4935_v23  ;;  %4940 = vmatmul.f32.vlgmr.msrb.gmra.mxu2 %v4939_v2 }
 0xb03   : > { %v4901_v63 = vmul.f32 %v8192_v27, %v4869_v26  ;;  %5262 = vmatpush.msra.mxu3 %v5261_v58  ;;  %v5065_v4 = vsel %vm2906_vm14, %v4899_v57, 0  ;;  %5136 = vmatpush.msrb.mxu2 %v9724_v48  ;;  %vm4906_vm7 = vweird.f32 %v8192_v27  ;;  %v5468_v28 = vand.u32 4294901760, %v5467_v13 }
 0xb04   : > { %v5084_v19 = vand.u32 4294901760, %v5065_v4  ;;  %vm4907_vm9 = vmor %vm4905_vm8, %vm4906_vm7  ;;  %v5480_v58 = vand.u32 4294901760, %v5479_v45 }
 0xb05   : > { %v4902_v31 = vsub.f32 1.0, %v4901_v63  ;;  %v5469_v57 = vsub.f32 %v5467_v13, %v5468_v28 }
 0xb06   : > { %v5085_v37 = vsub.f32 %v5065_v4, %v5084_v19  ;;  %5115 = vmatmul.f32.vlgmr.msrb.gmra.mxu1 %v5084_v19 }
 0xb07   : > { %v4903_v39 = vmul.f32 %v8192_v27, %v4902_v31  ;;  %5308 = vmatpush.msrb.mxu1 %v9747_v61  ;;  %v5470_v63 = vand.u32 4294901760, %v5469_v57 }
 0xb08   : > { %v5086_v5 = vand.u32 4294901760, %v5085_v37 }
 0xb09   : > { %v4904_v29 = vadd.f32 %v8192_v27, %v4903_v39 }
 0xb0a   : > { %5163 = vmatmul.f32.vlgmr.msrb.gmra.mxu3 %v5086_v5  ;;  %v5087_v7 = vsub.f32 %v5085_v37, %v5086_v5  ;;  %5038 = vmatmul.f32.vlgmr.msra.gmra.mxu2 %v4935_v23 }
 0xb0b   : > { %v4908_v53 = vsel %vm4907_vm9, %v8192_v27, %v4904_v29  ;;  %5356 = vmatpush.msrb.mxu3 %v9747_v61  ;;  %5232 = vmatpush.msra.mxu2 %v9747_v61  ;;  %v9795_v61 = vsub.f32 %v5368_v36, %v9786_v24  ;;  %v5485_v27 = vsub.f32 %v5363_v51, %v5407_v8  ;;  %vm7641_vm9 = vcmask 1042434  }
 0xb0c   : > { %v4913_v48 = vsel %vm4910_vm10, %v4912_v43, %v4908_v53  ;;  %v5088_v55 = vand.u32 4294901760, %v5087_v7 }
 0xb0d   : > { %v4914_v18 = vmul.f32 %v9742_v44, %v4913_v48  ;;  %v5369_v44 = vld [vmem:[#allocation12 + $0x70] sm:$0xff]  ;;  %v5486_v31 = vand.u32 4294901760, %v5485_v27 }
 0xb0e   : > { %5089 = vmatmul.f32.vlgmr.msrb.gmra.mxu0 %v5088_v55  ;;  %5209 = vmatmul.f32.vlgmr.msra.gmra.mxu1 %v5084_v19  ;;  %v9777_v42 = vand.u32 4294901760, %v5369_v44 }
 0xb0f   : > { %5285 = vmatpush.msrb.mxu0 %v9751_v40  ;;  %v5214_v49 = vsel %vm2906_vm14, %v4914_v18, 0  ;;  %v5456_v40 = vand.u32 4294901760, %v9795_v61  ;;  %5447 = vmatpush.msra.mxu1 %v5446_v50 }
 0xb10   : > { %v5233_v0 = vand.u32 4294901760, %v5214_v49  ;;  %v9783_v17 = vsub.f32 %v5369_v44, %v9777_v42 }
 0xb11   : > { %v5457_v23 = vsub.f32 %v9795_v61, %v5456_v40 }
 0xb12   : > { %v5234_v1 = vsub.f32 %v5214_v49, %v5233_v0  ;;  %5264 = vmatmul.f32.vlgmr.msra.gmra.mxu3 %v5233_v0  ;;  %5139 = vmatmul.f32.vlgmr.msrb.gmra.mxu2 %v5085_v37  ;;  %v5450_v6 = vand.u32 4294901760, %v9783_v17  ;;  %v5487_v37 = vsub.f32 %v5485_v27, %v5486_v31 }
 0xb13   : > { %5334 = vmatpush.msrb.mxu2 %v5259_v41  ;;  %5560 = vmatpush.msra.mxu3 %v9772_v11  ;;  %v5403_v41 = vand.u32 4294901760, %v5365_v22  ;;  %v5458_v3 = vand.u32 4294901760, %v5457_v23 }
 0xb14   : > { %v5235_v15 = vand.u32 4294901760, %v5234_v1  ;;  %v5451_v33 = vsub.f32 %v9783_v17, %v5450_v6  ;;  %v5488_v39 = vand.u32 4294901760, %v5487_v37 }
 0xb15   : > { %5562 = vmatpush.msra.mxu3 %v9777_v42  ;;  %v5473_v26 = vsub.f32 %v5365_v22, %v5403_v41 }
 0xb16   : > { %5187 = vmatmul.f32.vlgmr.msra.gmra.mxu0 %v5084_v19  ;;  %v5236_v9 = vsub.f32 %v5234_v1, %v5235_v15  ;;  %5312 = vmatmul.f32.vlgmr.msrb.gmra.mxu1 %v5235_v15  ;;  %v5452_v59 = vand.u32 4294901760, %v5451_v33  ;;  %v5481_v19 = vsub.f32 %v5479_v45, %v5480_v58 }
 0xb17   : > { %5394 = vmatpush.msra.mxu0 %v9772_v11  ;;  %5564 = vmatpush.msra.mxu3 %v9786_v24  ;;  %v5474_v56 = vand.u32 4294901760, %v5473_v26 }
 0xb18   : > { %v5237_v21 = vand.u32 4294901760, %v5236_v9  ;;  %5453 = vmatpush.msra.mxu1 %v5452_v59  ;;  %v5482_v35 = vand.u32 4294901760, %v5481_v19 }
 0xb19   : > { %5396 = vmatpush.msra.mxu0 %v9777_v42  ;;  %5566 = vmatpush.msra.mxu3 %v9798_v46  ;;  %v5475_v2 = vsub.f32 %v5473_v26, %v5474_v56 }
 0xb1a   : > { %5358 = vmatmul.f32.vlgmr.msrb.gmra.mxu3 %v5233_v0  ;;  %5238 = vmatmul.f32.vlgmr.msra.gmra.mxu2 %v5237_v21 }
 0xb1b   : > { %5513 = vmatpush.msra.mxu2 %v9775_v30  ;;  %5398 = vmatpush.msra.mxu0 %v9786_v24  ;;  %v5476_v4 = vand.u32 4294901760, %v5475_v2  ;;  %v5694_v2 = vld [vmem:[#allocation9 + $0xb0] sm:$0xff] }
 0xb1c   : > { %5568 = vmatpush.msra.mxu3 %v5401_v14  ;;  %5459 = vmatpush.msra.mxu1 %v5458_v3 }
 0xb1d   : > { %5516 = vmatpush.msra.mxu2 %v9783_v17  ;;  %5400 = vmatpush.msra.mxu0 %v9798_v46 }
 0xb1e   : > { %5288 = vmatmul.f32.vlgmr.msrb.gmra.mxu0 %v5234_v1  ;;  %5570 = vmatpush.msra.mxu3 %v5403_v41 }
 0xb1f   : > { %5519 = vmatpush.msra.mxu2 %v9795_v61  ;;  %5402 = vmatpush.msra.mxu0 %v5401_v14 }
 0xb20   : > { %5572 = vmatpush.msra.mxu3 %v5405_v10  ;;  %5465 = vmatpush.msra.mxu1 %v5464_v38 }
 0xb21   : > { %5522 = vmatpush.msra.mxu2 %v5461_v16  ;;  %5404 = vmatpush.msra.mxu0 %v5403_v41 }
 0xb22   : > { %5336 = vmatmul.f32.vlgmr.msrb.gmra.mxu2 %v5233_v0  ;;  %5574 = vmatpush.msra.mxu3 %v5407_v8 }
 0xb23   : > { %5525 = vmatpush.msra.mxu2 %v5467_v13  ;;  %5406 = vmatpush.msra.mxu0 %v5405_v10 }
 0xb24   : > { %5471 = vmatpush.msra.mxu1 %v5470_v63  ;;  %v5693_v63 = vld [vmem:[#allocation9 + $0xa8] sm:$0xff] }
 0xb25   : > { %5528 = vmatpush.msra.mxu2 %v5473_v26  ;;  %5408 = vmatpush.msra.mxu0 %v5407_v8 }
 0xb26   : > { %5477 = vmatpush.msra.mxu1 %v5476_v4 }
 0xb27   : > { %5531 = vmatpush.msra.mxu2 %v5479_v45  ;;  %5605 = vmatpush.msrb.mxu0 %v5444_v32 }
 0xb28   : > { %5483 = vmatpush.msra.mxu1 %v5482_v35  ;;  %v5692_v35 = vld [vmem:[#allocation9 + $0xa0] sm:$0xff] }
 0xb29   : > { %5534 = vmatpush.msra.mxu2 %v5485_v27  ;;  %5609 = vmatpush.msrb.mxu0 %v5450_v6  ;;  %v9823_v27 = vand.u32 4294901760, %v5694_v2 }
 0xb2a   : > { %5489 = vmatpush.msra.mxu1 %v5488_v39 }
 0xb2b   : > { %5613 = vmatpush.msrb.mxu0 %v5456_v40  ;;  %v9829_v19 = vsub.f32 %v5694_v2, %v9823_v27 }
 0xb2c   : > { %5656 = vmatpush.msrb.mxu1 %v9772_v11 }
 0xb2d   : > { %5617 = vmatpush.msrb.mxu0 %v5462_v54  ;;  %v5775_v39 = vand.u32 4294901760, %v9829_v19 }
 0xb2e   : > { %5658 = vmatpush.msrb.mxu1 %v9777_v42 }
 0xb2f   : > { %5621 = vmatpush.msrb.mxu0 %v5468_v28 }
 0xb30   : > { %5660 = vmatpush.msrb.mxu1 %v9786_v24 }
 0xb31   : > { %5625 = vmatpush.msrb.mxu0 %v5474_v56 }
 0xb32   : > { %5662 = vmatpush.msrb.mxu1 %v9798_v46 }
 0xb33   : > { %5629 = vmatpush.msrb.mxu0 %v5480_v58 }
 0xb34   : > { %5664 = vmatpush.msrb.mxu1 %v5401_v14 }
 0xb35   : > { %5633 = vmatpush.msrb.mxu0 %v5486_v31  ;;  %v9832_v31 = vand.u32 4294901760, %v5693_v63 }
 0xb36   : > { %5666 = vmatpush.msrb.mxu1 %v5403_v41 }
 0xb38   : > { %5668 = vmatpush.msrb.mxu1 %v5405_v10 }
 0xb3a   : > { %5670 = vmatpush.msrb.mxu1 %v5407_v8  ;;  %v5695_v8 = vld [vmem:[#allocation9 + $0xb8] sm:$0xff] }
 0xb3b   : > { %v9818_v57 = vand.u32 4294901760, %v5695_v8 }
 0xb3d   : > { %v9821_v58 = vsub.f32 %v5695_v8, %v9818_v57  ;;  %5719 = vmatpush.msrb.mxu2 %v9818_v57 }
 0xb3f   : > { %v5769_v4 = vand.u32 4294901760, %v9821_v58  ;;  %5721 = vmatpush.msrb.mxu2 %v9823_v27 }
 0xb41   : > { %v5770_v37 = vsub.f32 %v9821_v58, %v5769_v4  ;;  %5723 = vmatpush.msrb.mxu2 %v9832_v31 }
 0xb79   : > { %v4991_v5 = vpop.f32.mrf.mxu0 }
 0xb7b   : > { %v5015_v29 = vpop.f32.mrf.mxu1 }
 0xb7d   : > { %v4967_v25 = vpop.f32.mrf.mxu3 }
 0xb83   : > { %v5116_v1 = vpop.f32.mrf.mxu1 }
 0xb85   : > { %v4941_v43 = vpop.f32.mrf.mxu2  ;;  %v5061_v48 = vpop.f32.mrf.mxu3 }
 0xb86   : > { %v4968_v7 = vadd.f32 %v4967_v25, %v4941_v43  ;;  %v9841_v25 = vsub.f32 %v5693_v63, %v9832_v31  ;;  %v5771_v43 = vand.u32 4294901760, %v5770_v37 }
 0xb88   : > { %v4992_v53 = vadd.f32 %v4991_v5, %v4968_v7  ;;  %v9844_v5 = vand.u32 4294901760, %v5692_v35  ;;  %v5776_v7 = vsub.f32 %v9829_v19, %v5775_v39  ;;  %5772 = vmatpush.msrb.mxu3 %v5771_v43 }
 0xb8a   : > { %v5016_v18 = vadd.f32 %v5015_v29, %v4992_v53  ;;  %v5691_v29 = vld [vmem:[#allocation9 + $0x98] sm:$0xff]  ;;  %v5781_v53 = vand.u32 4294901760, %v9841_v25  ;;  %5725 = vmatpush.msrb.mxu2 %v9844_v5 }
 0xb8b   : > { %v5090_v55 = vpop.f32.mrf.mxu0  ;;  %v5210_v24 = vpop.f32.mrf.mxu1 }
 0xb8c   : > { %v5117_v11 = vadd.f32 %v5116_v1, %v5090_v55  ;;  %v9855_v55 = vand.u32 4294901760, %v5691_v29 }
 0xb8d   : > { %v5039_v49 = vpop.f32.mrf.mxu2  ;;  %v5164_v12 = vpop.f32.mrf.mxu3 }
 0xb8e   : > { %v5040_v0 = vadd.f32 %v5039_v49, %v5016_v18  ;;  %v5690_v18 = vld [vmem:[#allocation9 + $0x90] sm:$0xff]  ;;  %v5777_v49 = vand.u32 4294901760, %v5776_v7  ;;  %5727 = vmatpush.msrb.mxu2 %v9855_v55 }
 0xb90   : > { %v5062_v15 = vadd.f32 %v5061_v48, %v5040_v0  ;;  %v5786_v48 = vsub.f32 %v5692_v35, %v9844_v5  ;;  %v5782_v0 = vsub.f32 %v9841_v25, %v5781_v53  ;;  %5778 = vmatpush.msrb.mxu3 %v5777_v49 }
 0xb92   : > { %v5377_v9 = vsel %vm617_vm0, %v5062_v15, 0  ;;  %v5787_v1 = vand.u32 4294901760, %v5786_v48  ;;  %v9859_v15 = vand.u32 4294901760, %v5690_v18 }
 0xb93   : > { %v5409_v21 = vand.u32 4294901760, %v5377_v9  ;;  %v5188_v30 = vpop.f32.mrf.mxu0  ;;  %v5313_v59 = vpop.f32.mrf.mxu1 }
 0xb94   : > { %5729 = vmatpush.msrb.mxu2 %v9859_v15 }
 0xb95   : > { %v5410_v44 = vsub.f32 %v5377_v9, %v5409_v21  ;;  %v5140_v42 = vpop.f32.mrf.mxu2  ;;  %5491 = vmatmul.f32.vlgmr.msra.gmra.mxu1 %v5409_v21  ;;  %v5265_v46 = vpop.f32.mrf.mxu3  ;;  %v5792_v9 = vsub.f32 %v5691_v29, %v9855_v55  ;;  %v6012_v29 = vld [vmem:[#allocation11 + $0x90] sm:$0xff] }
 0xb96   : > { %v5141_v36 = vadd.f32 %v5140_v42, %v5117_v11  ;;  %5885 = vmatpush.msra.mxu1 %v9818_v57  ;;  %v5788_v11 = vsub.f32 %v5786_v48, %v5787_v1 }
 0xb97   : > { %v5411_v32 = vand.u32 4294901760, %v5410_v44  ;;  %5537 = vmatmul.f32.vlgmr.msra.gmra.mxu2 %v5410_v44  ;;  %v5793_v42 = vand.u32 4294901760, %v5792_v9 }
 0xb98   : > { %v5165_v17 = vadd.f32 %v5164_v12, %v5141_v36  ;;  %5887 = vmatpush.msra.mxu1 %v9823_v27  ;;  %v5783_v12 = vand.u32 4294901760, %v5782_v0  ;;  %v5688_v36 = vld [vmem:[#allocation9 + $0x80] sm:$0xff]  ;;  %v6011_v0 = vld [vmem:[#allocation11 + $0x88] sm:$0xff] }
 0xb99   : > { %v5412_v47 = vsub.f32 %v5410_v44, %v5411_v32  ;;  %5578 = vmatmul.f32.vlgmr.msra.gmra.mxu3 %v5411_v32  ;;  %v5798_v44 = vsub.f32 %v5690_v18, %v9859_v15  ;;  %v5789_v32 = vand.u32 4294901760, %v5788_v11 }
 0xb9a   : > { %v5189_v34 = vadd.f32 %v5188_v30, %v5165_v17  ;;  %5889 = vmatpush.msra.mxu1 %v9832_v31  ;;  %5784 = vmatpush.msrb.mxu3 %v5783_v12 }
 0xb9b   : > { %v5413_v6 = vand.u32 4294901760, %v5412_v47  ;;  %v5289_v40 = vpop.f32.mrf.mxu0  ;;  %v5799_v17 = vand.u32 4294901760, %v5798_v44  ;;  %v5794_v47 = vsub.f32 %v5792_v9, %v5793_v42 }
 0xb9c   : > { %v5211_v61 = vadd.f32 %v5210_v24, %v5189_v34  ;;  %5891 = vmatpush.msra.mxu1 %v9844_v5  ;;  %v9870_v34 = vand.u32 4294901760, %v5688_v36  ;;  %5790 = vmatpush.msrb.mxu3 %v5789_v32 }
 0xb9d   : > { %v5239_v20 = vpop.f32.mrf.mxu2  ;;  %5414 = vmatmul.f32.vlgmr.msra.gmra.mxu0 %v5413_v6  ;;  %v5359_v3 = vpop.f32.mrf.mxu3  ;;  %v5800_v6 = vsub.f32 %v5798_v44, %v5799_v17 }
 0xb9e   : > { %v5266_v50 = vadd.f32 %v5265_v46, %v5239_v20  ;;  %v5380_v33 = vsel %vm617_vm0, %v5211_v61, 0  ;;  %5838 = vmatpush.msra.mxu0 %v9821_v58  ;;  %5893 = vmatpush.msra.mxu1 %v9855_v55  ;;  %v5795_v20 = vand.u32 4294901760, %v5794_v47 }
 0xb9f   : > { %v5417_v16 = vand.u32 4294901760, %v5380_v33 }
 0xba0   : > { %v5290_v14 = vadd.f32 %v5289_v40, %v5266_v50  ;;  %5841 = vmatpush.msra.mxu0 %v9829_v19  ;;  %5895 = vmatpush.msra.mxu1 %v9859_v15  ;;  %v5810_v50 = vsub.f32 %v5688_v36, %v9870_v34  ;;  %v6013_v19 = vld [vmem:[#allocation11 + $0x98] sm:$0xff] }
 0xba1   : > { %5495 = vmatmul.f32.gmra.mxu1 %v5417_v16  ;;  %v5418_v22 = vsub.f32 %v5380_v33, %v5417_v16  ;;  %v5801_v33 = vand.u32 4294901760, %v5800_v6  ;;  %5796 = vmatpush.msrb.mxu3 %v5795_v20 }
 0xba2   : > { %v5314_v54 = vadd.f32 %v5313_v59, %v5290_v14  ;;  %5844 = vmatpush.msra.mxu0 %v9841_v25 }
 0xba3   : > { %5542 = vmatmul.f32.gmra.mxu2 %v5418_v22  ;;  %v5419_v23 = vand.u32 4294901760, %v5418_v22  ;;  %5802 = vmatpush.msrb.mxu3 %v5801_v33 }
 0xba4   : > { %5847 = vmatpush.msra.mxu0 %v5786_v48  ;;  %v9936_v48 = vand.u32 4294901760, %v6012_v29 }
 0xba5   : > { %v5337_v41 = vpop.f32.mrf.mxu2  ;;  %5584 = vmatmul.f32.gmra.mxu3 %v5419_v23  ;;  %v5420_v13 = vsub.f32 %v5418_v22, %v5419_v23 }
 0xba6   : > { %v5338_v52 = vadd.f32 %v5337_v41, %v5314_v54  ;;  %5850 = vmatpush.msra.mxu0 %v5792_v9  ;;  %v9887_v41 = vld [vmem:[%s10253_s10 + $0x1] ss:$0 sm:$0xff]  ;;  %v9945_v9 = vand.u32 4294901760, %v6011_v0 }
 0xba7   : > { %v5421_v62 = vand.u32 4294901760, %v5420_v13  ;;  %v6017_v13 = vld [vmem:[#allocation11 + $0xb8] sm:$0xff] }
 0xba8   : > { %v5360_v26 = vadd.f32 %v5359_v3, %v5338_v52  ;;  %5853 = vmatpush.msra.mxu0 %v5798_v44  ;;  %v9890_v52 = vand.u32 4294901760, %v6017_v13  ;;  %v6010_v44 = vld [vmem:[#allocation11 + $0x80] sm:$0xff]  ;;  %v9960_v36 = vsub.f32 %v6011_v0, %v9945_v9 }
 0xba9   : > { %5422 = vmatmul.f32.gmra.mxu0 %v5421_v62  ;;  %v6016_v62 = vld [vmem:[#allocation11 + $0xb0] sm:$0xff] }
 0xbaa   : > { %v5383_v10 = vsel %vm617_vm0, %v5360_v26, 0  ;;  %v9894_v26 = vsub.f32 %v6017_v13, %v9890_v52 }
 0xbab   : > { %v5425_v28 = vand.u32 4294901760, %v5383_v10 }
 0xbad   : > { %5499 = vmatmul.f32.gmra.mxu1 %v5425_v28  ;;  %v5426_v51 = vsub.f32 %v5383_v10, %v5425_v28  ;;  %v9897_v10 = vand.u32 4294901760, %v6016_v62 }
 0xbaf   : > { %5547 = vmatmul.f32.gmra.mxu2 %v5426_v51  ;;  %v5427_v38 = vand.u32 4294901760, %v5426_v51 }
 0xbb1   : > { %5590 = vmatmul.f32.gmra.mxu3 %v5427_v38  ;;  %v5428_v56 = vsub.f32 %v5426_v51, %v5427_v38  ;;  %v6015_v51 = vld [vmem:[#allocation11 + $0xa8] sm:$0xff]  ;;  %v6082_v38 = vand.u32 4294901760, %v9894_v26 }
 0xbb3   : > { %v5429_v45 = vand.u32 4294901760, %v5428_v56  ;;  %v9903_v56 = vand.u32 4294901760, %v6015_v51  ;;  %v6083_v2 = vsub.f32 %v9894_v26, %v6082_v38 }
 0xbb5   : > { %5430 = vmatmul.f32.gmra.mxu0 %v5429_v45  ;;  %5672 = vmatmul.f32.vlgmr.msrb.gmra.mxu1 %v5409_v21  ;;  %v9906_v45 = vsub.f32 %v6016_v62, %v9897_v10  ;;  %v9919_v63 = vsub.f32 %v6015_v51, %v9903_v56 }
 0xbb7   : > { %v6088_v58 = vand.u32 4294901760, %v9906_v45  ;;  %v6094_v37 = vand.u32 4294901760, %v9919_v63 }
 0xbb9   : > { %v6089_v35 = vsub.f32 %v9906_v45, %v6088_v58 }
 0xbbb   : > { %v6090_v7 = vand.u32 4294901760, %v6089_v35 }
 0xbbd   : > { %5635 = vmatmul.f32.vlgmr.msrb.gmra.mxu0 %v5409_v21  ;;  %5676 = vmatmul.f32.gmra.mxu1 %v5417_v16  ;;  %v5689_v21 = vld [vmem:[#allocation9 + $0x88] sm:$0xff] }
 0xbbe   : > { %v9865_v30 = vand.u32 4294901760, %v5689_v21 }
 0xbc0   : > { %v5804_v24 = vsub.f32 %v5689_v21, %v9865_v30  ;;  %5897 = vmatpush.msra.mxu1 %v9865_v30  ;;  %5731 = vmatpush.msrb.mxu2 %v9865_v30  ;;  %v9948_v21 = vsub.f32 %v6012_v29, %v9936_v48 }
 0xbc2   : > { %v5805_v61 = vand.u32 4294901760, %v5804_v24  ;;  %5856 = vmatpush.msra.mxu0 %v5804_v24  ;;  %5899 = vmatpush.msra.mxu1 %v9870_v34 }
 0xbc3   : > { %5733 = vmatpush.msrb.mxu2 %v9870_v34 }
 0xbc4   : > { %v5806_v40 = vsub.f32 %v5804_v24, %v5805_v61  ;;  %5859 = vmatpush.msra.mxu0 %v5810_v50 }
 0xbc5   : > { %5639 = vmatmul.f32.gmra.mxu0 %v5417_v16  ;;  %5680 = vmatmul.f32.gmra.mxu1 %v5425_v28  ;;  %v5811_v16 = vand.u32 4294901760, %v5810_v50 }
 0xbc6   : > { %v5807_v14 = vand.u32 4294901760, %v5806_v40  ;;  %5930 = vmatpush.msra.mxu2 %v5769_v4  ;;  %6032 = vmatpush.msrb.mxu0 %v9890_v52 }
 0xbc7   : > { %v5812_v59 = vsub.f32 %v5810_v50, %v5811_v16 }
 0xbc8   : > { %5934 = vmatpush.msra.mxu2 %v5775_v39  ;;  %5808 = vmatpush.msrb.mxu3 %v5807_v14  ;;  %v9927_v39 = vand.u32 4294901760, %v6013_v19 }
 0xbc9   : > { %v5813_v23 = vand.u32 4294901760, %v5812_v59  ;;  %6034 = vmatpush.msrb.mxu0 %v9897_v10 }
 0xbca   : > { %5938 = vmatpush.msra.mxu2 %v5781_v53  ;;  %v6095_v53 = vsub.f32 %v9919_v63, %v6094_v37  ;;  %v9942_v49 = vsub.f32 %v6013_v19, %v9927_v39 }
 0xbcb   : > { %5814 = vmatpush.msrb.mxu3 %v5813_v23  ;;  %6036 = vmatpush.msrb.mxu0 %v9903_v56 }
 0xbcc   : > { %5942 = vmatpush.msra.mxu2 %v5787_v1  ;;  %v6106_v11 = vand.u32 4294901760, %v9942_v49 }
 0xbcd   : > { %5643 = vmatmul.f32.gmra.mxu0 %v5425_v28  ;;  %5981 = vmatpush.msra.mxu3 %v9818_v57  ;;  %v6014_v57 = vld [vmem:[#allocation11 + $0xa0] sm:$0xff] }
 0xbce   : > { %5946 = vmatpush.msra.mxu2 %v5793_v42  ;;  %v9957_v42 = vand.u32 4294901760, %v6010_v44 }
 0xbcf   : > { %5983 = vmatpush.msra.mxu3 %v9823_v27  ;;  %v9916_v27 = vand.u32 4294901760, %v6014_v57 }
 0xbd0   : > { %5950 = vmatpush.msra.mxu2 %v5799_v17  ;;  %v9972_v20 = vsub.f32 %v6010_v44, %v9957_v42 }
 0xbd1   : > { %5985 = vmatpush.msra.mxu3 %v9832_v31  ;;  %v6084_v31 = vand.u32 4294901760, %v6083_v2  ;;  %6038 = vmatpush.msrb.mxu0 %v9916_v27 }
 0xbd2   : > { %5954 = vmatpush.msra.mxu2 %v5805_v61  ;;  %v6124_v59 = vand.u32 4294901760, %v9972_v20 }
 0xbd3   : > { %5987 = vmatpush.msra.mxu3 %v9844_v5  ;;  %v9930_v5 = vsub.f32 %v6014_v57, %v9916_v27  ;;  %6085 = vmatpush.msrb.mxu1 %v6084_v31 }
 0xbd4   : > { %5958 = vmatpush.msra.mxu2 %v5811_v16  ;;  %6040 = vmatpush.msrb.mxu0 %v9927_v39  ;;  %v6125_v62 = vsub.f32 %v9972_v20, %v6124_v59 }
 0xbd5   : > { %5989 = vmatpush.msra.mxu3 %v9855_v55  ;;  %v6100_v18 = vand.u32 4294901760, %v9930_v5  ;;  %6091 = vmatpush.msrb.mxu1 %v6090_v7 }
 0xbd6   : > { %6042 = vmatpush.msrb.mxu0 %v9936_v48  ;;  %v6126_v51 = vand.u32 4294901760, %v6125_v62 }
 0xbd7   : > { %5991 = vmatpush.msra.mxu3 %v9859_v15  ;;  %v6096_v15 = vand.u32 4294901760, %v6095_v53  ;;  %v6101_v12 = vsub.f32 %v9930_v5, %v6100_v18 }
 0xbd8   : > { %6044 = vmatpush.msrb.mxu0 %v9945_v9 }
 0xbd9   : > { %5993 = vmatpush.msra.mxu3 %v9865_v30  ;;  %6097 = vmatpush.msrb.mxu1 %v6096_v15  ;;  %v6112_v30 = vand.u32 4294901760, %v9948_v21  ;;  %v6102_v47 = vand.u32 4294901760, %v6101_v12 }
 0xbda   : > { %6046 = vmatpush.msrb.mxu0 %v9957_v42 }
 0xbdb   : > { %5995 = vmatpush.msra.mxu3 %v9870_v34  ;;  %v6107_v34 = vsub.f32 %v9942_v49, %v6106_v11  ;;  %v6113_v61 = vsub.f32 %v9948_v21, %v6112_v30  ;;  %6103 = vmatpush.msrb.mxu1 %v6102_v47 }
 0xbdd   : > { %v6108_v33 = vand.u32 4294901760, %v6107_v34  ;;  %v6114_v14 = vand.u32 4294901760, %v6113_v61  ;;  %v8118_v61 = vld [vmem:[%s10249_s6 + $0x2] ss:$0 sm:$0xff] }
 0xbdf   : > { %6109 = vmatpush.msrb.mxu1 %v6108_v33 }
 0xbe1   : > { %6115 = vmatpush.msrb.mxu1 %v6114_v14 }
 0xc12   : > { %v5492_v46 = vpop.f32.mrf.mxu1 }
 0xc1a   : > { %v5415_v22 = vpop.f32.mrf.mxu0  ;;  %v5538_v43 = vpop.f32.mrf.mxu2 }
 0xc1b   : > { %v5416_v28 = vadd.f32 %v9887_v41, %v5415_v22 }
 0xc1c   : > { %v5579_v32 = vpop.f32.mrf.mxu3 }
 0xc1d   : > { %v5493_v4 = vadd.f32 %v5492_v46, %v5416_v28  ;;  %v6118_v46 = vand.u32 4294901760, %v9960_v36 }
 0xc1e   : > { %v9881_v54 = vpop.f32.mrf.mxu1 }
 0xc1f   : > { %v5539_v1 = vadd.f32 %v5538_v43, %v5493_v4  ;;  %v6119_v22 = vsub.f32 %v9960_v36, %v6118_v46 }
 0xc21   : > { %v5580_v6 = vadd.f32 %v5579_v32, %v5539_v1 }
 0xc26   : > { %v5423_v3 = vpop.f32.mrf.mxu0  ;;  %v5543_v40 = vpop.f32.mrf.mxu2 }
 0xc27   : > { %v5424_v55 = vadd.f32 %v9887_v41, %v5423_v3  ;;  %v6120_v3 = vand.u32 4294901760, %v6119_v22 }
 0xc28   : > { %v5585_v57 = vpop.f32.mrf.mxu3 }
 0xc29   : > { %v5497_v17 = vadd.f32 %v9881_v54, %v5424_v55  ;;  %6121 = vmatpush.msrb.mxu1 %v6120_v3 }
 0xc2a   : > { %v9908_v8 = vpop.f32.mrf.mxu1 }
 0xc2b   : > { %v5544_v23 = vadd.f32 %v5543_v40, %v5497_v17  ;;  %6127 = vmatpush.msrb.mxu1 %v6126_v51 }
 0xc2d   : > { %v5586_v2 = vadd.f32 %v5585_v57, %v5544_v23 }
 0xc32   : > { %v5431_v25 = vpop.f32.mrf.mxu0  ;;  %v5673_v24 = vpop.f32.mrf.mxu1 }
 0xc33   : > { %v5432_v54 = vadd.f32 %v9887_v41, %v5431_v25  ;;  %v5548_v29 = vpop.f32.mrf.mxu2 }
 0xc34   : > { %v5591_v0 = vpop.f32.mrf.mxu3 }
 0xc35   : > { %v5501_v4 = vadd.f32 %v9908_v8, %v5432_v54 }
 0xc37   : > { %v5549_v7 = vadd.f32 %v5548_v29, %v5501_v4 }
 0xc39   : > { %v5592_v15 = vadd.f32 %v5591_v0, %v5549_v7 }
 0xc3a   : > { %v5636_v50 = vpop.f32.mrf.mxu0  ;;  %v5677_v41 = vpop.f32.mrf.mxu1 }
 0xc3b   : > { %v5637_v16 = vadd.f32 %v5636_v50, %v5580_v6 }
 0xc3d   : > { %v5674_v13 = vadd.f32 %v5673_v24, %v5637_v16 }
 0xc3f   : > { %v9982_v28 = vmax.f32 %v5674_v13, 0.0 }
 0xc41   : > { %v5702_v19 = vsel %vm617_vm0, %v9982_v28, 0 }
 0xc42   : > { %v9987_v31 = vand.u32 4294901760, %v5702_v19  ;;  %v5640_v35 = vpop.f32.mrf.mxu0  ;;  %v5681_v24 = vpop.f32.mrf.mxu1 }
 0xc43   : > { %v5641_v25 = vadd.f32 %v5640_v35, %v5586_v2 }
 0xc44   : > { %v9990_v43 = vsub.f32 %v5702_v19, %v9987_v31  ;;  %5816 = vmatmul.f32.vlgmr.msrb.gmra.mxu3 %v9987_v31 }
 0xc45   : > { %v5678_v53 = vadd.f32 %v5677_v41, %v5641_v25  ;;  %6198 = vmatpush.msrb.mxu3 %v9890_v52  ;;  %v8119_v41 = vld [vmem:[%s10251_s8 + $0x2] ss:$0 sm:$0xff] }
 0xc46   : > { %5862 = vmatmul.f32.vlgmr.msra.gmra.mxu0 %v9990_v43  ;;  %v9996_v8 = vand.u32 4294901760, %v9990_v43 }
 0xc47   : > { %v9998_v55 = vmax.f32 %v5678_v53, 0.0  ;;  %6200 = vmatpush.msrb.mxu3 %v9897_v10  ;;  %6243 = vmatpush.msra.mxu0 %v6082_v38 }
 0xc48   : > { %5903 = vmatmul.f32.vlgmr.msra.gmra.mxu1 %v9996_v8  ;;  %v5737_v1 = vsub.f32 %v9990_v43, %v9996_v8 }
 0xc49   : > { %v5705_v12 = vsel %vm617_vm0, %v9998_v55, 0  ;;  %6202 = vmatpush.msrb.mxu3 %v9903_v56  ;;  %6247 = vmatpush.msra.mxu0 %v6088_v58 }
 0xc4a   : > { %v10011_v44 = vand.u32 4294901760, %v5705_v12  ;;  %v5644_v32 = vpop.f32.mrf.mxu0  ;;  %v5738_v17 = vand.u32 4294901760, %v5737_v1  ;;  %6294 = vmatpush.msra.mxu1 %v9890_v52 }
 0xc4b   : > { %v5645_v38 = vadd.f32 %v5644_v32, %v5592_v15  ;;  %6204 = vmatpush.msrb.mxu3 %v9916_v27  ;;  %6251 = vmatpush.msra.mxu0 %v6094_v37 }
 0xc4c   : > { %5739 = vmatmul.f32.vlgmr.msrb.gmra.mxu2 %v5738_v17  ;;  %5820 = vmatmul.f32.gmra.mxu3 %v10011_v44  ;;  %v5743_v47 = vsub.f32 %v5705_v12, %v10011_v44 }
 0xc4d   : > { %v5682_v34 = vadd.f32 %v5681_v24, %v5645_v38  ;;  %6296 = vmatpush.msra.mxu1 %v9897_v10  ;;  %6151 = vmatpush.msrb.mxu2 %v9894_v26 }
 0xc4e   : > { %5867 = vmatmul.f32.gmra.mxu0 %v5743_v47  ;;  %v5744_v58 = vand.u32 4294901760, %v5743_v47  ;;  %6206 = vmatpush.msrb.mxu3 %v9927_v39 }
 0xc4f   : > { %v10022_v52 = vmax.f32 %v5682_v34, 0.0  ;;  %6255 = vmatpush.msra.mxu0 %v6100_v18  ;;  %6298 = vmatpush.msra.mxu1 %v9903_v56 }
 0xc50   : > { %5909 = vmatmul.f32.gmra.mxu1 %v5744_v58  ;;  %v5745_v37 = vsub.f32 %v5743_v47, %v5744_v58  ;;  %6154 = vmatpush.msrb.mxu2 %v9906_v45 }
 0xc51   : > { %v5708_v10 = vsel %vm617_vm0, %v10022_v52, 0  ;;  %6208 = vmatpush.msrb.mxu3 %v9936_v48  ;;  %6259 = vmatpush.msra.mxu0 %v6106_v11 }
 0xc52   : > { %v5750_v26 = vand.u32 4294901760, %v5708_v10  ;;  %v5746_v6 = vand.u32 4294901760, %v5745_v37  ;;  %6300 = vmatpush.msra.mxu1 %v9916_v27  ;;  %6157 = vmatpush.msrb.mxu2 %v9919_v63 }
 0xc53   : > { %6210 = vmatpush.msrb.mxu3 %v9945_v9  ;;  %6263 = vmatpush.msra.mxu0 %v6112_v30 }
 0xc54   : > { %5747 = vmatmul.f32.gmra.mxu2 %v5746_v6  ;;  %5824 = vmatmul.f32.gmra.mxu3 %v5750_v26  ;;  %v5751_v56 = vsub.f32 %v5708_v10, %v5750_v26 }
 0xc55   : > { %6302 = vmatpush.msra.mxu1 %v9927_v39  ;;  %6160 = vmatpush.msrb.mxu2 %v9930_v5 }
 0xc56   : > { %5872 = vmatmul.f32.gmra.mxu0 %v5751_v56  ;;  %v5752_v45 = vand.u32 4294901760, %v5751_v56  ;;  %6212 = vmatpush.msrb.mxu3 %v9957_v42 }
 0xc57   : > { %6267 = vmatpush.msra.mxu0 %v6118_v46  ;;  %6304 = vmatpush.msra.mxu1 %v9936_v48 }
 0xc58   : > { %5915 = vmatmul.f32.gmra.mxu1 %v5752_v45  ;;  %v5753_v27 = vsub.f32 %v5751_v56, %v5752_v45  ;;  %6163 = vmatpush.msrb.mxu2 %v9942_v49 }
 0xc59   : > { %6271 = vmatpush.msra.mxu0 %v6124_v59  ;;  %6306 = vmatpush.msra.mxu1 %v9945_v9 }
 0xc5a   : > { %v5754_v63 = vand.u32 4294901760, %v5753_v27  ;;  %6166 = vmatpush.msrb.mxu2 %v9948_v21 }
 0xc5b   : > { %6308 = vmatpush.msra.mxu1 %v9957_v42 }
 0xc5c   : > { %5755 = vmatmul.f32.gmra.mxu2 %v5754_v63  ;;  %5997 = vmatmul.f32.vlgmr.msra.gmra.mxu3 %v9987_v31 }
 0xc5d   : > { %6169 = vmatpush.msrb.mxu2 %v9960_v36 }
 0xc5e   : > { %6052 = vmatmul.f32.vlgmr.msrb.gmra.mxu0 %v5738_v17 }
 0xc5f   : > { %6172 = vmatpush.msrb.mxu2 %v9972_v20 }
 0xc60   : > { %6129 = vmatmul.f32.vlgmr.msrb.gmra.mxu1 %v9987_v31 }
 0xc64   : > { %5960 = vmatmul.f32.vlgmr.msra.gmra.mxu2 %v9987_v31  ;;  %6001 = vmatmul.f32.gmra.mxu3 %v10011_v44 }
 0xc66   : > { %6060 = vmatmul.f32.gmra.mxu0 %v5746_v6 }
 0xc68   : > { %6133 = vmatmul.f32.gmra.mxu1 %v10011_v44 }
 0xc6c   : > { %5964 = vmatmul.f32.gmra.mxu2 %v10011_v44  ;;  %6005 = vmatmul.f32.gmra.mxu3 %v5750_v26 }
 0xc6e   : > { %6068 = vmatmul.f32.gmra.mxu0 %v5754_v63 }
 0xc70   : > { %6137 = vmatmul.f32.gmra.mxu1 %v5750_v26 }
 0xc74   : > { %5968 = vmatmul.f32.gmra.mxu2 %v5750_v26  ;;  %6216 = vmatmul.f32.vlgmr.msrb.gmra.mxu3 %v9996_v8 }
 0xc76   : > { %6273 = vmatmul.f32.vlgmr.msra.gmra.mxu0 %v9987_v31 }
 0xc78   : > { %6310 = vmatmul.f32.vlgmr.msra.gmra.mxu1 %v9987_v31 }
 0xc7c   : > { %6175 = vmatmul.f32.vlgmr.msrb.gmra.mxu2 %v9990_v43  ;;  %6222 = vmatmul.f32.gmra.mxu3 %v5744_v58 }
 0xc7e   : > { %6277 = vmatmul.f32.gmra.mxu0 %v10011_v44 }
 0xc80   : > { %6314 = vmatmul.f32.gmra.mxu1 %v10011_v44 }
 0xc84   : > { %6180 = vmatmul.f32.gmra.mxu2 %v5743_v47  ;;  %6228 = vmatmul.f32.gmra.mxu3 %v5752_v45 }
 0xc86   : > { %6281 = vmatmul.f32.gmra.mxu0 %v5750_v26 }
 0xc88   : > { %6318 = vmatmul.f32.gmra.mxu1 %v5750_v26 }
 0xc8c   : > { %6185 = vmatmul.f32.gmra.mxu2 %v5751_v56 }
 0xcc3   : > { %v5863_v39 = vpop.f32.mrf.mxu0 }
 0xcc5   : > { %v5904_v5 = vpop.f32.mrf.mxu1 }
 0xcc7   : > { %v5817_v48 = vpop.f32.mrf.mxu3 }
 0xccb   : > { %v5868_v18 = vpop.f32.mrf.mxu0 }
 0xccd   : > { %v5910_v49 = vpop.f32.mrf.mxu1 }
 0xccf   : > { %v5740_v9 = vpop.f32.mrf.mxu2  ;;  %v5821_v21 = vpop.f32.mrf.mxu3 }
 0xcd0   : > { %v5741_v33 = vadd.f32 %v8118_v61, %v5740_v9 }
 0xcd2   : > { %v5818_v16 = vadd.f32 %v5817_v48, %v5741_v33 }
 0xcd3   : > { %v5873_v11 = vpop.f32.mrf.mxu0 }
 0xcd4   : > { %v5864_v23 = vadd.f32 %v5863_v39, %v5818_v16 }
 0xcd5   : > { %v10064_v36 = vpop.f32.mrf.mxu1 }
 0xcd6   : > { %v5905_v3 = vadd.f32 %v5904_v5, %v5864_v23 }
 0xcd7   : > { %v5748_v30 = vpop.f32.mrf.mxu2  ;;  %v5825_v42 = vpop.f32.mrf.mxu3 }
 0xcd8   : > { %v5749_v54 = vadd.f32 %v8118_v61, %v5748_v30 }
 0xcda   : > { %v5822_v51 = vadd.f32 %v5821_v21, %v5749_v54 }
 0xcdb   : > { %v6053_v50 = vpop.f32.mrf.mxu0 }
 0xcdc   : > { %v5869_v4 = vadd.f32 %v5868_v18, %v5822_v51  ;;  %v6054_v7 = vadd.f32 %v8119_v41, %v6053_v50 }
 0xcdd   : > { %v6130_v40 = vpop.f32.mrf.mxu1 }
 0xcde   : > { %v5911_v29 = vadd.f32 %v5910_v49, %v5869_v4  ;;  %v6131_v1 = vadd.f32 %v6130_v40, %v6054_v7 }
 0xcdf   : > { %v5756_v46 = vpop.f32.mrf.mxu2  ;;  %v5998_v20 = vpop.f32.mrf.mxu3 }
 0xce0   : > { %v5757_v58 = vadd.f32 %v8118_v61, %v5756_v46 }
 0xce2   : > { %v5826_v45 = vadd.f32 %v5825_v42, %v5757_v58 }
 0xce3   : > { %v6061_v59 = vpop.f32.mrf.mxu0 }
 0xce4   : > { %v6062_v24 = vadd.f32 %v8119_v41, %v6061_v59  ;;  %v5874_v61 = vadd.f32 %v5873_v11, %v5826_v45 }
 0xce5   : > { %v6134_v13 = vpop.f32.mrf.mxu1 }
 0xce6   : > { %v6135_v6 = vadd.f32 %v6134_v13, %v6062_v24 }
 0xce7   : > { %v5961_v14 = vpop.f32.mrf.mxu2  ;;  %v6002_v22 = vpop.f32.mrf.mxu3 }
 0xce8   : > { %v5962_v57 = vadd.f32 %v5961_v14, %v5905_v3 }
 0xcea   : > { %v5999_v19 = vadd.f32 %v5998_v20, %v5962_v57 }
 0xceb   : > { %v6069_v31 = vpop.f32.mrf.mxu0 }
 0xcec   : > { %v6323_v43 = vsel %vm617_vm0, %v5999_v19, 0  ;;  %v6070_v21 = vadd.f32 %v8119_v41, %v6069_v31 }
 0xced   : > { %v6138_v35 = vpop.f32.mrf.mxu1  ;;  %v10075_v8 = vand.u32 4294901760, %v6323_v43 }
 0xcee   : > { %v6139_v16 = vadd.f32 %v6138_v35, %v6070_v21 }
 0xcef   : > { %v5965_v62 = vpop.f32.mrf.mxu2  ;;  %v10069_v2 = vpop.f32.mrf.mxu3  ;;  %v10078_v32 = vsub.f32 %v6323_v43, %v10075_v8 }
 0xcf0   : > { %v5966_v53 = vadd.f32 %v5965_v62, %v5911_v29 }
 0xcf1   : > { %v6347_v37 = vand.u32 4294901760, %v10078_v32 }
 0xcf2   : > { %v6003_v15 = vadd.f32 %v6002_v22, %v5966_v53  ;;  %v5917_v22 = vadd.f32 %v10064_v36, %v5874_v61  ;;  %v6871_v53 = vand.u32 4294901760, %v9982_v28 }
 0xcf3   : > { %v6274_v12 = vpop.f32.mrf.mxu0  ;;  %v6348_v39 = vsub.f32 %v10078_v32, %v6347_v37 }
 0xcf4   : > { %v6475_v47 = vsel %vm617_vm0, %v6003_v15, 0 }
 0xcf5   : > { %v6311_v38 = vpop.f32.mrf.mxu1  ;;  %v10082_v26 = vand.u32 4294901760, %v6475_v47  ;;  %v6349_v20 = vand.u32 4294901760, %v6348_v39 }
 0xcf7   : > { %v5969_v25 = vpop.f32.mrf.mxu2  ;;  %v6217_v0 = vpop.f32.mrf.mxu3  ;;  %v10089_v18 = vsub.f32 %v6475_v47, %v10082_v26 }
 0xcf8   : > { %v5970_v3 = vadd.f32 %v5969_v25, %v5917_v22 }
 0xcf9   : > { %v6499_v33 = vand.u32 4294901760, %v10089_v18 }
 0xcfa   : > { %v6007_v35 = vadd.f32 %v10069_v2, %v5970_v3 }
 0xcfb   : > { %v6278_v49 = vpop.f32.mrf.mxu0  ;;  %v6500_v13 = vsub.f32 %v10089_v18, %v6499_v33 }
 0xcfd   : > { %v6315_v46 = vpop.f32.mrf.mxu1  ;;  %v6501_v41 = vand.u32 4294901760, %v6500_v13 }
 0xcff   : > { %v6176_v44 = vpop.f32.mrf.mxu2  ;;  %v6223_v27 = vpop.f32.mrf.mxu3 }
 0xd00   : > { %v6177_v17 = vadd.f32 %v6176_v44, %v6131_v1  ;;  %v6627_v1 = vsel %vm617_vm0, %v6007_v35, 0  ;;  %v6898_v44 = vsub.f32 %v9982_v28, %v6871_v53 }
 0xd02   : > { %v6218_v34 = vadd.f32 %v6217_v0, %v6177_v17  ;;  %v6649_v17 = vand.u32 4294901760, %v6627_v1  ;;  %v6899_v24 = vand.u32 4294901760, %v6898_v44 }
 0xd03   : > { %v6282_v19 = vpop.f32.mrf.mxu0 }
 0xd04   : > { %v6275_v10 = vadd.f32 %v6274_v12, %v6218_v34  ;;  %v6650_v47 = vsub.f32 %v6627_v1, %v6649_v17  ;;  %v6900_v34 = vsub.f32 %v6898_v44, %v6899_v24 }
 0xd05   : > { %v6319_v29 = vpop.f32.mrf.mxu1 }
 0xd06   : > { %v6312_v56 = vadd.f32 %v6311_v38, %v6275_v10  ;;  %v6651_v58 = vand.u32 4294901760, %v6650_v47 }
 0xd07   : > { %v6181_v63 = vpop.f32.mrf.mxu2  ;;  %v6229_v62 = vpop.f32.mrf.mxu3 }
 0xd08   : > { %v6182_v5 = vadd.f32 %v6181_v63, %v6135_v6  ;;  %v6326_v48 = vsel %vm617_vm0, %v6312_v56, 0  ;;  %v10113_v56 = vand.u32 4294901760, %v9998_v55 }
 0xd09   : > { %v6343_v9 = vand.u32 4294901760, %v6326_v48 }
 0xd0a   : > { %v6224_v30 = vadd.f32 %v6223_v27, %v6182_v5 }
 0xd0b   : > { %6344 = vmatpush.xpose.msra.mxu2 %v6343_v9  ;;  %v6370_v42 = vsub.f32 %v6326_v48, %v6343_v9 }
 0xd0c   : > { %v6279_v50 = vadd.f32 %v6278_v49, %v6224_v30 }
 0xd0d   : > { %v6371_v40 = vand.u32 4294901760, %v6370_v42 }
 0xd0e   : > { %v6316_v14 = vadd.f32 %v6315_v46, %v6279_v50  ;;  %6350 = vmatmul.f32.vlgmr.msra.gmra.mxu2 %v6349_v20 }
 0xd0f   : > { %6397 = vmatpush.xpose.msrb.mxu2 %v6370_v42  ;;  %v6186_v59 = vpop.f32.mrf.mxu2  ;;  %v6372_v23 = vsub.f32 %v6370_v42, %v6371_v40 }
 0xd10   : > { %v6187_v54 = vadd.f32 %v6186_v59, %v6139_v16  ;;  %v6478_v11 = vsel %vm617_vm0, %v6316_v14, 0 }
 0xd11   : > { %v6373_v51 = vand.u32 4294901760, %v6372_v23  ;;  %v6495_v57 = vand.u32 4294901760, %v6478_v11 }
 0xd12   : > { %v6230_v4 = vadd.f32 %v6229_v62, %v6187_v54 }
 0xd13   : > { %6446 = vmatpush.xpose.msra.mxu2 %v6371_v40  ;;  %6374 = vmatpush.xpose.msra.mxu3 %v6373_v51  ;;  %v6522_v31 = vsub.f32 %v6478_v11, %v6495_v57 }
 0xd14   : > { %6496 = vmatpush.xpose.msrb.mxu0 %v6495_v57  ;;  %v6283_v36 = vadd.f32 %v6282_v19, %v6230_v4 }
 0xd15   : > { %v6523_v43 = vand.u32 4294901760, %v6522_v31 }
 0xd16   : > { %v6320_v7 = vadd.f32 %v6319_v29, %v6283_v36  ;;  %6376 = vmatmul.f32.vlgmr.msra.gmra.mxu3 %v10075_v8  ;;  %6400 = vmatmul.f32.vlgmr.msrb.gmra.mxu2 %v10078_v32  ;;  %v6901_v32 = vand.u32 4294901760, %v6900_v34 }
 0xd17   : > { %6420 = vmatpush.xpose.msrb.mxu3 %v6343_v9  ;;  %6502 = vmatmul.f32.vlgmr.msrb.gmra.mxu0 %v6501_v41  ;;  %v6524_v25 = vsub.f32 %v6522_v31, %v6523_v43 }
 0xd18   : > { %6549 = vmatpush.xpose.msrb.mxu2 %v6522_v31  ;;  %6598 = vmatpush.xpose.msra.mxu0 %v6523_v43  ;;  %v6630_v0 = vsel %vm617_vm0, %v6320_v7, 0 }
 0xd19   : > { %v6525_v15 = vand.u32 4294901760, %v6524_v25  ;;  %v6647_v2 = vand.u32 4294901760, %v6630_v0 }
 0xd1b   : > { %6468 = vmatpush.xpose.msra.mxu3 %v6343_v9  ;;  %6526 = vmatpush.xpose.msrb.mxu1 %v6525_v15  ;;  %v6674_v12 = vsub.f32 %v6630_v0, %v6647_v2 }
 0xd1d   : > { %6701 = vmatpush.xpose.msrb.mxu0 %v6674_v12  ;;  %v6675_v38 = vand.u32 4294901760, %v6674_v12 }
 0xd1e   : > { %6424 = vmatmul.f32.vlgmr.msrb.gmra.mxu3 %v6347_v37  ;;  %6448 = vmatmul.f32.vlgmr.msra.gmra.mxu2 %v10075_v8  ;;  %v6652_v37 = vsub.f32 %v6650_v47, %v6651_v58 }
 0xd1f   : > { %6620 = vmatpush.xpose.msra.mxu1 %v6495_v57  ;;  %6572 = vmatpush.xpose.msrb.mxu3 %v6495_v57  ;;  %v6676_v28 = vsub.f32 %v6674_v12, %v6675_v38 }
 0xd20   : > { %6528 = vmatmul.f32.vlgmr.msrb.gmra.mxu1 %v10082_v26  ;;  %6600 = vmatmul.f32.vlgmr.msra.gmra.mxu0 %v10082_v26  ;;  %v6653_v6 = vand.u32 4294901760, %v6652_v37 }
 0xd21   : > { %6648 = vmatpush.xpose.msra.mxu2 %v6647_v2  ;;  %6872 = vmatpush.msra.mxu0 %v6871_v53  ;;  %v6677_v10 = vand.u32 4294901760, %v6676_v28 }
 0xd23   : > { %6724 = vmatpush.xpose.msrb.mxu1 %v6647_v2 }
 0xd26   : > { %6470 = vmatmul.f32.vlgmr.msra.gmra.mxu3 %v10075_v8  ;;  %6552 = vmatmul.f32.vlgmr.msrb.gmra.mxu2 %v10089_v18  ;;  %v10119_v8 = vsub.f32 %v9998_v55, %v10113_v56 }
 0xd27   : > { %6678 = vmatpush.xpose.msra.mxu3 %v6677_v10  ;;  %6750 = vmatpush.xpose.msrb.mxu2 %v6675_v38 }
 0xd28   : > { %6622 = vmatmul.f32.vlgmr.msra.gmra.mxu1 %v10082_v26  ;;  %6704 = vmatmul.f32.vlgmr.msrb.gmra.mxu0 %v6650_v47  ;;  %v7048_v26 = vand.u32 4294901760, %v10119_v8 }
 0xd29   : > { %6902 = vmatpush.msra.mxu1 %v6901_v32  ;;  %6974 = vmatpush.msrb.mxu0 %v6899_v24 }
 0xd2a   : > { %v7049_v45 = vsub.f32 %v10119_v8, %v7048_v26 }
 0xd2c   : > { %v7050_v27 = vand.u32 4294901760, %v7049_v45 }
 0xd2e   : > { %6576 = vmatmul.f32.vlgmr.msrb.gmra.mxu3 %v6499_v33  ;;  %6654 = vmatmul.f32.vlgmr.msra.gmra.mxu2 %v6653_v6 }
 0xd2f   : > { %6772 = vmatpush.xpose.msrb.mxu3 %v6647_v2  ;;  %6925 = vmatpush.msra.mxu2 %v6898_v44 }
 0xd30   : > { %6728 = vmatmul.f32.vlgmr.msrb.gmra.mxu1 %v6651_v58 }
 0xd31   : > { %6996 = vmatpush.msrb.mxu1 %v6871_v53 }
 0xd36   : > { %6680 = vmatmul.f32.vlgmr.msra.gmra.mxu3 %v6649_v17  ;;  %6752 = vmatmul.f32.vlgmr.msrb.gmra.mxu2 %v6649_v17 }
 0xd37   : > { %6948 = vmatpush.msra.mxu3 %v6871_v53  ;;  %7021 = vmatpush.msrb.mxu2 %v10113_v56 }
 0xd3e   : > { %6774 = vmatmul.f32.vlgmr.msrb.gmra.mxu3 %v6649_v17 }
 0xd3f   : > { %7051 = vmatpush.msrb.mxu3 %v7050_v27 }
 0xd91   : > { %v6351_v63 = vpop.f32.mrf.mxu2 }
 0xd94   : > { %v6503_v21 = vpop.f32.mrf.mxu0 }
 0xd99   : > { %v6377_v39 = vpop.f32.mrf.mxu3  ;;  %v6401_v5 = vpop.f32.mrf.mxu2 }
 0xd9a   : > { %v6378_v48 = vadd.f32 %v6377_v39, %v6351_v63 }
 0xd9c   : > { %v6402_v49 = vadd.f32 %v6401_v5, %v6378_v48  ;;  %v10142_v5 = vand.u32 4294901760, %v10022_v52 }
 0xd9d   : > { %v6529_v61 = vpop.f32.mrf.mxu1  ;;  %v6601_v14 = vpop.f32.mrf.mxu0 }
 0xd9e   : > { %v6530_v40 = vadd.f32 %v6529_v61, %v6503_v21 }
 0xda1   : > { %v6425_v55 = vpop.f32.mrf.mxu3  ;;  %v6449_v18 = vpop.f32.mrf.mxu2 }
 0xda2   : > { %v6426_v9 = vadd.f32 %v6425_v55, %v6402_v49 }
 0xda4   : > { %v6450_v30 = vadd.f32 %v6449_v18, %v6426_v9  ;;  %v10146_v9 = vsub.f32 %v10022_v52, %v10142_v5 }
 0xda5   : > { %v6623_v23 = vpop.f32.mrf.mxu1  ;;  %v6705_v4 = vpop.f32.mrf.mxu0 }
 0xda9   : > { %v6471_v46 = vpop.f32.mrf.mxu3  ;;  %v6553_v20 = vpop.f32.mrf.mxu2 }
 0xdaa   : > { %v6472_v42 = vadd.f32 %v6471_v46, %v6450_v30  ;;  %v6554_v16 = vadd.f32 %v6553_v20, %v6530_v40 }
 0xdac   : > { %v6778_v50 = vsel %vm1813_vm13, %v6472_v42, -1e+30 }
 0xdad   : > { %v6781_v33 = vsel %vm2906_vm14, %v6778_v50, -inf  ;;  %v6729_v31 = vpop.f32.mrf.mxu1 }
 0xdae   : > { %6782 = vmax.xlane.f32.xlu0 %v6781_v33 }
 0xdb1   : > { %v6577_v22 = vpop.f32.mrf.mxu3  ;;  %v6655_v11 = vpop.f32.mrf.mxu2 }
 0xdb2   : > { %v6578_v59 = vadd.f32 %v6577_v22, %v6554_v16 }
 0xdb4   : > { %v6602_v54 = vadd.f32 %v6601_v14, %v6578_v59 }
 0xdb6   : > { %v6624_v13 = vadd.f32 %v6623_v23, %v6602_v54 }
 0xdb8   : > { %v6779_v3 = vsel %vm1813_vm13, %v6624_v13, -1e+30 }
 0xdb9   : > { %v6681_v62 = vpop.f32.mrf.mxu3  ;;  %v6784_v51 = vsel %vm2906_vm14, %v6779_v3, -inf  ;;  %v6753_v41 = vpop.f32.mrf.mxu2 }
 0xdba   : > { %v6682_v57 = vadd.f32 %v6681_v62, %v6655_v11  ;;  %6785 = vmax.xlane.f32.xlu1 %v6784_v51 }
 0xdbc   : > { %v6706_v19 = vadd.f32 %v6705_v4, %v6682_v57 }
 0xdbe   : > { %v6730_v36 = vadd.f32 %v6729_v31, %v6706_v19 }
 0xdc0   : > { %v6754_v35 = vadd.f32 %v6753_v41, %v6730_v36 }
 0xdc1   : > { %v6775_v29 = vpop.f32.mrf.mxu3 }
 0xdc2   : > { %v6776_v43 = vadd.f32 %v6775_v29, %v6754_v35 }
 0xdc4   : > { %v6780_v7 = vsel %vm1813_vm13, %v6776_v43, -1e+30 }
 0xdc5   : > { %v6787_v25 = vsel %vm2906_vm14, %v6780_v7, -inf }
 0xdc6   : > { %6788 = vmax.xlane.f32.xlu2 %v6787_v25 }
 0xe21   : > { %v6783_v53 = vpop.xlane.xlu0 %6782 }
 0xe22   : > { %v6790_v0 = vsub.f32 %v6778_v50, %v6783_v53  ;;  %v7197_v50 = vand.u32 4294901760, %v10146_v9 }
 0xe24   : > { %v6793_v1 = vmul.f32 1.442695, %v6790_v0  ;;  %v7198_v23 = vsub.f32 %v10146_v9, %v7197_v50 }
 0xe26   : > { %8193 = vpow2.f32 %v6793_v1  ;;  %v7199_v57 = vand.u32 4294901760, %v7198_v23 }
 0xe2c   : > { %v8194_v15 = vpop.eup %8193 }
 0xe2d   : > { %v6786_v2 = vpop.xlane.xlu1 %6785  ;;  %v6799_v12 = vsel %vm2906_vm14, %v8194_v15, 0.0 }
 0xe2e   : > { %v6791_v44 = vsub.f32 %v6779_v3, %v6786_v2  ;;  %6800 = vadd.xlane.f32.xlu0 %v6799_v12 }
 0xe30   : > { %v6795_v17 = vmul.f32 1.442695, %v6791_v44 }
 0xe32   : > { %8195 = vpow2.f32 %v6795_v17 }
 0xe38   : > { %v8196_v38 = vpop.eup %8195 }
 0xe39   : > { %v6789_v24 = vpop.xlane.xlu2 %6788  ;;  %v6802_v60 = vsel %vm2906_vm14, %v8196_v38, 0.0 }
 0xe3a   : > { %v6792_v47 = vsub.f32 %v6780_v7, %v6789_v24  ;;  %6803 = vadd.xlane.f32.xlu1 %v6802_v60  ;;  %v7308_v60 = vld [vmem:[#allocation12 + $0xb8] sm:$0xff] }
 0xe3c   : > { %v6797_v28 = vmul.f32 1.442695, %v6792_v47  ;;  %v10167_v47 = vand.u32 4294901760, %v7308_v60 }
 0xe3e   : > { %8197 = vpow2.f32 %v6797_v28  ;;  %v7307_v28 = vld [vmem:[#allocation12 + $0xb0] sm:$0xff] }
 0xe44   : > { %v10137_v34 = vpop.eup %8197 }
 0xe45   : > { %v6805_v58 = vsel %vm2906_vm14, %v10137_v34, 0.0 }
 0xe46   : > { %6806 = vadd.xlane.f32.xlu2 %v6805_v58  ;;  %v10172_v58 = vand.u32 4294901760, %v7307_v28 }
 0xea1   : > { %v6801_v10 = vpop.xlane.xlu0 %6800 }
 0xea2   : > { %8199 = vrcp.f32 %v6801_v10  ;;  %v6819_v45 = vand.u32 2147483648, %v6801_v10  ;;  %v6817_v63 = vand.u32 2147483647, %v6801_v10  ;;  %vm6813_vm11 = vweird.f32 %v6801_v10 }
 0xea4   : > { %v6820_v55 = vor.u32 1.1754944e-38, %v6819_v45  ;;  %vm6818_vm15 = vcmp.eq.f32.partialorder %v6817_v63, 8.507059e+37  ;;  %v7305_v45 = vld [vmem:[#allocation12 + $0xa0] sm:$0xff] }
 0xea8   : > { %v8200_v32 = vpop.eup %8199 }
 0xea9   : > { %v6809_v37 = vmul.f32 %v8200_v32, %v6801_v10  ;;  %vm6814_vm13 = vweird.f32 %v8200_v32  ;;  %v7306_v10 = vld [vmem:[#allocation12 + $0xa8] sm:$0xff] }
 0xeaa   : > { %vm6815_vm12 = vmor %vm6813_vm11, %vm6814_vm13  ;;  %vm7813_vm11 = vcmask 16384  }
 0xeab   : > { %v6810_v6 = vsub.f32 1.0, %v6809_v37  ;;  %v10178_v37 = vsub.f32 %v7307_v28, %v10172_v58 }
 0xead   : > { %v6811_v27 = vmul.f32 %v8200_v32, %v6810_v6  ;;  %v6804_v39 = vpop.xlane.xlu1 %6803  ;;  %v10181_v6 = vand.u32 4294901760, %v7306_v10  ;;  %v7388_v63 = vand.u32 4294901760, %v10178_v37 }
 0xeae   : > { %8201 = vrcp.f32 %v6804_v39  ;;  %v6834_v33 = vand.u32 2147483648, %v6804_v39  ;;  %v6832_v14 = vand.u32 2147483647, %v6804_v39  ;;  %vm6828_vm3 = vweird.f32 %v6804_v39 }
 0xeaf   : > { %v6812_v48 = vadd.f32 %v8200_v32, %v6811_v27 }
 0xeb0   : > { %v6835_v54 = vor.u32 1.1754944e-38, %v6834_v33  ;;  %vm6833_vm5 = vcmp.eq.f32.partialorder %v6832_v14, 8.507059e+37  ;;  %v7302_v33 = vld [vmem:[#allocation12 + $0x88] sm:$0xff] }
 0xeb1   : > { %v6816_v18 = vsel %vm6815_vm12, %v8200_v32, %v6812_v48  ;;  %v7304_v48 = vld [vmem:[#allocation12 + $0x98] sm:$0xff] }
 0xeb2   : > { %v6821_v49 = vsel %vm6818_vm15, %v6820_v55, %v6816_v18  ;;  %v7389_v18 = vsub.f32 %v10178_v37, %v7388_v63 }
 0xeb3   : > { %v6822_v21 = vmul.f32 %v8194_v15, %v6821_v49 }
 0xeb4   : > { %v8202_v30 = vpop.eup %8201 }
 0xeb5   : > { %v6824_v61 = vmul.f32 %v8202_v30, %v6804_v39  ;;  %v6854_v46 = vsel %vm2906_vm14, %v6822_v21, 0  ;;  %vm6829_vm1 = vweird.f32 %v8202_v30  ;;  %v10190_v39 = vsub.f32 %v7306_v10, %v10181_v6 }
 0xeb6   : > { %v6873_v42 = vand.u32 4294901760, %v6854_v46  ;;  %vm6830_vm4 = vmor %vm6828_vm3, %vm6829_vm1  ;;  %v7339_v21 = vand.u32 4294901760, %v7304_v48 }
 0xeb7   : > { %v6825_v20 = vsub.f32 1.0, %v6824_v61  ;;  %v7394_v49 = vand.u32 4294901760, %v10190_v39  ;;  %v7390_v61 = vand.u32 4294901760, %v7389_v18 }
 0xeb8   : > { %6904 = vmatmul.f32.vlgmr.msra.gmra.mxu1 %v6873_v42  ;;  %v6874_v40 = vsub.f32 %v6854_v46, %v6873_v42 }
 0xeb9   : > { %v6826_v16 = vmul.f32 %v8202_v30, %v6825_v20  ;;  %7097 = vmatpush.msra.mxu1 %v10113_v56  ;;  %v6807_v22 = vpop.xlane.xlu2 %6806  ;;  %v7395_v46 = vsub.f32 %v10190_v39, %v7394_v49 }
 0xeba   : > { %8203 = vrcp.f32 %v6807_v22  ;;  %6928 = vmatmul.f32.vlgmr.msra.gmra.mxu2 %v6874_v40  ;;  %v6875_v59 = vand.u32 4294901760, %v6874_v40  ;;  %v6849_v41 = vand.u32 2147483648, %v6807_v22  ;;  %v6847_v43 = vand.u32 2147483647, %v6807_v22 }
 0xebb   : > { %v6827_v52 = vadd.f32 %v8202_v30, %v6826_v16  ;;  %7123 = vmatpush.msra.mxu2 %v7048_v26  ;;  %vm6843_vm2 = vweird.f32 %v6807_v22 }
 0xebc   : > { %6952 = vmatmul.f32.vlgmr.msra.gmra.mxu3 %v6875_v59  ;;  %v6876_v13 = vsub.f32 %v6874_v40, %v6875_v59  ;;  %v6850_v25 = vor.u32 1.1754944e-38, %v6849_v41  ;;  %vm6848_vm8 = vcmp.eq.f32.partialorder %v6847_v43, 8.507059e+37  ;;  %v7396_v40 = vand.u32 4294901760, %v7395_v46  ;;  %v7301_v59 = vld [vmem:[#allocation12 + $0x80] sm:$0xff] }
 0xebd   : > { %v6831_v11 = vsel %vm6830_vm4, %v8202_v30, %v6827_v52  ;;  %7145 = vmatpush.msra.mxu3 %v10113_v56  ;;  %v7303_v30 = vld [vmem:[#allocation12 + $0x90] sm:$0xff] }
 0xebe   : > { %v6836_v3 = vsel %vm6833_vm5, %v6835_v54, %v6831_v11  ;;  %v6877_v51 = vand.u32 4294901760, %v6876_v13  ;;  %v7341_v20 = vand.u32 4294901760, %v7303_v30  ;;  %v7345_v13 = vand.u32 4294901760, %v7301_v59 }
 0xebf   : > { %v6837_v62 = vmul.f32 %v8196_v38, %v6836_v3 }
 0xec0   : > { %v8204_v4 = vpop.eup %8203  ;;  %6998 = vmatmul.f32.vlgmr.msrb.gmra.mxu1 %v6873_v42  ;;  %6878 = vmatmul.f32.vlgmr.msra.gmra.mxu0 %v6877_v51  ;;  %v7411_v14 = vsub.f32 %v7303_v30, %v7341_v20 }
 0xec1   : > { %v7003_v26 = vsel %vm2906_vm14, %v6837_v62, 0  ;;  %v6839_v19 = vmul.f32 %v8204_v4, %v6807_v22  ;;  %7200 = vmatpush.msrb.mxu1 %v7199_v57  ;;  %7074 = vmatpush.msra.mxu0 %v10119_v8  ;;  %vm6844_vm6 = vweird.f32 %v8204_v4  ;;  %v7343_v22 = vand.u32 4294901760, %v7302_v33 }
 0xec2   : > { %v7022_v31 = vand.u32 4294901760, %v7003_v26  ;;  %vm6845_vm7 = vmor %vm6843_vm2, %vm6844_vm6  ;;  %v7412_v54 = vand.u32 4294901760, %v7411_v14  ;;  %v7423_v57 = vsub.f32 %v7301_v59, %v7345_v13 }
 0xec3   : > { %v6840_v36 = vsub.f32 1.0, %v6839_v19  ;;  %v7417_v11 = vsub.f32 %v7302_v33, %v7343_v22 }
 0xec4   : > { %v7023_v35 = vsub.f32 %v7003_v26, %v7022_v31  ;;  %7053 = vmatmul.f32.vlgmr.msrb.gmra.mxu3 %v7022_v31  ;;  %v7413_v62 = vsub.f32 %v7411_v14, %v7412_v54 }
 0xec5   : > { %v6841_v29 = vmul.f32 %v8204_v4, %v6840_v36  ;;  %7246 = vmatpush.msrb.mxu3 %v10142_v5  ;;  %v7418_v51 = vand.u32 4294901760, %v7417_v11 }
 0xec6   : > { %v7024_v56 = vand.u32 4294901760, %v7023_v35  ;;  %v7414_v26 = vand.u32 4294901760, %v7413_v62 }
 0xec7   : > { %v6842_v7 = vadd.f32 %v8204_v4, %v6841_v29  ;;  %v7419_v19 = vsub.f32 %v7417_v11, %v7418_v51 }
 0xec8   : > { %7101 = vmatmul.f32.vlgmr.msra.gmra.mxu1 %v7024_v56  ;;  %v7025_v53 = vsub.f32 %v7023_v35, %v7024_v56  ;;  %6976 = vmatmul.f32.vlgmr.msrb.gmra.mxu0 %v6873_v42 }
 0xec9   : > { %v6846_v0 = vsel %vm6845_vm7, %v8204_v4, %v6842_v7  ;;  %7294 = vmatpush.msra.mxu1 %v10142_v5  ;;  %7170 = vmatpush.msrb.mxu0 %v10142_v5  ;;  %v10193_v5 = vand.u32 4294901760, %v7305_v45  ;;  %v7420_v36 = vand.u32 4294901760, %v7419_v19 }
 0xeca   : > { %v6851_v8 = vsel %vm6848_vm8, %v6850_v25, %v6846_v0  ;;  %v7026_v1 = vand.u32 4294901760, %v7025_v53 }
 0xecb   : > { %v6852_v15 = vmul.f32 %v10137_v34, %v6851_v8  ;;  %v10170_v34 = vsub.f32 %v7308_v60, %v10167_v47 }
 0xecc   : > { %7027 = vmatmul.f32.vlgmr.msrb.gmra.mxu2 %v7026_v1  ;;  %7147 = vmatmul.f32.vlgmr.msra.gmra.mxu3 %v7022_v31 }
 0xecd   : > { %v7152_v2 = vsel %vm2906_vm14, %v6852_v15, 0  ;;  %7223 = vmatpush.msrb.mxu2 %v10146_v9  ;;  %v7382_v32 = vand.u32 4294901760, %v10170_v34  ;;  %v7399_v9 = vsub.f32 %v7305_v45, %v10193_v5  ;;  %vm7638_vm14 = vcmask 1041409  }
 0xece   : > { %v7171_v12 = vand.u32 4294901760, %v7152_v2 }
 0xecf   : > { %v7383_v27 = vsub.f32 %v10170_v34, %v7382_v32  ;;  %v7400_v42 = vand.u32 4294901760, %v7399_v9 }
 0xed0   : > { %7202 = vmatmul.f32.vlgmr.msrb.gmra.mxu1 %v7171_v12  ;;  %v7172_v44 = vsub.f32 %v7152_v2, %v7171_v12  ;;  %7077 = vmatmul.f32.vlgmr.msra.gmra.mxu0 %v7023_v35 }
 0xed1   : > { %7272 = vmatpush.msra.mxu0 %v7197_v50  ;;  %7498 = vmatpush.msrb.mxu1 %v10167_v47  ;;  %v7384_v55 = vand.u32 4294901760, %v7383_v27  ;;  %v7405_v50 = vsub.f32 %v7304_v48, %v7339_v21  ;;  %v7401_v16 = vsub.f32 %v7399_v9, %v7400_v42 }
 0xed2   : > { %v7173_v17 = vand.u32 4294901760, %v7172_v44 }
 0xed3   : > { %7500 = vmatpush.msrb.mxu1 %v10172_v58  ;;  %7385 = vmatpush.msra.mxu3 %v7384_v55  ;;  %v7406_v52 = vand.u32 4294901760, %v7405_v50  ;;  %v7402_v23 = vand.u32 4294901760, %v7401_v16 }
 0xed4   : > { %7125 = vmatmul.f32.vlgmr.msra.gmra.mxu2 %v7022_v31  ;;  %v7174_v38 = vsub.f32 %v7172_v44, %v7173_v17  ;;  %7250 = vmatmul.f32.vlgmr.msrb.gmra.mxu3 %v7173_v17  ;;  %v7424_v31 = vand.u32 4294901760, %v7423_v57 }
 0xed5   : > { %7332 = vmatpush.msra.mxu2 %v10167_v47  ;;  %7502 = vmatpush.msrb.mxu1 %v10181_v6  ;;  %v7407_v3 = vsub.f32 %v7405_v50, %v7406_v52 }
 0xed6   : > { %v7175_v24 = vand.u32 4294901760, %v7174_v38  ;;  %7391 = vmatpush.msra.mxu3 %v7390_v61  ;;  %v7425_v41 = vsub.f32 %v7423_v57, %v7424_v31 }
 0xed7   : > { %7334 = vmatpush.msra.mxu2 %v10172_v58  ;;  %7504 = vmatpush.msrb.mxu1 %v10193_v5  ;;  %v7408_v4 = vand.u32 4294901760, %v7407_v3 }
 0xed8   : > { %7296 = vmatmul.f32.vlgmr.msra.gmra.mxu1 %v7171_v12  ;;  %7176 = vmatmul.f32.vlgmr.msrb.gmra.mxu0 %v7175_v24  ;;  %v7426_v35 = vand.u32 4294901760, %v7425_v41 }
 0xed9   : > { %7451 = vmatpush.msrb.mxu0 %v10170_v34  ;;  %7336 = vmatpush.msra.mxu2 %v10181_v6 }
 0xeda   : > { %7506 = vmatpush.msrb.mxu1 %v7339_v21  ;;  %7397 = vmatpush.msra.mxu3 %v7396_v40 }
 0xedb   : > { %7454 = vmatpush.msrb.mxu0 %v10178_v37  ;;  %7338 = vmatpush.msra.mxu2 %v10193_v5 }
 0xedc   : > { %7226 = vmatmul.f32.vlgmr.msrb.gmra.mxu2 %v7172_v44  ;;  %7508 = vmatpush.msrb.mxu1 %v7341_v20 }
 0xedd   : > { %7457 = vmatpush.msrb.mxu0 %v10190_v39  ;;  %7340 = vmatpush.msra.mxu2 %v7339_v21 }
 0xede   : > { %7510 = vmatpush.msrb.mxu1 %v7343_v22  ;;  %7403 = vmatpush.msra.mxu3 %v7402_v23 }
 0xedf   : > { %7460 = vmatpush.msrb.mxu0 %v7399_v9  ;;  %7342 = vmatpush.msra.mxu2 %v7341_v20 }
 0xee0   : > { %7274 = vmatmul.f32.vlgmr.msra.gmra.mxu0 %v7171_v12  ;;  %7512 = vmatpush.msrb.mxu1 %v7345_v13 }
 0xee1   : > { %7463 = vmatpush.msrb.mxu0 %v7405_v50  ;;  %7344 = vmatpush.msra.mxu2 %v7343_v22 }
 0xee2   : > { %7409 = vmatpush.msra.mxu3 %v7408_v4 }
 0xee3   : > { %7466 = vmatpush.msrb.mxu0 %v7411_v14  ;;  %7346 = vmatpush.msra.mxu2 %v7345_v13 }
 0xee4   : > { %7415 = vmatpush.msra.mxu3 %v7414_v26 }
 0xee5   : > { %7469 = vmatpush.msrb.mxu0 %v7417_v11  ;;  %7543 = vmatpush.msrb.mxu2 %v7382_v32 }
 0xee6   : > { %7421 = vmatpush.msra.mxu3 %v7420_v36 }
 0xee7   : > { %7472 = vmatpush.msrb.mxu0 %v7423_v57  ;;  %7547 = vmatpush.msrb.mxu2 %v7388_v63  ;;  %v8120_v57 = vld [vmem:[%s10253_s10 + $0x2] ss:$0 sm:$0xff] }
 0xee8   : > { %7427 = vmatpush.msra.mxu3 %v7426_v35 }
 0xee9   : > { %7551 = vmatpush.msrb.mxu2 %v7394_v49 }
 0xeea   : > { %7594 = vmatpush.msrb.mxu3 %v10167_v47 }
 0xeeb   : > { %7555 = vmatpush.msrb.mxu2 %v7400_v42 }
 0xeec   : > { %7596 = vmatpush.msrb.mxu3 %v10172_v58 }
 0xeed   : > { %7559 = vmatpush.msrb.mxu2 %v7406_v52 }
 0xeee   : > { %7598 = vmatpush.msrb.mxu3 %v10181_v6 }
 0xeef   : > { %7563 = vmatpush.msrb.mxu2 %v7412_v54 }
 0xef0   : > { %7600 = vmatpush.msrb.mxu3 %v10193_v5 }
 0xef1   : > { %7567 = vmatpush.msrb.mxu2 %v7418_v51 }
 0xef2   : > { %7602 = vmatpush.msrb.mxu3 %v7339_v21 }
 0xef3   : > { %7571 = vmatpush.msrb.mxu2 %v7424_v31 }
 0xef4   : > { %7604 = vmatpush.msrb.mxu3 %v7341_v20 }
 0xef6   : > { %7606 = vmatpush.msrb.mxu3 %v7343_v22 }
 0xef8   : > { %7608 = vmatpush.msrb.mxu3 %v7345_v13 }
 0xf35   : > { %v6905_v29 = vpop.f32.mrf.mxu1 }
 0xf3d   : > { %v6879_v43 = vpop.f32.mrf.mxu0  ;;  %v6929_v7 = vpop.f32.mrf.mxu2 }
 0xf3e   : > { %v6906_v56 = vadd.f32 %v6905_v29, %v6879_v43  ;;  %v6999_v1 = vpop.f32.mrf.mxu1 }
 0xf3f   : > { %v6953_v53 = vpop.f32.mrf.mxu3 }
 0xf40   : > { %v6930_v25 = vadd.f32 %v6929_v7, %v6906_v56 }
 0xf42   : > { %v6954_v0 = vadd.f32 %v6953_v53, %v6930_v25 }
 0xf45   : > { %v6977_v8 = vpop.f32.mrf.mxu0 }
 0xf46   : > { %v6978_v15 = vadd.f32 %v6977_v8, %v6954_v0  ;;  %v7102_v34 = vpop.f32.mrf.mxu1  ;;  %v7625_v8 = vld [vmem:[%s10278_s20] sm:$0x1] }
 0xf47   : > { %v7054_v17 = vpop.f32.mrf.mxu3 }
 0xf48   : > { %v7000_v2 = vadd.f32 %v6999_v1, %v6978_v15 }
 0xf4a   : > { %v7315_v12 = vsel %vm617_vm0, %v7000_v2, 0 }
 0xf4b   : > { %v7347_v44 = vand.u32 4294901760, %v7315_v12 }
 0xf4d   : > { %v7348_v38 = vsub.f32 %v7315_v12, %v7347_v44  ;;  %7429 = vmatmul.f32.vlgmr.msra.gmra.mxu3 %v7347_v44  ;;  %v7078_v24 = vpop.f32.mrf.mxu0 }
 0xf4e   : > { %v7203_v5 = vpop.f32.mrf.mxu1 }
 0xf4f   : > { %v7028_v60 = vpop.f32.mrf.mxu2  ;;  %v7349_v47 = vand.u32 4294901760, %v7348_v38  ;;  %7475 = vmatmul.f32.vlgmr.msrb.gmra.mxu0 %v7348_v38  ;;  %v7148_v6 = vpop.f32.mrf.mxu3 }
 0xf50   : > { %v7055_v28 = vadd.f32 %v7054_v17, %v7028_v60 }
 0xf51   : > { %v7350_v58 = vsub.f32 %v7348_v38, %v7349_v47  ;;  %7516 = vmatmul.f32.vlgmr.msrb.gmra.mxu1 %v7349_v47  ;;  %v7644_v38 = vsel %vm617_vm0, %v7625_v8, 0 }
 0xf52   : > { %v7079_v10 = vadd.f32 %v7078_v24, %v7055_v28 }
 0xf53   : > { %v7351_v32 = vand.u32 4294901760, %v7350_v58 }
 0xf54   : > { %v7103_v37 = vadd.f32 %v7102_v34, %v7079_v10  ;;  %v7665_v34 = vand.u32 4294901760, %v7644_v38 }
 0xf55   : > { %7352 = vmatmul.f32.vlgmr.msra.gmra.mxu2 %v7351_v32  ;;  %v7177_v63 = vpop.f32.mrf.mxu0 }
 0xf56   : > { %v7204_v18 = vadd.f32 %v7203_v5, %v7177_v63  ;;  %v7297_v33 = vpop.f32.mrf.mxu1 }
 0xf57   : > { %v7126_v45 = vpop.f32.mrf.mxu2  ;;  %v7251_v30 = vpop.f32.mrf.mxu3 }
 0xf58   : > { %v7127_v27 = vadd.f32 %v7126_v45, %v7103_v37  ;;  %v7666_v45 = vsub.f32 %v7644_v38, %v7665_v34 }
 0xf5a   : > { %v7149_v39 = vadd.f32 %v7148_v6, %v7127_v27  ;;  %v7626_v27 = vld [vmem:[#allocation3] sm:$0x1] }
 0xf5c   : > { %v7318_v48 = vsel %vm617_vm0, %v7149_v39, 0  ;;  %v8463_v39 = vmov 0  }
 0xf5d   : > { %v7355_v55 = vand.u32 4294901760, %v7318_v48  ;;  %v7275_v42 = vpop.f32.mrf.mxu0  ;;  %8110 = vset.pattern.permute.xlu0 %v8463_v39 }
 0xf5e   : > { %7629 = vperm.xlu0 %8110, %v7626_v27  }
 0xf5f   : > { %v7227_v49 = vpop.f32.mrf.mxu2  ;;  %7433 = vmatmul.f32.gmra.mxu3 %v7355_v55  ;;  %v7356_v9 = vsub.f32 %v7318_v48, %v7355_v55 }
 0xf60   : > { %v7228_v21 = vadd.f32 %v7227_v49, %v7204_v18  ;;  %v7667_v49 = vand.u32 4294901760, %v7666_v45 }
 0xf61   : > { %7480 = vmatmul.f32.gmra.mxu0 %v7356_v9  ;;  %v7357_v61 = vand.u32 4294901760, %v7356_v9 }
 0xf62   : > { %v7252_v46 = vadd.f32 %v7251_v30, %v7228_v21 }
 0xf63   : > { %7522 = vmatmul.f32.gmra.mxu1 %v7357_v61  ;;  %v7358_v20 = vsub.f32 %v7356_v9, %v7357_v61 }
 0xf64   : > { %v7276_v50 = vadd.f32 %v7275_v42, %v7252_v46  ;;  %v7668_v46 = vsub.f32 %v7666_v45, %v7667_v49 }
 0xf65   : > { %v7359_v40 = vand.u32 4294901760, %v7358_v20 }
 0xf66   : > { %v7298_v16 = vadd.f32 %v7297_v33, %v7276_v50  ;;  %v7669_v33 = vand.u32 4294901760, %v7668_v46 }
 0xf67   : > { %7360 = vmatmul.f32.gmra.mxu2 %v7359_v40 }
 0xf68   : > { %v7321_v14 = vsel %vm617_vm0, %v7298_v16, 0 }
 0xf69   : > { %v7363_v22 = vand.u32 4294901760, %v7321_v14 }
 0xf6b   : > { %7437 = vmatmul.f32.gmra.mxu3 %v7363_v22  ;;  %v7364_v52 = vsub.f32 %v7321_v14, %v7363_v22 }
 0xf6d   : > { %7485 = vmatmul.f32.gmra.mxu0 %v7364_v52  ;;  %v7365_v59 = vand.u32 4294901760, %v7364_v52 }
 0xf6f   : > { %7528 = vmatmul.f32.gmra.mxu1 %v7365_v59  ;;  %v7366_v23 = vsub.f32 %v7364_v52, %v7365_v59 }
 0xf71   : > { %v7367_v54 = vand.u32 4294901760, %v7366_v23 }
 0xf73   : > { %7368 = vmatmul.f32.gmra.mxu2 %v7367_v54  ;;  %7610 = vmatmul.f32.vlgmr.msrb.gmra.mxu3 %v7347_v44 }
 0xf7b   : > { %7573 = vmatmul.f32.vlgmr.msrb.gmra.mxu2 %v7347_v44  ;;  %7614 = vmatmul.f32.gmra.mxu3 %v7355_v55 }
 0xf83   : > { %7577 = vmatmul.f32.gmra.mxu2 %v7355_v55  ;;  %7618 = vmatmul.f32.gmra.mxu3 %v7363_v22 }
 0xf8b   : > { %7581 = vmatmul.f32.gmra.mxu2 %v7363_v22 }
 0xfcc   : > { %v7476_v26 = vpop.f32.mrf.mxu0 }
 0xfce   : > { %v7517_v36 = vpop.f32.mrf.mxu1 }
 0xfd0   : > { %v7430_v11 = vpop.f32.mrf.mxu3  ;;  %v7630_v59 = vpop.permute.xlu0 %7629 }
 0xfd1   : > { %v7632_v23 = vperm.slane %v7630_v59, 0 }
 0xfd8   : > { %v7353_v13 = vpop.f32.mrf.mxu2 }
 0xfd9   : > { %v7354_v31 = vadd.f32 %v8120_v57, %v7353_v13 }
 0xfdb   : > { %v7431_v29 = vadd.f32 %v7430_v11, %v7354_v31 }
 0xfdd   : > { %v7477_v53 = vadd.f32 %v7476_v26, %v7431_v29 }
 0xfde   : > { %v7481_v56 = vpop.f32.mrf.mxu0 }
 0xfdf   : > { %v7518_v2 = vadd.f32 %v7517_v36, %v7477_v53 }
 0xfe0   : > { %v7523_v0 = vpop.f32.mrf.mxu1 }
 0xfe2   : > { %v7434_v3 = vpop.f32.mrf.mxu3 }
 0xfea   : > { %v7361_v62 = vpop.f32.mrf.mxu2  ;;  %v7486_v24 = vpop.f32.mrf.mxu0 }
 0xfeb   : > { %v7362_v19 = vadd.f32 %v8120_v57, %v7361_v62 }
 0xfec   : > { %v7529_v58 = vpop.f32.mrf.mxu1 }
 0xfed   : > { %v7435_v35 = vadd.f32 %v7434_v3, %v7362_v19 }
 0xfee   : > { %v7438_v51 = vpop.f32.mrf.mxu3 }
 0xfef   : > { %v7482_v25 = vadd.f32 %v7481_v56, %v7435_v35 }
 0xff1   : > { %v7524_v15 = vadd.f32 %v7523_v0, %v7482_v25 }
 0xff6   : > { %v7369_v4 = vpop.f32.mrf.mxu2  ;;  %v7611_v41 = vpop.f32.mrf.mxu3 }
 0xff7   : > { %v7370_v7 = vadd.f32 %v8120_v57, %v7369_v4 }
 0xff9   : > { %v7439_v1 = vadd.f32 %v7438_v51, %v7370_v7 }
 0xffb   : > { %v7487_v47 = vadd.f32 %v7486_v24, %v7439_v1 }
 0xffd   : > { %v7530_v32 = vadd.f32 %v7529_v58, %v7487_v47 }
 0xffe   : > { %v7574_v43 = vpop.f32.mrf.mxu2  ;;  %v7615_v12 = vpop.f32.mrf.mxu3 }
 0xfff   : > { %v7575_v60 = vadd.f32 %v7574_v43, %v7518_v2 }
0x1001   : > { %v7612_v10 = vadd.f32 %v7611_v41, %v7575_v60 }
0x1003   : > { %v7622_v5 = vmax.f32 %v7612_v10, 0.0 }
0x1005   : > { %v7636_v21 = vrot.slane %v7622_v5, 6 }
0x1006   : > { %v7578_v44 = vpop.f32.mrf.mxu2  ;;  %v7619_v48 = vpop.f32.mrf.mxu3 }
0x1007   : > { %v7579_v17 = vadd.f32 %v7578_v44, %v7524_v15 }
0x1009   : > { %v7616_v28 = vadd.f32 %v7615_v12, %v7579_v17 }
0x100b   : > { %v7623_v37 = vmax.f32 %v7616_v28, 0.0 }
0x100d   : > { %v7637_v18 = vrot.slane %v7623_v37, 5 }
0x100e   : > { %v7582_v6 = vpop.f32.mrf.mxu2 }
0x100f   : > { %v7583_v63 = vadd.f32 %v7582_v6, %v7530_v32  ;;  %v7639_v61 = vsel %vm7638_vm14, %v7637_v18, %v7636_v21 }
0x1011   : > { %v7620_v55 = vadd.f32 %v7619_v48, %v7583_v63 }
0x1013   : > { %v7624_v9 = vmax.f32 %v7620_v55, 0.0 }
0x1015   : > { %v7640_v30 = vrot.slane %v7624_v9, 4 }
0x1017   : > { %v7642_v42 = vsel %vm7641_vm9, %v7640_v30, %v7639_v61 }
0x1018   : > { %v7646_v20 = vsel %vm617_vm0, %v7642_v42, 0 }
0x1019   : > { %v7663_v50 = vand.u32 4294901760, %v7646_v20 }
0x101b   : > { %7664 = vmatpush.xpose.msra.mxu0 %v7663_v50  ;;  %v7690_v40 = vsub.f32 %v7646_v20, %v7663_v50 }
0x101d   : > { %v7691_v16 = vand.u32 4294901760, %v7690_v40 }
0x101e   : > { %7670 = vmatmul.f32.vlgmr.msra.gmra.mxu0 %v7669_v33 }
0x101f   : > { %7717 = vmatpush.xpose.msrb.mxu0 %v7690_v40  ;;  %v7692_v14 = vsub.f32 %v7690_v40, %v7691_v16 }
0x1021   : > { %v7693_v22 = vand.u32 4294901760, %v7692_v14 }
0x1023   : > { %7766 = vmatpush.xpose.msra.mxu0 %v7691_v16  ;;  %7694 = vmatpush.xpose.msra.mxu1 %v7693_v22 }
0x1026   : > { %7696 = vmatmul.f32.vlgmr.msra.gmra.mxu1 %v7665_v34  ;;  %7720 = vmatmul.f32.vlgmr.msrb.gmra.mxu0 %v7666_v45 }
0x1027   : > { %7740 = vmatpush.xpose.msrb.mxu1 %v7663_v50 }
0x102b   : > { %7788 = vmatpush.xpose.msra.mxu1 %v7663_v50 }
0x102e   : > { %7744 = vmatmul.f32.vlgmr.msrb.gmra.mxu1 %v7667_v49  ;;  %7768 = vmatmul.f32.vlgmr.msra.gmra.mxu0 %v7665_v34 }
0x1036   : > { %7790 = vmatmul.f32.vlgmr.msra.gmra.mxu1 %v7665_v34 }
0x109b   : > { %v7671_v52 = vpop.f32.mrf.mxu0 }
0x109c   : > { %v7672_v11 = vadd.f32 %v7671_v52, %v7632_v23 }
0x10a3   : > { %v7697_v54 = vpop.f32.mrf.mxu1  ;;  %v7721_v13 = vpop.f32.mrf.mxu0 }
0x10a4   : > { %v7698_v3 = vadd.f32 %v7697_v54, %v7672_v11 }
0x10a6   : > { %v7722_v51 = vadd.f32 %v7721_v13, %v7698_v3 }
0x10ab   : > { %v7745_v62 = vpop.f32.mrf.mxu1  ;;  %v7769_v4 = vpop.f32.mrf.mxu0 }
0x10ac   : > { %v7746_v57 = vadd.f32 %v7745_v62, %v7722_v51 }
0x10ae   : > { %v7770_v26 = vadd.f32 %v7769_v4, %v7746_v57 }
0x10b3   : > { %v7791_v19 = vpop.f32.mrf.mxu1 }
0x10b4   : > { %v7792_v31 = vadd.f32 %v7791_v19, %v7770_v26 }
0x10b6   : > { %v7997_v36 = vmul.f32 -1.442695, %v7792_v31 }
0x10b8   : > { %8205 = vpow2.f32 %v7997_v36 }
0x10be   : > { %v8206_v41 = vpop.eup %8205 }
0x10bf   : > { %v7797_v35 = vadd.f32 1.0, %v8206_v41 }
0x10c1   : > { %8207 = vrcp.f32 %v7797_v35  ;;  %v7809_v7 = vand.u32 2147483648, %v7797_v35  ;;  %v7807_v53 = vand.u32 2147483647, %v7797_v35  ;;  %vm7803_vm10 = vweird.f32 %v7797_v35 }
0x10c3   : > { %v7810_v8 = vor.u32 1.1754944e-38, %v7809_v7  ;;  %vm7808_vm12 = vcmp.eq.f32.partialorder %v7807_v53, 8.507059e+37 }
0x10c7   : > { %v8208_v29 = vpop.eup %8207 }
0x10c8   : > { %v7799_v43 = vmul.f32 %v8208_v29, %v7797_v35  ;;  %vm7804_vm0 = vweird.f32 %v8208_v29 }
0x10c9   : > { %vm7805_vm13 = vmor %vm7803_vm10, %vm7804_vm0 }
0x10ca   : > { %v7800_v56 = vsub.f32 1.0, %v7799_v43 }
0x10cc   : > { %v7801_v25 = vmul.f32 %v8208_v29, %v7800_v56 }
0x10ce   : > { %v7802_v0 = vadd.f32 %v8208_v29, %v7801_v25 }
0x10d0   : > { %v7806_v1 = vsel %vm7805_vm13, %v8208_v29, %v7802_v0 }
0x10d1   : > { %v7811_v15 = vsel %vm7808_vm12, %v7810_v8, %v7806_v1 }
0x10d2   : > { %7814 = vst.msk [vmem:[%s611_s22] sm:$0x1] %vm7813_vm11, %v7811_v15 }
0x10d3 PF: > { %s31_s15 = sadd.s32 1, %s8454_s15   ;;  %s10280_s27 = smov %s8438_s28 }
0x10d4   : > { %p28_p2 = scmp.ge.s32.totalorder %s31_s15, 6   ;;  %s10281_s28 = smov %s8442_s29 }
0x10d5   : > { %s10282_s29 = smov %s8647_s26  ;;  %s10283_s30 = smov %s8450_s14 }
0x10d6   : > { %s10284_s14 = smov %s10286_s25  ;;  %30 = sbr.rel (!%p28_p2) target bundleno = 14 (0xe), region = 150 }
0x10db   :  { %7838 = vsyncpa [#allocation5], 1 }
0x10dc   :  { %7840 = vsyncpa [#allocation5 + $0x1], 1 }
0x10dd   :  { %7841 = vsyncpa [#allocation7], 1 }
0x10de   :  { %7842 = vsyncpa [#allocation10], 1 }
0x10df   :  { %7843 = vsyncpa [#allocation13], 1 }

</bundles_post_ra>
